<compile_context>
chip_gen: v5e
topology: v5e:2x2
jax: 0.10.0
libtpu: 0.0.40
codegen_flags: <defaults>
</compile_context>

<pallas_src>
import functools
import math

import jax
import jax.numpy as jnp
from jax.experimental import pallas as pl
from jax.experimental.pallas import tpu as pltpu


# ---------------------------------------------------------------------------
# Trace-time hardware introspection
# ---------------------------------------------------------------------------
def _tpu_generation() -> int:
    """Best-effort TPU generation from the device-kind string (0 = unknown)."""
    try:
        kind = jax.devices()[0].device_kind.lower()
    except Exception:
        return 0
    for gen in (7, 6, 5, 4):
        if f"v{gen}" in kind:
            return gen
    return 0


def _vmem_capacity_bytes() -> int:
    try:
        return int(pltpu.get_tpu_info().vmem_capacity_bytes)
    except Exception:
        return (64 << 20) if _tpu_generation() >= 7 else (128 << 20)


def _default_elementwise_dtype():
    # bf16 VPU/EUP exists on v6e/v7x; v5e (and unknown chips) stay in f32.
    return jnp.bfloat16 if _tpu_generation() >= 6 else jnp.float32


def _round_up(n: int, m: int) -> int:
    return ((n + m - 1) // m) * m


# ---------------------------------------------------------------------------
# Kernel
# ---------------------------------------------------------------------------
def mlp2_kernel(xc_ref, xt_ref, xb_ref, w1_ref, b1_ref, dw_ref, db_ref,
                w2_ref, b2_ref, o_ref, *, ew_dtype, gelu_approximate, w_valid):
    """One (batch, row-tile) step of fc1 -> dwconv3x3 -> GELU -> fc2.

    xc_ref : (TH, Wp, CinP) bf16   row tile of the input image
    xt_ref : (1,  Wp, CinP) bf16   row above the tile (clamped at the border)
    xb_ref : (1,  Wp, CinP) bf16   row below the tile (clamped at the border)
    w1/b1  : (CinP, ChidP) bf16 / (1, ChidP) f32
    dw/db  : (3, 3, ChidP) / (1, ChidP) in ew_dtype
    w2/b2  : (ChidP, CoutP) bf16 / (1, CoutP) f32
    o_ref  : (TH, Wp, CoutP) out_dtype
    """
    i = pl.program_id(1)
    n_row = pl.num_programs(1)

    TH, W, CinP = xc_ref.shape
    ChidP = w1_ref.shape[1]
    CoutP = w2_ref.shape[1]
    THE = TH + 2                               # tile + one halo row each side

    # Halo-extended input tile (halos arrive via clamped BlockSpec fetches).
    # TODO(synk): merge the three fetches into a single overlapping
    # (tile_h + 2)-row DMA window to drop this VMEM copy + 2 descriptors/step.
    x_ext = jnp.concatenate([xt_ref[...], xc_ref[...], xb_ref[...]], axis=0)

    # ---- fc1 (1x1 conv): bf16 operands on the MXU, f32 accumulation ---------
    h_f = jnp.dot(x_ext.reshape(THE * W, CinP), w1_ref[...],
                  preferred_element_type=jnp.float32)
    h_f = (h_f + b1_ref[...]).reshape(THE, W, ChidP)

    # The dwconv's zero padding applies to fc1's *output*: halo rows falling
    # outside the image must be exactly zero (not fc1(0) == b1).  A single
    # multiplicative (THE,1,1) mask replaces the two full-tile selects.
    row = jax.lax.broadcasted_iota(jnp.int32, (THE, 1, 1), 0)
    outside = ((row == 0) & (i == 0)) | ((row == THE - 1) & (i == n_row - 1))
    h_f = h_f * jnp.logical_not(outside).astype(jnp.float32)

    # ---- depthwise 3x3, stride 1, pad 1 --------------------------------------
    # W-direction taps: two f32 sublane rotations of the full extended tile
    # (XLU slot; kept 32-bit -- packed-bf16 rotates are not relied upon), then
    # everything downstream runs in ew_dtype (bf16 on v6e/v7x, f32 on v5e).
    h_l = pltpu.roll(h_f, shift=1, axis=1).astype(ew_dtype)      # [:,x] = h[:,x-1]
    h_r = pltpu.roll(h_f, shift=W - 1, axis=1).astype(ew_dtype)  # [:,x] = h[:,x+1]
    h = h_f.astype(ew_dtype)

    dwk = dw_ref[...]                                            # (3, 3, ChidP)
    col = jax.lax.broadcasted_iota(jnp.int32, (1, W, 1), 1)
    mask_l = (col > 0).astype(ew_dtype)            # zero tap x-1 at column 0
    mask_r = (col < w_valid - 1).astype(ew_dtype)  # zero tap x+1 at right edge

    acc = jnp.broadcast_to(db_ref[...].reshape(1, 1, ChidP), (TH, W, ChidP))
    for kh in range(3):                            # image rows y + kh - 1
        acc = acc + h[kh:kh + TH] * dwk[kh, 1, :]
        acc = acc + h_l[kh:kh + TH] * (mask_l * dwk[kh, 0, :])
        acc = acc + h_r[kh:kh + TH] * (mask_r * dwk[kh, 2, :])

    # ---- GELU: tanh form runs on the (otherwise idle) EUP slot ---------------
    a = jax.nn.gelu(acc, approximate=gelu_approximate)

    # ---- fc2 (1x1 conv): bf16 MXU matmul, f32 acc, lane-dense store ----------
    y = jnp.dot(a.astype(jnp.bfloat16).reshape(TH * W, ChidP), w2_ref[...],
                preferred_element_type=jnp.float32) + b2_ref[...]
    o_ref[...] = y.reshape(TH, W, CoutP).astype(o_ref.dtype)


# ---------------------------------------------------------------------------
# Tiling heuristics
# ---------------------------------------------------------------------------
def _pick_tile_h(B, H, W, CinP, ChidP, CoutP, ew_bytes, out_bytes,
                 budget_bytes, want_two_steps):
    """Largest row-tile height dividing H whose per-step footprint (rough
    estimate: double-buffered I/O, x_ext copy, live intermediates, single-
    buffered weights) fits the budget; prefers multiples of 8."""
    per_row = W * (
        3 * 2 * CinP                                           # bf16 x (2 bufs) + x_ext copy
        + (4 + 4 * ew_bytes + (2 if ew_bytes == 4 else 0)) * ChidP  # h_f/h/h_l/h_r/acc/a
        + 2 * out_bytes * CoutP)                               # output tile (2 bufs)
    fixed = 2 * (CinP * ChidP + ChidP * CoutP)                 # bf16 weights
    max_rows = max(int((budget_bytes - fixed) // max(per_row, 1)), 1)

    divs = [d for d in range(1, H + 1) if H % d == 0]
    cand = [d for d in divs if d <= max_rows] or [1]
    mult8 = [d for d in cand if d % 8 == 0]
    tile_h = max(mult8) if mult8 else max(cand)

    # Megacore: on 2-TensorCore chips make sure there are >= 2 grid steps.
    if want_two_steps and B * (H // tile_h) < 2:
        smaller = [d for d in divs if d < tile_h]
        if smaller:
            m8 = [d for d in smaller if d % 8 == 0]
            tile_h = max(m8) if m8 else max(smaller)
    return tile_h


def _const_spec(shape, single_buffer):
    ndim = len(shape)
    index_map = lambda b, i: (0,) * ndim
    if single_buffer:
        # Constant block index across the whole grid: the second pipeline
        # buffer is pure wasted VMEM, so request a single buffer.
        return pl.BlockSpec(shape, index_map, pipeline_mode=pl.Buffered(1))
    return pl.BlockSpec(shape, index_map)


# ---------------------------------------------------------------------------
# pallas_call wrapper
# ---------------------------------------------------------------------------
@functools.partial(jax.jit, static_argnames=(
    "nchw", "tile_h", "ew_dtype", "out_dtype", "gelu_approximate",
    "single_buffer_weights"))
def _mlp2_impl(x, w1, b1, dw, db, w2, b2, *, nchw, tile_h, ew_dtype, out_dtype,
               gelu_approximate, single_buffer_weights):
    if nchw:
        x = jnp.transpose(x, (0, 2, 3, 1))                     # -> NHWC
    B, H, W, Cin = x.shape
    Chid = w1.shape[1]
    Cout = w2.shape[1]
    CinP, ChidP, CoutP = (_round_up(c, 128) for c in (Cin, Chid, Cout))
    Wp = _round_up(W, 8)        # sublane-align W (layout-preserving reshapes)

    # Lane-dense channel padding: zero-padded weight rows/cols leave the math
    # unchanged; padded outputs are sliced off below only when padding exists.
    # Callers already holding bf16 NHWC with aligned C/W skip these copies.
    xp = jnp.pad(x, ((0, 0), (0, 0), (0, Wp - W), (0, CinP - Cin))
                 ).astype(jnp.bfloat16)
    w1p = jnp.pad(w1, ((0, CinP - Cin), (0, ChidP - Chid))).astype(jnp.bfloat16)
    w2p = jnp.pad(w2, ((0, ChidP - Chid), (0, CoutP - Cout))).astype(jnp.bfloat16)
    b1p = jnp.pad(b1.reshape(1, -1).astype(jnp.float32),
                  ((0, 0), (0, ChidP - Chid)))
    b2p = jnp.pad(b2.reshape(1, -1).astype(jnp.float32),
                  ((0, 0), (0, CoutP - Cout)))
    dwp = jnp.pad(dw, ((0, 0), (0, 0), (0, ChidP - Chid))).astype(ew_dtype)
    dbp = jnp.pad(db.reshape(1, -1), ((0, 0), (0, ChidP - Chid))).astype(ew_dtype)

    # Generation-dependent VMEM sizing: 128 MiB-class chips (v5e/v6e) get the
    # bigger budget / limit; v7x (64 MiB physical) stays conservative.
    if _vmem_capacity_bytes() >= (96 << 20):
        budget, vmem_limit = 24 << 20, 64 << 20
    else:
        budget, vmem_limit = 8 << 20, 32 << 20

    if tile_h is None:
        tile_h = _pick_tile_h(B, H, Wp, CinP, ChidP, CoutP,
                              jnp.dtype(ew_dtype).itemsize,
                              jnp.dtype(out_dtype).itemsize,
                              budget, want_two_steps=_tpu_generation() >= 7)
    assert H % tile_h == 0, "tile_h must divide H"
    n_row = H // tile_h

    kernel = functools.partial(mlp2_kernel, ew_dtype=ew_dtype,
                               gelu_approximate=gelu_approximate, w_valid=W)

    out = pl.pallas_call(
        kernel,
        out_shape=jax.ShapeDtypeStruct((B, H, Wp, CoutP), out_dtype),
        grid=(B, n_row),
        in_specs=[
            # Row tile of x plus two 1-row halos (clamped at the image border;
            # the matching fc1 rows are zeroed inside the kernel).
            pl.BlockSpec((None, tile_h, Wp, CinP), lambda b, i: (b, i, 0, 0)),
            pl.BlockSpec((None, 1, Wp, CinP),
                         lambda b, i: (b, jnp.maximum(i * tile_h - 1, 0), 0, 0)),
            pl.BlockSpec((None, 1, Wp, CinP),
                         lambda b, i: (b, jnp.minimum((i + 1) * tile_h, H - 1),
                                       0, 0)),
            # Weights / biases: constant block index; single-buffered when the
            # runtime supports pl.Buffered(1).
            _const_spec((CinP, ChidP), single_buffer_weights),
            _const_spec((1, ChidP), single_buffer_weights),
            _const_spec((3, 3, ChidP), single_buffer_weights),
            _const_spec((1, ChidP), single_buffer_weights),
            _const_spec((ChidP, CoutP), single_buffer_weights),
            _const_spec((1, CoutP), single_buffer_weights),
        ],
        out_specs=pl.BlockSpec((None, tile_h, Wp, CoutP),
                               lambda b, i: (b, i, 0, 0)),
        compiler_params=pltpu.CompilerParams(
            dimension_semantics=("parallel", "parallel"),
            vmem_limit_bytes=vmem_limit),
    )(xp, xp, xp, w1p, b1p, dwp, dbp, w2p, b2p)

    if CoutP != Cout or Wp != W:                 # skip the copy when unpadded
        out = out[:, :, :W, :Cout]
    if nchw:
        out = jnp.transpose(out, (0, 3, 1, 2))
    return out


_SINGLE_BUFFER_WEIGHTS_OK = True


def _run(x, w1, b1, dw, db, w2, b2, **cfg):
    """Call the jitted impl, feature-detecting pl.Buffered(1) support."""
    global _SINGLE_BUFFER_WEIGHTS_OK
    if _SINGLE_BUFFER_WEIGHTS_OK:
        try:
            return _mlp2_impl(x, w1, b1, dw, db, w2, b2,
                              single_buffer_weights=True, **cfg)
        except Exception:
            # This jax/Mosaic build rejects single-buffered specs: fall back
            # to the default double-buffered weight fetch.
            _SINGLE_BUFFER_WEIGHTS_OK = False
    return _mlp2_impl(x, w1, b1, dw, db, w2, b2,
                      single_buffer_weights=False, **cfg)


def mlp2_pallas_nhwc(x_nhwc, w1, b1, dw, db, w2, b2, *, tile_h=None,
                     elementwise_dtype=None, out_dtype=jnp.bfloat16,
                     gelu_approximate=True):
    """Mlp2 forward on NHWC input -> (B, H, W, Cout) in out_dtype.
    gelu_approximate=True uses the tanh GELU (EUP); pass False to bit-follow
    PyTorch's exact-erf nn.GELU default."""
    if elementwise_dtype is None:
        elementwise_dtype = _default_elementwise_dtype()
    return _run(x_nhwc, w1, b1, dw, db, w2, b2, nchw=False, tile_h=tile_h,
                ew_dtype=elementwise_dtype, out_dtype=out_dtype,
                gelu_approximate=gelu_approximate)


def mlp2_pallas(x_nchw, w1, b1, dw, db, w2, b2, *, tile_h=None,
                elementwise_dtype=None, out_dtype=jnp.bfloat16,
                gelu_approximate=True):
    """NCHW wrapper matching the PyTorch module interface."""
    if elementwise_dtype is None:
        elementwise_dtype = _default_elementwise_dtype()
    return _run(x_nchw, w1, b1, dw, db, w2, b2, nchw=True, tile_h=tile_h,
                ew_dtype=elementwise_dtype, out_dtype=out_dtype,
                gelu_approximate=gelu_approximate)


# ---------------------------------------------------------------------------
# Pure-JAX reference (independent code path)
# ---------------------------------------------------------------------------
def mlp2_reference(x_nchw, w1, b1, dw, db, w2, b2, *,
                   matmul_dtype=jnp.float32, approximate_gelu=False):
    f32 = jnp.float32
    hp = jax.lax.Precision.HIGHEST
    xq = x_nchw.astype(matmul_dtype).astype(f32)
    w1q = w1.astype(matmul_dtype).astype(f32)
    w2q = w2.astype(matmul_dtype).astype(f32)

    h = jnp.einsum('bchw,cd->bdhw', xq, w1q, precision=hp) + b1.reshape(1, -1, 1, 1)
    dwk = jnp.transpose(dw, (2, 0, 1))[:, None, :, :]          # (Chid, 1, 3, 3)
    h = jax.lax.conv_general_dilated(
        h, dwk, window_strides=(1, 1), padding=((1, 1), (1, 1)),
        feature_group_count=h.shape[1], precision=hp) + db.reshape(1, -1, 1, 1)
    h = jax.nn.gelu(h, approximate=approximate_gelu)
    h = h.astype(matmul_dtype).astype(f32)
    y = jnp.einsum('bchw,cd->bdhw', h, w2q, precision=hp) + b2.reshape(1, -1, 1, 1)
    return y


if __name__ == "__main__":
    B, Cin, H, W = 2, 4, 16, 16
    hidden = 32
    Cout = Cin                      # out_features defaults to in_features

    key = jax.random.PRNGKey(0)
    kx, k1, kb1, k2, kb2, k3, kb3, kc = jax.random.split(key, 8)

    x = jax.random.normal(kx, (B, Cin, H, W), jnp.float32)
    # Conv2d weight init from Mlp2._init_weights: N(0, sqrt(2 / fan_out)).
    # Biases are random (instead of the zero init) so the test exercises the
    # bias and zero-padding boundary paths of the kernel.
    w1 = jax.random.normal(k1, (Cin, hidden), jnp.float32) * math.sqrt(2.0 / hidden)
    b1 = jax.random.normal(kb1, (hidden,), jnp.float32) * 0.1
    dw = jax.random.normal(k2, (3, 3, hidden), jnp.float32) * math.sqrt(2.0 / 9.0)
    db = jax.random.normal(kb2, (hidden,), jnp.float32) * 0.1
    w2 = jax.random.normal(k3, (hidden, Cout), jnp.float32) * math.sqrt(2.0 / Cout)
    b2 = jax.random.normal(kb3, (Cout,), jnp.float32) * 0.1

    f32 = jnp.float32
    to_bf = lambda a: a.astype(jnp.bfloat16).astype(f32)   # match bf16 out rounding

    # --- Path A: generation-independent settings (f32 elementwise, tanh GELU),
    # multi-row tiles (H=16, tile_h=8) exercise the halo / border-mask logic.
    out_a = jax.block_until_ready(
        mlp2_pallas(x, w1, b1, dw, db, w2, b2, tile_h=8,
                    elementwise_dtype=jnp.float32))
    assert out_a.shape == (B, Cout, H, W)
    ref_q = mlp2_reference(x, w1, b1, dw, db, w2, b2,
                           matmul_dtype=jnp.bfloat16, approximate_gelu=True)
    ref_f = mlp2_reference(x, w1, b1, dw, db, w2, b2)      # exact module math
    assert jnp.allclose(out_a.astype(f32), to_bf(ref_q), atol=1e-2, rtol=1e-2), \
        "mismatch vs matched (bf16-operand, tanh-GELU) reference"
    assert jnp.allclose(out_a.astype(f32), ref_f, atol=1.5e-1, rtol=1e-1), \
        "mismatch vs exact f32 module reference"

    # --- Path B: auto config (generation-selected elementwise dtype, tile_h,
    # single-buffered weights).  bf16 elementwise on v6e/v7x widens tolerance.
    out_b = jax.block_until_ready(mlp2_pallas(x, w1, b1, dw, db, w2, b2))
    assert out_b.shape == (B, Cout, H, W)
    assert jnp.allclose(out_b.astype(f32), ref_f, atol=2.5e-1, rtol=1e-1), \
        "mismatch (auto-config path)"

    # --- Path C: VAN-style odd width (W=14, B=1) exercises the sublane (W)
    # padding, the right-edge mask at the true border, and the auto tile picker.
    x_c = jax.random.normal(kc, (1, Cin, H, 14), jnp.float32)
    out_c = jax.block_until_ready(
        mlp2_pallas(x_c, w1, b1, dw, db, w2, b2, elementwise_dtype=jnp.float32))
    assert out_c.shape == (1, Cout, H, 14)
    ref_c = mlp2_reference(x_c, w1, b1, dw, db, w2, b2,
                           matmul_dtype=jnp.bfloat16, approximate_gelu=True)
    assert jnp.allclose(out_c.astype(f32), to_bf(ref_c), atol=1e-2, rtol=1e-2), \
        "mismatch (padded-width path)"

    print("KERNEL_OK")
</pallas_src>

<mosaic_0001>
module attributes {stable_mosaic.version = 11 : i64} {
  func.func @mlp2_kernel(%arg0: i32, %arg1: i32, %arg2: memref<1x8x16x128xbf16, #tpu.memory_space<vmem>>, %arg3: memref<1x1x16x128xbf16, #tpu.memory_space<vmem>>, %arg4: memref<1x1x16x128xbf16, #tpu.memory_space<vmem>>, %arg5: memref<128x128xbf16, #tpu.memory_space<vmem>>, %arg6: memref<1x128xf32, #tpu.memory_space<vmem>>, %arg7: memref<3x3x128xf32, #tpu.memory_space<vmem>>, %arg8: memref<1x128xf32, #tpu.memory_space<vmem>>, %arg9: memref<128x128xbf16, #tpu.memory_space<vmem>>, %arg10: memref<1x128xf32, #tpu.memory_space<vmem>>, %arg11: memref<1x8x16x128xbf16, #tpu.memory_space<vmem>>) attributes {dimension_semantics = [#tpu.dimension_semantics<parallel>, #tpu.dimension_semantics<parallel>], iteration_bounds = array<i64: 2, 2>, scalar_prefetch = 0 : i64, scratch_operands = 0 : i64, tpu.core_type = #tpu.core_type<tc>, window_params = [{transform_indices = @transform_0, window_bounds = array<i64: 1, 8, 16, 128>}, {transform_indices = @transform_1, window_bounds = array<i64: 1, 1, 16, 128>}, {transform_indices = @transform_2, window_bounds = array<i64: 1, 1, 16, 128>}, {pipeline_mode = #tpu.pipeline_mode<synchronous>, transform_indices = @transform_3, window_bounds = array<i64: 128, 128>}, {pipeline_mode = #tpu.pipeline_mode<synchronous>, transform_indices = @transform_4, window_bounds = array<i64: 1, 128>}, {pipeline_mode = #tpu.pipeline_mode<synchronous>, transform_indices = @transform_5, window_bounds = array<i64: 3, 3, 128>}, {pipeline_mode = #tpu.pipeline_mode<synchronous>, transform_indices = @transform_6, window_bounds = array<i64: 1, 128>}, {pipeline_mode = #tpu.pipeline_mode<synchronous>, transform_indices = @transform_7, window_bounds = array<i64: 128, 128>}, {pipeline_mode = #tpu.pipeline_mode<synchronous>, transform_indices = @transform_8, window_bounds = array<i64: 1, 128>}, {transform_indices = @transform_9, window_bounds = array<i64: 1, 8, 16, 128>}]} {
    %c0 = arith.constant 0 : index
    %c0_0 = arith.constant 0 : index
    %c0_1 = arith.constant 0 : index
    %c0_2 = arith.constant 0 : index
    %0 = vector.load %arg3[%c0, %c0_0, %c0_1, %c0_2] : memref<1x1x16x128xbf16, #tpu.memory_space<vmem>>, vector<1x1x16x128xbf16>
    %1 = vector.shape_cast %0 : vector<1x1x16x128xbf16> to vector<1x16x128xbf16>
    %c0_3 = arith.constant 0 : index
    %c0_4 = arith.constant 0 : index
    %c0_5 = arith.constant 0 : index
    %c0_6 = arith.constant 0 : index
    %2 = vector.load %arg2[%c0_3, %c0_4, %c0_5, %c0_6] : memref<1x8x16x128xbf16, #tpu.memory_space<vmem>>, vector<1x8x16x128xbf16>
    %3 = vector.shape_cast %2 : vector<1x8x16x128xbf16> to vector<8x16x128xbf16>
    %c0_7 = arith.constant 0 : index
    %c0_8 = arith.constant 0 : index
    %c0_9 = arith.constant 0 : index
    %c0_10 = arith.constant 0 : index
    %4 = vector.load %arg4[%c0_7, %c0_8, %c0_9, %c0_10] : memref<1x1x16x128xbf16, #tpu.memory_space<vmem>>, vector<1x1x16x128xbf16>
    %5 = vector.shape_cast %4 : vector<1x1x16x128xbf16> to vector<1x16x128xbf16>
    %6 = tpu.concatenate %1, %3, %5 in 0 : vector<1x16x128xbf16>, vector<8x16x128xbf16>, vector<1x16x128xbf16> -> vector<10x16x128xbf16>
    %7 = vector.shape_cast %6 : vector<10x16x128xbf16> to vector<160x128xbf16>
    %c0_11 = arith.constant 0 : index
    %c0_12 = arith.constant 0 : index
    %8 = vector.load %arg5[%c0_11, %c0_12] : memref<128x128xbf16, #tpu.memory_space<vmem>>, vector<128x128xbf16>
    %cst = arith.constant dense<0.000000e+00> : vector<160x128xf32>
    %9 = tpu.matmul %7, %8, %cst {dimension_numbers = #tpu.dot_dimension_numbers<[1], [0], [0], [1], [0, 0, 1, 1], [], []>} : vector<160x128xbf16>, vector<128x128xbf16>, vector<160x128xf32> -> vector<160x128xf32>
    %c0_13 = arith.constant 0 : index
    %c0_14 = arith.constant 0 : index
    %10 = vector.load %arg6[%c0_13, %c0_14] : memref<1x128xf32, #tpu.memory_space<vmem>>, vector<1x128xf32>
    %11 = vector.broadcast %10 : vector<1x128xf32> to vector<160x128xf32>
    %12 = arith.addf %9, %11 : vector<160x128xf32>
    %13 = vector.shape_cast %12 : vector<160x128xf32> to vector<10x16x128xf32>
    %14 = tpu.iota {dimensions = array<i32: 0>} : vector<10x1x1xi32>
    %c0_i32 = arith.constant 0 : i32
    %15 = vector.broadcast %c0_i32 : i32 to vector<10x1x1xi32>
    %16 = arith.cmpi eq, %14, %15 : vector<10x1x1xi32>
    %c0_i32_15 = arith.constant 0 : i32
    %17 = arith.cmpi eq, %arg1, %c0_i32_15 : i32
    %18 = vector.broadcast %17 : i1 to vector<10x1x1xi1>
    %19 = arith.andi %16, %18 : vector<10x1x1xi1>
    %c9_i32 = arith.constant 9 : i32
    %20 = vector.broadcast %c9_i32 : i32 to vector<10x1x1xi32>
    %21 = arith.cmpi eq, %14, %20 : vector<10x1x1xi32>
    %c1_i32 = arith.constant 1 : i32
    %22 = arith.cmpi eq, %arg1, %c1_i32 : i32
    %23 = vector.broadcast %22 : i1 to vector<10x1x1xi1>
    %24 = arith.andi %21, %23 : vector<10x1x1xi1>
    %25 = arith.ori %19, %24 : vector<10x1x1xi1>
    %cst_16 = arith.constant dense<true> : vector<10x1x1xi1>
    %26 = arith.xori %25, %cst_16 : vector<10x1x1xi1>
    %27 = arith.extui %26 : vector<10x1x1xi1> to vector<10x1x1xi32>
    %28 = arith.sitofp %27 : vector<10x1x1xi32> to vector<10x1x1xf32>
    %29 = vector.broadcast %28 : vector<10x1x1xf32> to vector<10x16x128xf32>
    %30 = arith.mulf %13, %29 : vector<10x16x128xf32>
    %c1_i32_17 = arith.constant 1 : i32
    %31 = tpu.dynamic_rotate %30 by %c1_i32_17 dim 1 : vector<10x16x128xf32>, i32 -> vector<10x16x128xf32>
    %c15_i32 = arith.constant 15 : i32
    %32 = tpu.dynamic_rotate %30 by %c15_i32 dim 1 : vector<10x16x128xf32>, i32 -> vector<10x16x128xf32>
    %c0_18 = arith.constant 0 : index
    %c0_19 = arith.constant 0 : index
    %c0_20 = arith.constant 0 : index
    %33 = vector.load %arg7[%c0_18, %c0_19, %c0_20] : memref<3x3x128xf32, #tpu.memory_space<vmem>>, vector<3x3x128xf32>
    %34 = tpu.iota {dimensions = array<i32: 1>} : vector<1x16x1xi32>
    %c0_i32_21 = arith.constant 0 : i32
    %35 = vector.broadcast %c0_i32_21 : i32 to vector<1x16x1xi32>
    %36 = arith.cmpi sgt, %34, %35 : vector<1x16x1xi32>
    %37 = arith.extui %36 : vector<1x16x1xi1> to vector<1x16x1xi32>
    %38 = arith.sitofp %37 : vector<1x16x1xi32> to vector<1x16x1xf32>
    %c15_i32_22 = arith.constant 15 : i32
    %39 = vector.broadcast %c15_i32_22 : i32 to vector<1x16x1xi32>
    %40 = arith.cmpi slt, %34, %39 : vector<1x16x1xi32>
    %41 = arith.extui %40 : vector<1x16x1xi1> to vector<1x16x1xi32>
    %42 = arith.sitofp %41 : vector<1x16x1xi32> to vector<1x16x1xf32>
    %c0_23 = arith.constant 0 : index
    %c0_24 = arith.constant 0 : index
    %43 = vector.load %arg8[%c0_23, %c0_24] : memref<1x128xf32, #tpu.memory_space<vmem>>, vector<1x128xf32>
    %44 = vector.shape_cast %43 : vector<1x128xf32> to vector<1x1x128xf32>
    %45 = vector.shape_cast %44 : vector<1x1x128xf32> to vector<1x1x128xf32>
    %46 = vector.broadcast %45 : vector<1x1x128xf32> to vector<8x16x128xf32>
    %47 = vector.extract_strided_slice %30 {offsets = [0, 0, 0], sizes = [8, 16, 128], strides = [1, 1, 1]} : vector<10x16x128xf32> to vector<8x16x128xf32>
    %48 = vector.extract_strided_slice %33 {offsets = [0, 1, 0], sizes = [1, 1, 128], strides = [1, 1, 1]} : vector<3x3x128xf32> to vector<1x1x128xf32>
    %49 = vector.shape_cast %48 : vector<1x1x128xf32> to vector<128xf32>
    %50 = vector.shape_cast %49 : vector<128xf32> to vector<1x1x128xf32>
    %51 = vector.broadcast %50 : vector<1x1x128xf32> to vector<8x16x128xf32>
    %52 = arith.mulf %47, %51 : vector<8x16x128xf32>
    %53 = arith.addf %46, %52 : vector<8x16x128xf32>
    %54 = vector.extract_strided_slice %31 {offsets = [0, 0, 0], sizes = [8, 16, 128], strides = [1, 1, 1]} : vector<10x16x128xf32> to vector<8x16x128xf32>
    %55 = vector.extract_strided_slice %33 {offsets = [0, 0, 0], sizes = [1, 1, 128], strides = [1, 1, 1]} : vector<3x3x128xf32> to vector<1x1x128xf32>
    %56 = vector.shape_cast %55 : vector<1x1x128xf32> to vector<128xf32>
    %57 = vector.shape_cast %56 : vector<128xf32> to vector<1x1x128xf32>
    %58 = vector.broadcast %38 : vector<1x16x1xf32> to vector<1x16x128xf32>
    %59 = vector.broadcast %57 : vector<1x1x128xf32> to vector<1x16x128xf32>
    %60 = arith.mulf %58, %59 : vector<1x16x128xf32>
    %61 = vector.broadcast %60 : vector<1x16x128xf32> to vector<8x16x128xf32>
    %62 = arith.mulf %54, %61 : vector<8x16x128xf32>
    %63 = arith.addf %53, %62 : vector<8x16x128xf32>
    %64 = vector.extract_strided_slice %32 {offsets = [0, 0, 0], sizes = [8, 16, 128], strides = [1, 1, 1]} : vector<10x16x128xf32> to vector<8x16x128xf32>
    %65 = vector.extract_strided_slice %33 {offsets = [0, 2, 0], sizes = [1, 1, 128], strides = [1, 1, 1]} : vector<3x3x128xf32> to vector<1x1x128xf32>
    %66 = vector.shape_cast %65 : vector<1x1x128xf32> to vector<128xf32>
    %67 = vector.shape_cast %66 : vector<128xf32> to vector<1x1x128xf32>
    %68 = vector.broadcast %42 : vector<1x16x1xf32> to vector<1x16x128xf32>
    %69 = vector.broadcast %67 : vector<1x1x128xf32> to vector<1x16x128xf32>
    %70 = arith.mulf %68, %69 : vector<1x16x128xf32>
    %71 = vector.broadcast %70 : vector<1x16x128xf32> to vector<8x16x128xf32>
    %72 = arith.mulf %64, %71 : vector<8x16x128xf32>
    %73 = arith.addf %63, %72 : vector<8x16x128xf32>
    %74 = vector.extract_strided_slice %30 {offsets = [1, 0, 0], sizes = [8, 16, 128], strides = [1, 1, 1]} : vector<10x16x128xf32> to vector<8x16x128xf32>
    %75 = vector.extract_strided_slice %33 {offsets = [1, 1, 0], sizes = [1, 1, 128], strides = [1, 1, 1]} : vector<3x3x128xf32> to vector<1x1x128xf32>
    %76 = vector.shape_cast %75 : vector<1x1x128xf32> to vector<128xf32>
    %77 = vector.shape_cast %76 : vector<128xf32> to vector<1x1x128xf32>
    %78 = vector.broadcast %77 : vector<1x1x128xf32> to vector<8x16x128xf32>
    %79 = arith.mulf %74, %78 : vector<8x16x128xf32>
    %80 = arith.addf %73, %79 : vector<8x16x128xf32>
    %81 = vector.extract_strided_slice %31 {offsets = [1, 0, 0], sizes = [8, 16, 128], strides = [1, 1, 1]} : vector<10x16x128xf32> to vector<8x16x128xf32>
    %82 = vector.extract_strided_slice %33 {offsets = [1, 0, 0], sizes = [1, 1, 128], strides = [1, 1, 1]} : vector<3x3x128xf32> to vector<1x1x128xf32>
    %83 = vector.shape_cast %82 : vector<1x1x128xf32> to vector<128xf32>
    %84 = vector.shape_cast %83 : vector<128xf32> to vector<1x1x128xf32>
    %85 = vector.broadcast %38 : vector<1x16x1xf32> to vector<1x16x128xf32>
    %86 = vector.broadcast %84 : vector<1x1x128xf32> to vector<1x16x128xf32>
    %87 = arith.mulf %85, %86 : vector<1x16x128xf32>
    %88 = vector.broadcast %87 : vector<1x16x128xf32> to vector<8x16x128xf32>
    %89 = arith.mulf %81, %88 : vector<8x16x128xf32>
    %90 = arith.addf %80, %89 : vector<8x16x128xf32>
    %91 = vector.extract_strided_slice %32 {offsets = [1, 0, 0], sizes = [8, 16, 128], strides = [1, 1, 1]} : vector<10x16x128xf32> to vector<8x16x128xf32>
    %92 = vector.extract_strided_slice %33 {offsets = [1, 2, 0], sizes = [1, 1, 128], strides = [1, 1, 1]} : vector<3x3x128xf32> to vector<1x1x128xf32>
    %93 = vector.shape_cast %92 : vector<1x1x128xf32> to vector<128xf32>
    %94 = vector.shape_cast %93 : vector<128xf32> to vector<1x1x128xf32>
    %95 = vector.broadcast %42 : vector<1x16x1xf32> to vector<1x16x128xf32>
    %96 = vector.broadcast %94 : vector<1x1x128xf32> to vector<1x16x128xf32>
    %97 = arith.mulf %95, %96 : vector<1x16x128xf32>
    %98 = vector.broadcast %97 : vector<1x16x128xf32> to vector<8x16x128xf32>
    %99 = arith.mulf %91, %98 : vector<8x16x128xf32>
    %100 = arith.addf %90, %99 : vector<8x16x128xf32>
    %101 = vector.extract_strided_slice %30 {offsets = [2, 0, 0], sizes = [8, 16, 128], strides = [1, 1, 1]} : vector<10x16x128xf32> to vector<8x16x128xf32>
    %102 = vector.extract_strided_slice %33 {offsets = [2, 1, 0], sizes = [1, 1, 128], strides = [1, 1, 1]} : vector<3x3x128xf32> to vector<1x1x128xf32>
    %103 = vector.shape_cast %102 : vector<1x1x128xf32> to vector<128xf32>
    %104 = vector.shape_cast %103 : vector<128xf32> to vector<1x1x128xf32>
    %105 = vector.broadcast %104 : vector<1x1x128xf32> to vector<8x16x128xf32>
    %106 = arith.mulf %101, %105 : vector<8x16x128xf32>
    %107 = arith.addf %100, %106 : vector<8x16x128xf32>
    %108 = vector.extract_strided_slice %31 {offsets = [2, 0, 0], sizes = [8, 16, 128], strides = [1, 1, 1]} : vector<10x16x128xf32> to vector<8x16x128xf32>
    %109 = vector.extract_strided_slice %33 {offsets = [2, 0, 0], sizes = [1, 1, 128], strides = [1, 1, 1]} : vector<3x3x128xf32> to vector<1x1x128xf32>
    %110 = vector.shape_cast %109 : vector<1x1x128xf32> to vector<128xf32>
    %111 = vector.shape_cast %110 : vector<128xf32> to vector<1x1x128xf32>
    %112 = vector.broadcast %38 : vector<1x16x1xf32> to vector<1x16x128xf32>
    %113 = vector.broadcast %111 : vector<1x1x128xf32> to vector<1x16x128xf32>
    %114 = arith.mulf %112, %113 : vector<1x16x128xf32>
    %115 = vector.broadcast %114 : vector<1x16x128xf32> to vector<8x16x128xf32>
    %116 = arith.mulf %108, %115 : vector<8x16x128xf32>
    %117 = arith.addf %107, %116 : vector<8x16x128xf32>
    %118 = vector.extract_strided_slice %32 {offsets = [2, 0, 0], sizes = [8, 16, 128], strides = [1, 1, 1]} : vector<10x16x128xf32> to vector<8x16x128xf32>
    %119 = vector.extract_strided_slice %33 {offsets = [2, 2, 0], sizes = [1, 1, 128], strides = [1, 1, 1]} : vector<3x3x128xf32> to vector<1x1x128xf32>
    %120 = vector.shape_cast %119 : vector<1x1x128xf32> to vector<128xf32>
    %121 = vector.shape_cast %120 : vector<128xf32> to vector<1x1x128xf32>
    %122 = vector.broadcast %42 : vector<1x16x1xf32> to vector<1x16x128xf32>
    %123 = vector.broadcast %121 : vector<1x1x128xf32> to vector<1x16x128xf32>
    %124 = arith.mulf %122, %123 : vector<1x16x128xf32>
    %125 = vector.broadcast %124 : vector<1x16x128xf32> to vector<8x16x128xf32>
    %126 = arith.mulf %118, %125 : vector<8x16x128xf32>
    %127 = arith.addf %117, %126 : vector<8x16x128xf32>
    %128 = arith.mulf %127, %127 : vector<8x16x128xf32>
    %129 = arith.mulf %127, %128 : vector<8x16x128xf32>
    %cst_25 = arith.constant 4.471500e-02 : f32
    %130 = vector.broadcast %cst_25 : f32 to vector<8x16x128xf32>
    %131 = arith.mulf %130, %129 : vector<8x16x128xf32>
    %132 = arith.addf %127, %131 : vector<8x16x128xf32>
    %cst_26 = arith.constant 0.797884583 : f32
    %133 = vector.broadcast %cst_26 : f32 to vector<8x16x128xf32>
    %134 = arith.mulf %133, %132 : vector<8x16x128xf32>
    %135 = math.tanh %134 : vector<8x16x128xf32>
    %cst_27 = arith.constant 1.000000e+00 : f32
    %136 = vector.broadcast %cst_27 : f32 to vector<8x16x128xf32>
    %137 = arith.addf %136, %135 : vector<8x16x128xf32>
    %cst_28 = arith.constant 5.000000e-01 : f32
    %138 = vector.broadcast %cst_28 : f32 to vector<8x16x128xf32>
    %139 = arith.mulf %138, %137 : vector<8x16x128xf32>
    %140 = arith.mulf %127, %139 : vector<8x16x128xf32>
    %141 = arith.truncf %140 : vector<8x16x128xf32> to vector<8x16x128xbf16>
    %142 = vector.shape_cast %141 : vector<8x16x128xbf16> to vector<128x128xbf16>
    %c0_29 = arith.constant 0 : index
    %c0_30 = arith.constant 0 : index
    %143 = vector.load %arg9[%c0_29, %c0_30] : memref<128x128xbf16, #tpu.memory_space<vmem>>, vector<128x128xbf16>
    %cst_31 = arith.constant dense<0.000000e+00> : vector<128x128xf32>
    %144 = tpu.matmul %142, %143, %cst_31 {dimension_numbers = #tpu.dot_dimension_numbers<[1], [0], [0], [1], [0, 0, 1, 1], [], []>} : vector<128x128xbf16>, vector<128x128xbf16>, vector<128x128xf32> -> vector<128x128xf32>
    %c0_32 = arith.constant 0 : index
    %c0_33 = arith.constant 0 : index
    %145 = vector.load %arg10[%c0_32, %c0_33] : memref<1x128xf32, #tpu.memory_space<vmem>>, vector<1x128xf32>
    %146 = vector.broadcast %145 : vector<1x128xf32> to vector<128x128xf32>
    %147 = arith.addf %144, %146 : vector<128x128xf32>
    %148 = vector.shape_cast %147 : vector<128x128xf32> to vector<8x16x128xf32>
    %149 = arith.truncf %148 : vector<8x16x128xf32> to vector<8x16x128xbf16>
    %c0_34 = arith.constant 0 : index
    %c0_35 = arith.constant 0 : index
    %c0_36 = arith.constant 0 : index
    %c0_37 = arith.constant 0 : index
    %150 = vector.load %arg11[%c0_34, %c0_35, %c0_36, %c0_37] : memref<1x8x16x128xbf16, #tpu.memory_space<vmem>>, vector<1x8x16x128xbf16>
    %151 = vector.shape_cast %150 : vector<1x8x16x128xbf16> to vector<8x16x128xbf16>
    %152 = vector.shape_cast %149 : vector<8x16x128xbf16> to vector<1x8x16x128xbf16>
    tpu.vector_store %arg11[%c0_34, %c0_35, %c0_36, %c0_37], %152 {strides = array<i32>} : memref<1x8x16x128xbf16, #tpu.memory_space<vmem>>, vector<1x8x16x128xbf16>,
    return
  }
  func.func @transform_0(%arg0: i32, %arg1: i32) -> (i32, i32, i32, i32) {
    %c0_i32 = arith.constant 0 : i32
    %c0_i32_0 = arith.constant 0 : i32
    %c0_i32_1 = arith.constant 0 : i32
    return %arg0, %arg1, %c0_i32, %c0_i32_0 : i32, i32, i32, i32
  }
  func.func @transform_1(%arg0: i32, %arg1: i32) -> (i32, i32, i32, i32) {
    %c8_i32 = arith.constant 8 : i32
    %0 = arith.muli %arg1, %c8_i32 : i32
    %c1_i32 = arith.constant 1 : i32
    %1 = arith.subi %0, %c1_i32 : i32
    %c0_i32 = arith.constant 0 : i32
    %2 = arith.maxsi %1, %c0_i32 : i32
    %c0_i32_0 = arith.constant 0 : i32
    %c0_i32_1 = arith.constant 0 : i32
    %c0_i32_2 = arith.constant 0 : i32
    return %arg0, %2, %c0_i32_0, %c0_i32_1 : i32, i32, i32, i32
  }
  func.func @transform_2(%arg0: i32, %arg1: i32) -> (i32, i32, i32, i32) {
    %c1_i32 = arith.constant 1 : i32
    %0 = arith.addi %arg1, %c1_i32 : i32
    %c8_i32 = arith.constant 8 : i32
    %1 = arith.muli %0, %c8_i32 : i32
    %c15_i32 = arith.constant 15 : i32
    %2 = arith.minsi %1, %c15_i32 : i32
    %c0_i32 = arith.constant 0 : i32
    %c0_i32_0 = arith.constant 0 : i32
    %c0_i32_1 = arith.constant 0 : i32
    return %arg0, %2, %c0_i32, %c0_i32_0 : i32, i32, i32, i32
  }
  func.func @transform_3(%arg0: i32, %arg1: i32) -> (i32, i32) {
    %c0_i32 = arith.constant 0 : i32
    %c0_i32_0 = arith.constant 0 : i32
    %c0_i32_1 = arith.constant 0 : i32
    return %c0_i32, %c0_i32_0 : i32, i32
  }
  func.func @transform_4(%arg0: i32, %arg1: i32) -> (i32, i32) {
    %c0_i32 = arith.constant 0 : i32
    %c0_i32_0 = arith.constant 0 : i32
    %c0_i32_1 = arith.constant 0 : i32
    return %c0_i32, %c0_i32_0 : i32, i32
  }
  func.func @transform_5(%arg0: i32, %arg1: i32) -> (i32, i32, i32) {
    %c0_i32 = arith.constant 0 : i32
    %c0_i32_0 = arith.constant 0 : i32
    %c0_i32_1 = arith.constant 0 : i32
    %c0_i32_2 = arith.constant 0 : i32
    return %c0_i32, %c0_i32_0, %c0_i32_1 : i32, i32, i32
  }
  func.func @transform_6(%arg0: i32, %arg1: i32) -> (i32, i32) {
    %c0_i32 = arith.constant 0 : i32
    %c0_i32_0 = arith.constant 0 : i32
    %c0_i32_1 = arith.constant 0 : i32
    return %c0_i32, %c0_i32_0 : i32, i32
  }
  func.func @transform_7(%arg0: i32, %arg1: i32) -> (i32, i32) {
    %c0_i32 = arith.constant 0 : i32
    %c0_i32_0 = arith.constant 0 : i32
    %c0_i32_1 = arith.constant 0 : i32
    return %c0_i32, %c0_i32_0 : i32, i32
  }
  func.func @transform_8(%arg0: i32, %arg1: i32) -> (i32, i32) {
    %c0_i32 = arith.constant 0 : i32
    %c0_i32_0 = arith.constant 0 : i32
    %c0_i32_1 = arith.constant 0 : i32
    return %c0_i32, %c0_i32_0 : i32, i32
  }
  func.func @transform_9(%arg0: i32, %arg1: i32) -> (i32, i32, i32, i32) {
    %c0_i32 = arith.constant 0 : i32
    %c0_i32_0 = arith.constant 0 : i32
    %c0_i32_1 = arith.constant 0 : i32
    return %arg0, %arg1, %c0_i32, %c0_i32_0 : i32, i32, i32, i32
  }
}

module attributes {stable_mosaic.version = 11 : i64} {
  func.func @mlp2_kernel(%arg0: i32, %arg1: i32, %arg2: memref<1x8x16x128xbf16, #tpu.memory_space<vmem>>, %arg3: memref<1x1x16x128xbf16, #tpu.memory_space<vmem>>, %arg4: memref<1x1x16x128xbf16, #tpu.memory_space<vmem>>, %arg5: memref<128x128xbf16, #tpu.memory_space<vmem>>, %arg6: memref<1x128xf32, #tpu.memory_space<vmem>>, %arg7: memref<3x3x128xf32, #tpu.memory_space<vmem>>, %arg8: memref<1x128xf32, #tpu.memory_space<vmem>>, %arg9: memref<128x128xbf16, #tpu.memory_space<vmem>>, %arg10: memref<1x128xf32, #tpu.memory_space<vmem>>, %arg11: memref<1x8x16x128xbf16, #tpu.memory_space<vmem>>) attributes {dimension_semantics = [#tpu.dimension_semantics<parallel>, #tpu.dimension_semantics<parallel>], iteration_bounds = array<i64: 2, 2>, scalar_prefetch = 0 : i64, scratch_operands = 0 : i64, tpu.core_type = #tpu.core_type<tc>, window_params = [{transform_indices = @transform_0, window_bounds = array<i64: 1, 8, 16, 128>}, {transform_indices = @transform_1, window_bounds = array<i64: 1, 1, 16, 128>}, {transform_indices = @transform_2, window_bounds = array<i64: 1, 1, 16, 128>}, {pipeline_mode = #tpu.pipeline_mode<synchronous>, transform_indices = @transform_3, window_bounds = array<i64: 128, 128>}, {pipeline_mode = #tpu.pipeline_mode<synchronous>, transform_indices = @transform_4, window_bounds = array<i64: 1, 128>}, {pipeline_mode = #tpu.pipeline_mode<synchronous>, transform_indices = @transform_5, window_bounds = array<i64: 3, 3, 128>}, {pipeline_mode = #tpu.pipeline_mode<synchronous>, transform_indices = @transform_6, window_bounds = array<i64: 1, 128>}, {pipeline_mode = #tpu.pipeline_mode<synchronous>, transform_indices = @transform_7, window_bounds = array<i64: 128, 128>}, {pipeline_mode = #tpu.pipeline_mode<synchronous>, transform_indices = @transform_8, window_bounds = array<i64: 1, 128>}, {transform_indices = @transform_9, window_bounds = array<i64: 1, 8, 16, 128>}]} {
    %c0 = arith.constant 0 : index
    %c0_0 = arith.constant 0 : index
    %c0_1 = arith.constant 0 : index
    %c0_2 = arith.constant 0 : index
    %0 = vector.load %arg3[%c0, %c0_0, %c0_1, %c0_2] : memref<1x1x16x128xbf16, #tpu.memory_space<vmem>>, vector<1x1x16x128xbf16>
    %1 = vector.shape_cast %0 : vector<1x1x16x128xbf16> to vector<1x16x128xbf16>
    %c0_3 = arith.constant 0 : index
    %c0_4 = arith.constant 0 : index
    %c0_5 = arith.constant 0 : index
    %c0_6 = arith.constant 0 : index
    %2 = vector.load %arg2[%c0_3, %c0_4, %c0_5, %c0_6] : memref<1x8x16x128xbf16, #tpu.memory_space<vmem>>, vector<1x8x16x128xbf16>
    %3 = vector.shape_cast %2 : vector<1x8x16x128xbf16> to vector<8x16x128xbf16>
    %c0_7 = arith.constant 0 : index
    %c0_8 = arith.constant 0 : index
    %c0_9 = arith.constant 0 : index
    %c0_10 = arith.constant 0 : index
    %4 = vector.load %arg4[%c0_7, %c0_8, %c0_9, %c0_10] : memref<1x1x16x128xbf16, #tpu.memory_space<vmem>>, vector<1x1x16x128xbf16>
    %5 = vector.shape_cast %4 : vector<1x1x16x128xbf16> to vector<1x16x128xbf16>
    %6 = tpu.concatenate %1, %3, %5 in 0 : vector<1x16x128xbf16>, vector<8x16x128xbf16>, vector<1x16x128xbf16> -> vector<10x16x128xbf16>
    %7 = vector.shape_cast %6 : vector<10x16x128xbf16> to vector<160x128xbf16>
    %c0_11 = arith.constant 0 : index
    %c0_12 = arith.constant 0 : index
    %8 = vector.load %arg5[%c0_11, %c0_12] : memref<128x128xbf16, #tpu.memory_space<vmem>>, vector<128x128xbf16>
    %cst = arith.constant dense<0.000000e+00> : vector<160x128xf32>
    %9 = tpu.matmul %7, %8, %cst {dimension_numbers = #tpu.dot_dimension_numbers<[1], [0], [0], [1], [0, 0, 1, 1], [], []>} : vector<160x128xbf16>, vector<128x128xbf16>, vector<160x128xf32> -> vector<160x128xf32>
    %c0_13 = arith.constant 0 : index
    %c0_14 = arith.constant 0 : index
    %10 = vector.load %arg6[%c0_13, %c0_14] : memref<1x128xf32, #tpu.memory_space<vmem>>, vector<1x128xf32>
    %11 = vector.broadcast %10 : vector<1x128xf32> to vector<160x128xf32>
    %12 = arith.addf %9, %11 : vector<160x128xf32>
    %13 = vector.shape_cast %12 : vector<160x128xf32> to vector<10x16x128xf32>
    %14 = tpu.iota {dimensions = array<i32: 0>} : vector<10x1x1xi32>
    %c0_i32 = arith.constant 0 : i32
    %15 = vector.broadcast %c0_i32 : i32 to vector<10x1x1xi32>
    %16 = arith.cmpi eq, %14, %15 : vector<10x1x1xi32>
    %c0_i32_15 = arith.constant 0 : i32
    %17 = arith.cmpi eq, %arg1, %c0_i32_15 : i32
    %18 = vector.broadcast %17 : i1 to vector<10x1x1xi1>
    %19 = arith.andi %16, %18 : vector<10x1x1xi1>
    %c9_i32 = arith.constant 9 : i32
    %20 = vector.broadcast %c9_i32 : i32 to vector<10x1x1xi32>
    %21 = arith.cmpi eq, %14, %20 : vector<10x1x1xi32>
    %c1_i32 = arith.constant 1 : i32
    %22 = arith.cmpi eq, %arg1, %c1_i32 : i32
    %23 = vector.broadcast %22 : i1 to vector<10x1x1xi1>
    %24 = arith.andi %21, %23 : vector<10x1x1xi1>
    %25 = arith.ori %19, %24 : vector<10x1x1xi1>
    %cst_16 = arith.constant dense<true> : vector<10x1x1xi1>
    %26 = arith.xori %25, %cst_16 : vector<10x1x1xi1>
    %27 = arith.extui %26 : vector<10x1x1xi1> to vector<10x1x1xi32>
    %28 = arith.sitofp %27 : vector<10x1x1xi32> to vector<10x1x1xf32>
    %29 = vector.broadcast %28 : vector<10x1x1xf32> to vector<10x16x128xf32>
    %30 = arith.mulf %13, %29 : vector<10x16x128xf32>
    %c1_i32_17 = arith.constant 1 : i32
    %31 = tpu.dynamic_rotate %30 by %c1_i32_17 dim 1 : vector<10x16x128xf32>, i32 -> vector<10x16x128xf32>
    %c15_i32 = arith.constant 15 : i32
    %32 = tpu.dynamic_rotate %30 by %c15_i32 dim 1 : vector<10x16x128xf32>, i32 -> vector<10x16x128xf32>
    %c0_18 = arith.constant 0 : index
    %c0_19 = arith.constant 0 : index
    %c0_20 = arith.constant 0 : index
    %33 = vector.load %arg7[%c0_18, %c0_19, %c0_20] : memref<3x3x128xf32, #tpu.memory_space<vmem>>, vector<3x3x128xf32>
    %34 = tpu.iota {dimensions = array<i32: 1>} : vector<1x16x1xi32>
    %c0_i32_21 = arith.constant 0 : i32
    %35 = vector.broadcast %c0_i32_21 : i32 to vector<1x16x1xi32>
    %36 = arith.cmpi sgt, %34, %35 : vector<1x16x1xi32>
    %37 = arith.extui %36 : vector<1x16x1xi1> to vector<1x16x1xi32>
    %38 = arith.sitofp %37 : vector<1x16x1xi32> to vector<1x16x1xf32>
    %c15_i32_22 = arith.constant 15 : i32
    %39 = vector.broadcast %c15_i32_22 : i32 to vector<1x16x1xi32>
    %40 = arith.cmpi slt, %34, %39 : vector<1x16x1xi32>
    %41 = arith.extui %40 : vector<1x16x1xi1> to vector<1x16x1xi32>
    %42 = arith.sitofp %41 : vector<1x16x1xi32> to vector<1x16x1xf32>
    %c0_23 = arith.constant 0 : index
    %c0_24 = arith.constant 0 : index
    %43 = vector.load %arg8[%c0_23, %c0_24] : memref<1x128xf32, #tpu.memory_space<vmem>>, vector<1x128xf32>
    %44 = vector.shape_cast %43 : vector<1x128xf32> to vector<1x1x128xf32>
    %45 = vector.shape_cast %44 : vector<1x1x128xf32> to vector<1x1x128xf32>
    %46 = vector.broadcast %45 : vector<1x1x128xf32> to vector<8x16x128xf32>
    %47 = vector.extract_strided_slice %30 {offsets = [0, 0, 0], sizes = [8, 16, 128], strides = [1, 1, 1]} : vector<10x16x128xf32> to vector<8x16x128xf32>
    %48 = vector.extract_strided_slice %33 {offsets = [0, 1, 0], sizes = [1, 1, 128], strides = [1, 1, 1]} : vector<3x3x128xf32> to vector<1x1x128xf32>
    %49 = vector.shape_cast %48 : vector<1x1x128xf32> to vector<128xf32>
    %50 = vector.shape_cast %49 : vector<128xf32> to vector<1x1x128xf32>
    %51 = vector.broadcast %50 : vector<1x1x128xf32> to vector<8x16x128xf32>
    %52 = arith.mulf %47, %51 : vector<8x16x128xf32>
    %53 = arith.addf %46, %52 : vector<8x16x128xf32>
    %54 = vector.extract_strided_slice %31 {offsets = [0, 0, 0], sizes = [8, 16, 128], strides = [1, 1, 1]} : vector<10x16x128xf32> to vector<8x16x128xf32>
    %55 = vector.extract_strided_slice %33 {offsets = [0, 0, 0], sizes = [1, 1, 128], strides = [1, 1, 1]} : vector<3x3x128xf32> to vector<1x1x128xf32>
    %56 = vector.shape_cast %55 : vector<1x1x128xf32> to vector<128xf32>
    %57 = vector.shape_cast %56 : vector<128xf32> to vector<1x1x128xf32>
    %58 = vector.broadcast %38 : vector<1x16x1xf32> to vector<1x16x128xf32>
    %59 = vector.broadcast %57 : vector<1x1x128xf32> to vector<1x16x128xf32>
    %60 = arith.mulf %58, %59 : vector<1x16x128xf32>
    %61 = vector.broadcast %60 : vector<1x16x128xf32> to vector<8x16x128xf32>
    %62 = arith.mulf %54, %61 : vector<8x16x128xf32>
    %63 = arith.addf %53, %62 : vector<8x16x128xf32>
    %64 = vector.extract_strided_slice %32 {offsets = [0, 0, 0], sizes = [8, 16, 128], strides = [1, 1, 1]} : vector<10x16x128xf32> to vector<8x16x128xf32>
    %65 = vector.extract_strided_slice %33 {offsets = [0, 2, 0], sizes = [1, 1, 128], strides = [1, 1, 1]} : vector<3x3x128xf32> to vector<1x1x128xf32>
    %66 = vector.shape_cast %65 : vector<1x1x128xf32> to vector<128xf32>
    %67 = vector.shape_cast %66 : vector<128xf32> to vector<1x1x128xf32>
    %68 = vector.broadcast %42 : vector<1x16x1xf32> to vector<1x16x128xf32>
    %69 = vector.broadcast %67 : vector<1x1x128xf32> to vector<1x16x128xf32>
    %70 = arith.mulf %68, %69 : vector<1x16x128xf32>
    %71 = vector.broadcast %70 : vector<1x16x128xf32> to vector<8x16x128xf32>
    %72 = arith.mulf %64, %71 : vector<8x16x128xf32>
    %73 = arith.addf %63, %72 : vector<8x16x128xf32>
    %74 = vector.extract_strided_slice %30 {offsets = [1, 0, 0], sizes = [8, 16, 128], strides = [1, 1, 1]} : vector<10x16x128xf32> to vector<8x16x128xf32>
    %75 = vector.extract_strided_slice %33 {offsets = [1, 1, 0], sizes = [1, 1, 128], strides = [1, 1, 1]} : vector<3x3x128xf32> to vector<1x1x128xf32>
    %76 = vector.shape_cast %75 : vector<1x1x128xf32> to vector<128xf32>
    %77 = vector.shape_cast %76 : vector<128xf32> to vector<1x1x128xf32>
    %78 = vector.broadcast %77 : vector<1x1x128xf32> to vector<8x16x128xf32>
    %79 = arith.mulf %74, %78 : vector<8x16x128xf32>
    %80 = arith.addf %73, %79 : vector<8x16x128xf32>
    %81 = vector.extract_strided_slice %31 {offsets = [1, 0, 0], sizes = [8, 16, 128], strides = [1, 1, 1]} : vector<10x16x128xf32> to vector<8x16x128xf32>
    %82 = vector.extract_strided_slice %33 {offsets = [1, 0, 0], sizes = [1, 1, 128], strides = [1, 1, 1]} : vector<3x3x128xf32> to vector<1x1x128xf32>
    %83 = vector.shape_cast %82 : vector<1x1x128xf32> to vector<128xf32>
    %84 = vector.shape_cast %83 : vector<128xf32> to vector<1x1x128xf32>
    %85 = vector.broadcast %38 : vector<1x16x1xf32> to vector<1x16x128xf32>
    %86 = vector.broadcast %84 : vector<1x1x128xf32> to vector<1x16x128xf32>
    %87 = arith.mulf %85, %86 : vector<1x16x128xf32>
    %88 = vector.broadcast %87 : vector<1x16x128xf32> to vector<8x16x128xf32>
    %89 = arith.mulf %81, %88 : vector<8x16x128xf32>
    %90 = arith.addf %80, %89 : vector<8x16x128xf32>
    %91 = vector.extract_strided_slice %32 {offsets = [1, 0, 0], sizes = [8, 16, 128], strides = [1, 1, 1]} : vector<10x16x128xf32> to vector<8x16x128xf32>
    %92 = vector.extract_strided_slice %33 {offsets = [1, 2, 0], sizes = [1, 1, 128], strides = [1, 1, 1]} : vector<3x3x128xf32> to vector<1x1x128xf32>
    %93 = vector.shape_cast %92 : vector<1x1x128xf32> to vector<128xf32>
    %94 = vector.shape_cast %93 : vector<128xf32> to vector<1x1x128xf32>
    %95 = vector.broadcast %42 : vector<1x16x1xf32> to vector<1x16x128xf32>
    %96 = vector.broadcast %94 : vector<1x1x128xf32> to vector<1x16x128xf32>
    %97 = arith.mulf %95, %96 : vector<1x16x128xf32>
    %98 = vector.broadcast %97 : vector<1x16x128xf32> to vector<8x16x128xf32>
    %99 = arith.mulf %91, %98 : vector<8x16x128xf32>
    %100 = arith.addf %90, %99 : vector<8x16x128xf32>
    %101 = vector.extract_strided_slice %30 {offsets = [2, 0, 0], sizes = [8, 16, 128], strides = [1, 1, 1]} : vector<10x16x128xf32> to vector<8x16x128xf32>
    %102 = vector.extract_strided_slice %33 {offsets = [2, 1, 0], sizes = [1, 1, 128], strides = [1, 1, 1]} : vector<3x3x128xf32> to vector<1x1x128xf32>
    %103 = vector.shape_cast %102 : vector<1x1x128xf32> to vector<128xf32>
    %104 = vector.shape_cast %103 : vector<128xf32> to vector<1x1x128xf32>
    %105 = vector.broadcast %104 : vector<1x1x128xf32> to vector<8x16x128xf32>
    %106 = arith.mulf %101, %105 : vector<8x16x128xf32>
    %107 = arith.addf %100, %106 : vector<8x16x128xf32>
    %108 = vector.extract_strided_slice %31 {offsets = [2, 0, 0], sizes = [8, 16, 128], strides = [1, 1, 1]} : vector<10x16x128xf32> to vector<8x16x128xf32>
    %109 = vector.extract_strided_slice %33 {offsets = [2, 0, 0], sizes = [1, 1, 128], strides = [1, 1, 1]} : vector<3x3x128xf32> to vector<1x1x128xf32>
    %110 = vector.shape_cast %109 : vector<1x1x128xf32> to vector<128xf32>
    %111 = vector.shape_cast %110 : vector<128xf32> to vector<1x1x128xf32>
    %112 = vector.broadcast %38 : vector<1x16x1xf32> to vector<1x16x128xf32>
    %113 = vector.broadcast %111 : vector<1x1x128xf32> to vector<1x16x128xf32>
    %114 = arith.mulf %112, %113 : vector<1x16x128xf32>
    %115 = vector.broadcast %114 : vector<1x16x128xf32> to vector<8x16x128xf32>
    %116 = arith.mulf %108, %115 : vector<8x16x128xf32>
    %117 = arith.addf %107, %116 : vector<8x16x128xf32>
    %118 = vector.extract_strided_slice %32 {offsets = [2, 0, 0], sizes = [8, 16, 128], strides = [1, 1, 1]} : vector<10x16x128xf32> to vector<8x16x128xf32>
    %119 = vector.extract_strided_slice %33 {offsets = [2, 2, 0], sizes = [1, 1, 128], strides = [1, 1, 1]} : vector<3x3x128xf32> to vector<1x1x128xf32>
    %120 = vector.shape_cast %119 : vector<1x1x128xf32> to vector<128xf32>
    %121 = vector.shape_cast %120 : vector<128xf32> to vector<1x1x128xf32>
    %122 = vector.broadcast %42 : vector<1x16x1xf32> to vector<1x16x128xf32>
    %123 = vector.broadcast %121 : vector<1x1x128xf32> to vector<1x16x128xf32>
    %124 = arith.mulf %122, %123 : vector<1x16x128xf32>
    %125 = vector.broadcast %124 : vector<1x16x128xf32> to vector<8x16x128xf32>
    %126 = arith.mulf %118, %125 : vector<8x16x128xf32>
    %127 = arith.addf %117, %126 : vector<8x16x128xf32>
    %128 = arith.mulf %127, %127 : vector<8x16x128xf32>
    %129 = arith.mulf %127, %128 : vector<8x16x128xf32>
    %cst_25 = arith.constant 4.471500e-02 : f32
    %130 = vector.broadcast %cst_25 : f32 to vector<8x16x128xf32>
    %131 = arith.mulf %130, %129 : vector<8x16x128xf32>
    %132 = arith.addf %127, %131 : vector<8x16x128xf32>
    %cst_26 = arith.constant 0.797884583 : f32
    %133 = vector.broadcast %cst_26 : f32 to vector<8x16x128xf32>
    %134 = arith.mulf %133, %132 : vector<8x16x128xf32>
    %135 = math.tanh %134 : vector<8x16x128xf32>
    %cst_27 = arith.constant 1.000000e+00 : f32
    %136 = vector.broadcast %cst_27 : f32 to vector<8x16x128xf32>
    %137 = arith.addf %136, %135 : vector<8x16x128xf32>
    %cst_28 = arith.constant 5.000000e-01 : f32
    %138 = vector.broadcast %cst_28 : f32 to vector<8x16x128xf32>
    %139 = arith.mulf %138, %137 : vector<8x16x128xf32>
    %140 = arith.mulf %127, %139 : vector<8x16x128xf32>
    %141 = arith.truncf %140 : vector<8x16x128xf32> to vector<8x16x128xbf16>
    %142 = vector.shape_cast %141 : vector<8x16x128xbf16> to vector<128x128xbf16>
    %c0_29 = arith.constant 0 : index
    %c0_30 = arith.constant 0 : index
    %143 = vector.load %arg9[%c0_29, %c0_30] : memref<128x128xbf16, #tpu.memory_space<vmem>>, vector<128x128xbf16>
    %cst_31 = arith.constant dense<0.000000e+00> : vector<128x128xf32>
    %144 = tpu.matmul %142, %143, %cst_31 {dimension_numbers = #tpu.dot_dimension_numbers<[1], [0], [0], [1], [0, 0, 1, 1], [], []>} : vector<128x128xbf16>, vector<128x128xbf16>, vector<128x128xf32> -> vector<128x128xf32>
    %c0_32 = arith.constant 0 : index
    %c0_33 = arith.constant 0 : index
    %145 = vector.load %arg10[%c0_32, %c0_33] : memref<1x128xf32, #tpu.memory_space<vmem>>, vector<1x128xf32>
    %146 = vector.broadcast %145 : vector<1x128xf32> to vector<128x128xf32>
    %147 = arith.addf %144, %146 : vector<128x128xf32>
    %148 = vector.shape_cast %147 : vector<128x128xf32> to vector<8x16x128xf32>
    %149 = arith.truncf %148 : vector<8x16x128xf32> to vector<8x16x128xbf16>
    %c0_34 = arith.constant 0 : index
    %c0_35 = arith.constant 0 : index
    %c0_36 = arith.constant 0 : index
    %c0_37 = arith.constant 0 : index
    %150 = vector.load %arg11[%c0_34, %c0_35, %c0_36, %c0_37] : memref<1x8x16x128xbf16, #tpu.memory_space<vmem>>, vector<1x8x16x128xbf16>
    %151 = vector.shape_cast %150 : vector<1x8x16x128xbf16> to vector<8x16x128xbf16>
    %152 = vector.shape_cast %149 : vector<8x16x128xbf16> to vector<1x8x16x128xbf16>
    tpu.vector_store %arg11[%c0_34, %c0_35, %c0_36, %c0_37], %152 {strides = array<i32>} : memref<1x8x16x128xbf16, #tpu.memory_space<vmem>>, vector<1x8x16x128xbf16>,
    return
  }
  func.func @transform_0(%arg0: i32, %arg1: i32) -> (i32, i32, i32, i32) {
    %c0_i32 = arith.constant 0 : i32
    %c0_i32_0 = arith.constant 0 : i32
    %c0_i32_1 = arith.constant 0 : i32
    return %arg0, %arg1, %c0_i32, %c0_i32_0 : i32, i32, i32, i32
  }
  func.func @transform_1(%arg0: i32, %arg1: i32) -> (i32, i32, i32, i32) {
    %c8_i32 = arith.constant 8 : i32
    %0 = arith.muli %arg1, %c8_i32 : i32
    %c1_i32 = arith.constant 1 : i32
    %1 = arith.subi %0, %c1_i32 : i32
    %c0_i32 = arith.constant 0 : i32
    %2 = arith.maxsi %1, %c0_i32 : i32
    %c0_i32_0 = arith.constant 0 : i32
    %c0_i32_1 = arith.constant 0 : i32
    %c0_i32_2 = arith.constant 0 : i32
    return %arg0, %2, %c0_i32_0, %c0_i32_1 : i32, i32, i32, i32
  }
  func.func @transform_2(%arg0: i32, %arg1: i32) -> (i32, i32, i32, i32) {
    %c1_i32 = arith.constant 1 : i32
    %0 = arith.addi %arg1, %c1_i32 : i32
    %c8_i32 = arith.constant 8 : i32
    %1 = arith.muli %0, %c8_i32 : i32
    %c15_i32 = arith.constant 15 : i32
    %2 = arith.minsi %1, %c15_i32 : i32
    %c0_i32 = arith.constant 0 : i32
    %c0_i32_0 = arith.constant 0 : i32
    %c0_i32_1 = arith.constant 0 : i32
    return %arg0, %2, %c0_i32, %c0_i32_0 : i32, i32, i32, i32
  }
  func.func @transform_3(%arg0: i32, %arg1: i32) -> (i32, i32) {
    %c0_i32 = arith.constant 0 : i32
    %c0_i32_0 = arith.constant 0 : i32
    %c0_i32_1 = arith.constant 0 : i32
    return %c0_i32, %c0_i32_0 : i32, i32
  }
  func.func @transform_4(%arg0: i32, %arg1: i32) -> (i32, i32) {
    %c0_i32 = arith.constant 0 : i32
    %c0_i32_0 = arith.constant 0 : i32
    %c0_i32_1 = arith.constant 0 : i32
    return %c0_i32, %c0_i32_0 : i32, i32
  }
  func.func @transform_5(%arg0: i32, %arg1: i32) -> (i32, i32, i32) {
    %c0_i32 = arith.constant 0 : i32
    %c0_i32_0 = arith.constant 0 : i32
    %c0_i32_1 = arith.constant 0 : i32
    %c0_i32_2 = arith.constant 0 : i32
    return %c0_i32, %c0_i32_0, %c0_i32_1 : i32, i32, i32
  }
  func.func @transform_6(%arg0: i32, %arg1: i32) -> (i32, i32) {
    %c0_i32 = arith.constant 0 : i32
    %c0_i32_0 = arith.constant 0 : i32
    %c0_i32_1 = arith.constant 0 : i32
    return %c0_i32, %c0_i32_0 : i32, i32
  }
  func.func @transform_7(%arg0: i32, %arg1: i32) -> (i32, i32) {
    %c0_i32 = arith.constant 0 : i32
    %c0_i32_0 = arith.constant 0 : i32
    %c0_i32_1 = arith.constant 0 : i32
    return %c0_i32, %c0_i32_0 : i32, i32
  }
  func.func @transform_8(%arg0: i32, %arg1: i32) -> (i32, i32) {
    %c0_i32 = arith.constant 0 : i32
    %c0_i32_0 = arith.constant 0 : i32
    %c0_i32_1 = arith.constant 0 : i32
    return %c0_i32, %c0_i32_0 : i32, i32
  }
  func.func @transform_9(%arg0: i32, %arg1: i32) -> (i32, i32, i32, i32) {
    %c0_i32 = arith.constant 0 : i32
    %c0_i32_0 = arith.constant 0 : i32
    %c0_i32_1 = arith.constant 0 : i32
    return %arg0, %arg1, %c0_i32, %c0_i32_0 : i32, i32, i32, i32
  }
}

</mosaic_0001>

<bundles_post_ra>
// kernel: _mlp2_impl.1
= control target key start
LH: loop header
LB: loop body
LE: loop exit
PB: predicated region body
PF: predicated region fallthrough
CT: control target
= control target key end

     0   :  { %s2066_s30 = smov 0   ;;  %s2068_s10 = smov 0   ;;  %s2982_s0 = inlined_call_operand.vmem [shape: bf16[2,16,16,128], index: 0, kind: input, shape index: {}, may-alias: {0,1,2}]   ;;  %s2983_s1 = inlined_call_operand.vmem [shape: bf16[2,16,16,128], index: 1, kind: input, shape index: {}, may-alias: {0,1,2}]   ;;  %s2984_s2 = inlined_call_operand.vmem [shape: bf16[2,16,16,128], index: 2, kind: input, shape index: {}, may-alias: {0,1,2}]   ;;  %s2985_s3 = inlined_call_operand.vmem [shape: bf16[128,128], index: 3, kind: input, shape index: {}]   ;;  %s2986_s4 = inlined_call_operand.vmem [shape: f32[1,128], index: 4, kind: input, shape index: {}]   ;;  %s2987_s5 = inlined_call_operand.vmem [shape: f32[3,3,128], index: 5, kind: input, shape index: {}]   ;;  %s2988_s6 = inlined_call_operand.vmem [shape: f32[1,128], index: 6, kind: input, shape index: {}]   ;;  %s2989_s7 = inlined_call_operand.vmem [shape: bf16[128,128], index: 7, kind: input, shape index: {}]   ;;  %s2990_s8 = inlined_call_operand.vmem [shape: f32[1,128], index: 8, kind: input, shape index: {}]   ;;  %s2991_s9 = inlined_call_operand.vmem [shape: bf16[2,16,16,128], index: 9, kind: output, shape index: {}]  }
   0x1   :  { %s2070_s11 = smov 0   ;;  %s2072_s12 = smov 0  }
   0x2   :  { %s2074_s13 = smov 0  }
   0x3 LB: > { %s28_s14 = sadd.s32 1, %s2004_s11  ;;  %s31_s15 = sadd.s32 1, %s2008_s12  ;;  %s2012_s13 = sphi %s2074_s13, %s19_s13   ;;  %s2008_s12 = sphi %s2072_s12, %s3059_s12   ;;  %s2004_s11 = sphi %s2070_s11, %s3058_s11   ;;  %s2000_s10 = sphi %s2068_s10, %s3057_s10   ;;  %s1996_s30 = sphi %s2066_s30, %s3056_s30  }
   0x4   : > { %p29_p0 = scmp.ge.s32.totalorder %s28_s14, 2  ;;  %p1664_p1 = scmp.ge.s32.totalorder %s2012_s13, 1 }
   0x5   : > { %p373_p2 = scmp.lt.s32.totalorder %s2012_s13, 5 }
   0x6   : > { %s3061_s14 = smov (%p29_p0, %s28_s14), 0  ;;  %s3063_s15 = smov (!%p29_p0, %s31_s15), %s2008_s12 }
   0x7   : > { %p374_p3 = pnand %p1664_p1, %p373_p2  ;;  %p33_p4 = scmp.ge.s32.totalorder %s3063_s15, 2 }
   0x9   : > { %s3065_s15 = smov (%p33_p4, %s3063_s15), 0  ;;  %377 = sbr.rel (%p374_p3) target bundleno = 492 (0x1ec), region = 56 }
   0xa   : > { %3003 = sst [smem:[#allocation2_spill]] %s3065_s15 }
   0xe   : > { %v1825_v0 = vld [vmem:[%s2985_s3 + $0x38] sm:$0xff]  ;;  %s1665_s18 = sshll.u32 %s1996_s30, 3  ;;  %p446_p5 = scmp.lt.s32.totalorder %s2000_s10, 1  ;;  %v1824_v1 = vld [vmem:[%s2985_s3 + $0x30] sm:$0xff]  ;;  %v1823_v2 = vld [vmem:[%s2985_s3 + $0x28] sm:$0xff]  ;;  %v763_v19 = vlaneseq  ;;  %vm2014_vm1 = vmmov 1  }
   0xf   : > { %649 = vmatpush.bf16.msra.mxu0 %v1825_v0  ;;  %1881 = vmatpush.bf16.msra.mxu2 %v1825_v0  ;;  %s1670_s21 = sadd.s32 4294967295, %s1665_s18  ;;  %s1807_s24 = sadd.s32 8, %s1665_s18  ;;  %v1822_v3 = vld [vmem:[%s2985_s3 + $0x20] sm:$0xff]  ;;  %v1821_v4 = vld [vmem:[%s2985_s3 + $0x18] sm:$0xff]  ;;  %v1820_v5 = vld [vmem:[%s2985_s3 + $0x10] sm:$0xff]  ;;  %v2992_v24 = vmov 0.0  }
  0x10   : > { %s3067_s10 = smov (!%p446_p5, %s2000_s10), 1  ;;  %p458_p6 = scmp.gt.s32.totalorder %s1670_s21, 0  ;;  %v1819_v6 = vld [vmem:[%s2985_s3 + $0x8] sm:$0xff]  ;;  %v1818_v7 = vld [vmem:[%s2985_s3] sm:$0xff]  ;;  %v2162_v21 = vshrl.u32 %v763_v19, 7 }
  0x11   : > { %p448_p7 = scmp.lt.s32.totalorder %s1665_s18, 15  ;;  %p2108_p8 = scmp.lt.s32.totalorder %s1807_s24, 15  ;;  %v2160_v20 = vld [vmem:[%s2986_s4] ss:$0 sm:$0xff]  ;;  %v828_v30 = vld [vmem:[%s2987_s5 + $0x4] sm:$0x7] }
  0x12   : > { %p1671_p9 = scmp.lt.s32.totalorder %s1670_s21, 15  ;;  %s3069_s21 = smov (!%p458_p6, %s1670_s21), 0  ;;  %v827_v26 = vld [vmem:[%s2987_s5] sm:$0x7]  ;;  %v830_v27 = vadd.s32 8, %v2162_v21  ;;  %vm831_vm3 = vcmp.gt.s32.totalorder %v2162_v21, 0 }
  0x13   : > { %650 = vmatpush.bf16.msra.mxu0 %v1824_v1  ;;  %1882 = vmatpush.bf16.msra.mxu2 %v1824_v1  ;;  %s3071_s24 = smov (!%p2108_p8, %s1807_s24), 15  ;;  %s3073_s18 = smov (!%p448_p7, %s1665_s18), 15  ;;  %v2172_v29 = vperm.slane %v827_v26, 1  ;;  %v829_v32 = vld [vmem:[%s2987_s5 + $0x8] sm:$0x7]  ;;  %v2180_v33 = vperm.slane %v827_v26, 0 }
  0x14   : > { %s3075_s24 = smov (!%p2108_p8, %s3071_s24), 15  ;;  %s3077_s21 = smov (!%p1671_p9, %s3069_s21), 15  ;;  %vm838_vm4 = vcmp.lt.s32.totalorder %v830_v27, 15  ;;  %v2182_v34 = vperm.slane %v828_v30, 0  ;;  %v1764_v36 = vsel %vm831_vm3, 1.0, %v2992_v24  ;;  %v2186_v37 = vperm.slane %v827_v26, 2 }
  0x15   : > { %s2122_s16 = sshll.u32 %s3067_s10, 5  ;;  %s2124_s17 = sshll.u32 %s3075_s24, 1  ;;  %v2188_v38 = vperm.slane %v828_v30, 2  ;;  %v2190_v39 = vperm.slane %v829_v32, 0  ;;  %v1765_v41 = vsel %vm838_vm4, 1.0, %v2992_v24  ;;  %v2199_v44 = vperm.slane %v829_v32, 2 }
  0x16   : > { %s1666_s20 = sshll.u32 %s3073_s18, 1  ;;  %s1676_s22 = sshll.u32 %s3077_s21, 1  ;;  %v2196_v42 = vld [vmem:[%s2988_s6] ss:$0 sm:$0xff]  ;;  %vm765_vm5 = vcmp.lt.s32.totalorder %v2162_v21, 1  ;;  %v2203_v46 = vperm.slane %v828_v30, 1  ;;  %v2210_v49 = vmul.f32 %v1764_v36, %v2180_v33  ;;  %v2213_v50 = vmul.f32 %v1764_v36, %v2182_v34 }
  0x17   : > { %651 = vmatpush.bf16.msra.mxu0 %v1823_v2  ;;  %1883 = vmatpush.bf16.msra.mxu2 %v1823_v2  ;;  %s2132_s26 = sadd.s32 %s2122_s16, %s1666_s20  ;;  %s466_s10 = sadd.s32 %s1676_s22, %s2122_s16  ;;  %v2205_v47 = vperm.slane %v829_v32, 1  ;;  %vm806_vm6 = vcmp.lt.s32.totalorder %v2162_v21, 7  ;;  %v2217_v52 = vmul.f32 %v1765_v41, %v2186_v37  ;;  %v2220_v53 = vmul.f32 %v1765_v41, %v2188_v38 }
  0x18   : > { %s1668_s28 = sshll.u32 %s2132_s26, 2  ;;  %s1678_s18 = sshll.u32 %s466_s10, 2  ;;  %v2223_v54 = vmul.f32 %v1764_v36, %v2190_v39  ;;  %v2227_v59 = vmul.f32 %v1765_v41, %v2199_v44 }
  0x19   : > { %s454_s25 = scalar_lea.vmem %s2982_s0, %s1668_s28  ;;  %s468_s15 = scalar_lea.vmem %s2983_s1, %s1678_s18 }
  0x1a   : > { %v1808_v8 = vld [vmem:[%s468_s15] sm:$0xff]  ;;  %v1812_v9 = vld [vmem:[%s454_s25 + $0x18] sm:$0xff]  ;;  %v1810_v12 = vld [vmem:[%s454_s25 + $0x8] sm:$0xff]  ;;  %s3005_s15 = sadd.s32 %s2124_s17, %s2122_s16  ;;  %p708_p10 = scmp.eq.s32.totalorder %s1996_s30, 0 }
  0x1b   : > { %652 = vmatpush.bf16.msra.mxu0 %v1822_v3  ;;  %1884 = vmatpush.bf16.msra.mxu2 %v1822_v3  ;;  %v1809_v10 = vld [vmem:[%s454_s25] sm:$0xff]  ;;  %v1814_v13 = vld [vmem:[%s454_s25 + $0x28] sm:$0xff]  ;;  %v1811_v14 = vld [vmem:[%s454_s25 + $0x10] sm:$0xff]  ;;  %s1685_s19 = sshll.u32 %s3005_s15, 2  ;;  %p712_p11 = scmp.eq.s32.totalorder %s1996_s30, 1 }
  0x1c   : > { %v1813_v11 = vld [vmem:[%s454_s25 + $0x20] sm:$0xff]  ;;  %v1815_v15 = vld [vmem:[%s454_s25 + $0x30] sm:$0xff]  ;;  %v1816_v16 = vld [vmem:[%s454_s25 + $0x38] sm:$0xff]  ;;  %s485_s24 = scalar_lea.vmem %s2984_s2, %s1685_s19  ;;  %s2957_s16 = scalar_lea.vmem %s2991_s9, %s1668_s28 }
  0x1d   : > { %v1817_v17 = vld [vmem:[%s485_s24] sm:$0xff]  ;;  %s709_s18 = scalar_select %p708_p10, 1, 0 }
  0x1e   : > { %s713_s24 = scalar_select %p712_p11, 1, 0 }
  0x1f   : > { %653 = vmatpush.bf16.msra.mxu0 %v1821_v4  ;;  %1885 = vmatpush.bf16.msra.mxu2 %v1821_v4  ;;  %v710_v18 = vstv %s709_s18 }
  0x20   : > { %vm711_vm0 = vcmp.eq.s32.totalorder %v710_v18, 1 }
  0x21   : > { %vm716_vm2 = vmxor %vm711_vm0, %vm2014_vm1 }
  0x22   : > { %v1762_v25 = vsel %vm716_vm2, 1.0, %v2992_v24 }
  0x23   : > { %654 = vmatpush.bf16.msra.mxu0 %v1820_v5  ;;  %1886 = vmatpush.bf16.msra.mxu2 %v1820_v5 }
  0x27   : > { %655 = vmatpush.bf16.msra.mxu0 %v1819_v6  ;;  %1887 = vmatpush.bf16.msra.mxu2 %v1819_v6 }
  0x2b   : > { %656 = vmatpush.bf16.msra.mxu0 %v1818_v7  ;;  %1888 = vmatpush.bf16.msra.mxu2 %v1818_v7 }
  0x2e   : > { %657 = vmatmul.bf16.vlgmr.msra.gmra.mxu0 %v1808_v8  ;;  %677 = vmatmul.bf16.vlgmr.msra.gmra.mxu2 %v1812_v9 }
  0x3e   : > { %662 = vmatmul.bf16.gmra.mxu0 %v1809_v10  ;;  %682 = vmatmul.bf16.gmra.mxu2 %v1813_v11 }
  0x4e   : > { %667 = vmatmul.bf16.gmra.mxu0 %v1810_v12  ;;  %687 = vmatmul.bf16.gmra.mxu2 %v1814_v13 }
  0x5e   : > { %672 = vmatmul.bf16.gmra.mxu0 %v1811_v14  ;;  %692 = vmatmul.bf16.gmra.mxu2 %v1815_v15 }
  0x6e   : > { %697 = vmatmul.bf16.gmra.mxu2 %v1816_v16 }
  0x7e   : > { %702 = vmatmul.bf16.gmra.mxu2 %v1817_v17 }
  0xab   : > { %v658_v22 = vpop.f32.mrf.mxu0 }
  0xac   : > { %v659_v23 = vadd.f32 %v2160_v20, %v658_v22 }
  0xae   : > { %v723_v28 = vmul.f32 %v1762_v25, %v659_v23 }
  0xb0   : > { %v848_v43 = vmul.f32 %v2172_v29, %v723_v28  ;;  %v743_v56 = vrot.slane %v723_v28, 7  ;;  %v786_v57 = vrot.slane %v723_v28, 1 }
  0xb1   : > { %v678_v31 = vpop.f32.mrf.mxu2 }
  0xb2   : > { %v679_v35 = vadd.f32 %v2160_v20, %v678_v31  ;;  %v864_v58 = vadd.f32 %v2196_v42, %v848_v43 }
  0xb3   : > { %v660_v40 = vpop.f32.mrf.mxu0 }
  0xb4   : > { %v856_v45 = vmul.f32 %v2172_v29, %v679_v35  ;;  %v661_v48 = vadd.f32 %v2160_v20, %v660_v40  ;;  %v747_v60 = vrot.slane %v679_v35, 7  ;;  %v790_v1 = vrot.slane %v679_v35, 1 }
  0xb5   : > { %v2231_v2 = vmul.f32 %v2203_v46, %v679_v35  ;;  %v2234_v3 = vmul.f32 %v2205_v47, %v679_v35 }
  0xb6   : > { %v872_v51 = vadd.f32 %v2196_v42, %v856_v45  ;;  %v724_v55 = vmul.f32 %v1762_v25, %v661_v48 }
  0xb7   : > { %3006 = vst [vmem:[#allocation3_spill] sm:$0xff] %v2231_v2 }
  0xb8   : > { %v753_v61 = vrot.slane %v724_v55, 7  ;;  %v796_v62 = vrot.slane %v724_v55, 1  ;;  %v849_v63 = vmul.f32 %v2172_v29, %v724_v55 }
  0xb9   : > { %v680_v0 = vpop.f32.mrf.mxu2 }
  0xba   : > { %v681_v4 = vadd.f32 %v2160_v20, %v680_v0  ;;  %v766_v5 = vsel %vm765_vm5, %v743_v56, %v753_v61  ;;  %v776_v6 = vsel %vm765_vm5, %v753_v61, %v743_v56  ;;  %v807_v7 = vsel %vm806_vm6, %v786_v57, %v796_v62 }
  0xbb   : > { %v817_v8 = vsel %vm806_vm6, %v796_v62, %v786_v57  ;;  %v663_v9 = vpop.f32.mrf.mxu0  ;;  %v865_v10 = vadd.f32 %v2196_v42, %v849_v63  ;;  %v883_v11 = vmul.f32 %v2210_v49, %v776_v6  ;;  %v884_v12 = vmul.f32 %v2180_v33, %v766_v5 }
  0xbc   : > { %v918_v13 = vmul.f32 %v2186_v37, %v807_v7  ;;  %v919_v14 = vmul.f32 %v2217_v52, %v817_v8  ;;  %v757_v15 = vrot.slane %v681_v4, 7  ;;  %v800_v16 = vrot.slane %v681_v4, 1 }
  0xbd   : > { %v857_v17 = vmul.f32 %v2172_v29, %v681_v4  ;;  %v900_v18 = vadd.f32 %v884_v12, %v865_v10  ;;  %v2252_v19 = vmul.f32 %v2203_v46, %v681_v4  ;;  %v2255_v22 = vmul.f32 %v2205_v47, %v681_v4 }
  0xbe   : > { %v664_v23 = vadd.f32 %v2160_v20, %v663_v9  ;;  %v2260_v25 = vsel %vm765_vm5, %v747_v60, %v757_v15  ;;  %v2264_v26 = vsel %vm765_vm5, %v757_v15, %v747_v60  ;;  %v2268_v27 = vsel %vm806_vm6, %v790_v1, %v800_v16 }
  0xbf   : > { %3007 = vst [vmem:[#allocation4_spill] sm:$0xff] %v2252_v19  ;;  %v2272_v28 = vsel %vm806_vm6, %v800_v16, %v790_v1  ;;  %v873_v30 = vadd.f32 %v2196_v42, %v857_v17  ;;  %v891_v31 = vmul.f32 %v2210_v49, %v2264_v26  ;;  %v892_v32 = vmul.f32 %v2180_v33, %v2260_v25  ;;  %v1833_v17 = vld [vmem:[%s2989_s7 + $0x38] sm:$0xff] }
  0xc0   : > { %3008 = vst [vmem:[#allocation5_spill] sm:$0xff] %v2268_v27  ;;  %v2281_v35 = vmul.f32 %v2213_v50, %v2264_v26  ;;  %v2285_v36 = vmul.f32 %v2182_v34, %v2260_v25  ;;  %v2289_v40 = vmul.f32 %v2188_v38, %v2268_v27  ;;  %v2293_v41 = vmul.f32 %v2220_v53, %v2272_v28 }
  0xc1   : > { %3009 = vst [vmem:[#allocation6_spill] sm:$0xff] %v2272_v28  ;;  %v744_v43 = vrot.slane %v664_v23, 7  ;;  %v683_v45 = vpop.f32.mrf.mxu2  ;;  %v908_v48 = vadd.f32 %v892_v32, %v873_v30  ;;  %v787_v55 = vrot.slane %v664_v23, 1  ;;  %v850_v56 = vmul.f32 %v2172_v29, %v664_v23  ;;  %1432 = vmatpush.bf16.msra.mxu1 %v1833_v17  ;;  %1889 = vmatpush.bf16.msra.mxu3 %v1833_v17 }
  0xc2   : > { %3010 = vst [vmem:[#allocation7_spill] sm:$0xff] %v2281_v35  ;;  %v899_v57 = vadd.f32 %v883_v11, %v864_v58  ;;  %v951_v60 = vmul.f32 %v2203_v46, %v664_v23  ;;  %v2298_v61 = vadd.f32 %v2160_v20, %v683_v45  ;;  %v907_v62 = vadd.f32 %v891_v31, %v872_v51 }
  0xc3   : > { %3011 = vst [vmem:[#allocation8_spill] sm:$0xff] %v2285_v36  ;;  %v926_v63 = vmul.f32 %v2186_v37, %v2268_v27  ;;  %v665_v0 = vpop.f32.mrf.mxu0  ;;  %v866_v1 = vadd.f32 %v2196_v42, %v850_v56  ;;  %v935_v6 = vadd.f32 %v919_v14, %v900_v18  ;;  %v927_v31 = vmul.f32 %v2217_v52, %v2272_v28 }
  0xc4   : > { %3012 = vst [vmem:[#allocation9_spill] sm:$0xff] %v2289_v40  ;;  %v934_v4 = vadd.f32 %v918_v13, %v899_v57  ;;  %v666_v5 = vadd.f32 %v2160_v20, %v665_v0  ;;  %v748_v7 = vrot.slane %v2298_v61, 7  ;;  %v791_v58 = vrot.slane %v2298_v61, 1 }
  0xc5   : > { %3013 = vst [vmem:[#allocation10_spill] sm:$0xff] %v2293_v41  ;;  %v858_v8 = vmul.f32 %v2172_v29, %v2298_v61  ;;  %v942_v9 = vadd.f32 %v926_v63, %v907_v62  ;;  %v959_v51 = vmul.f32 %v2203_v46, %v2298_v61  ;;  %v2312_v11 = vmul.f32 %v2205_v47, %v2298_v61 }
  0xc6   : > { %v967_v10 = vadd.f32 %v951_v60, %v934_v4  ;;  %v754_v12 = vrot.slane %v666_v5, 7  ;;  %v797_v14 = vrot.slane %v666_v5, 1  ;;  %v851_v15 = vmul.f32 %v2172_v29, %v666_v5 }
  0xc7   : > { %3014 = vst [vmem:[#allocation11_spill] sm:$0xff] %v2312_v11  ;;  %v2315_v13 = vadd.f32 %v2196_v42, %v858_v8  ;;  %v952_v16 = vmul.f32 %v2203_v46, %v666_v5  ;;  %v2322_v18 = vadd.f32 %v959_v51, %v942_v9  ;;  %v1832_v9 = vld [vmem:[%s2989_s7 + $0x30] sm:$0xff] }
  0xc8   : > { %v767_v23 = vsel %vm765_vm5, %v744_v43, %v754_v12  ;;  %v777_v30 = vsel %vm765_vm5, %v754_v12, %v744_v43  ;;  %v808_v32 = vsel %vm806_vm6, %v787_v55, %v797_v14  ;;  %v818_v45 = vsel %vm806_vm6, %v797_v14, %v787_v55  ;;  %1433 = vmatpush.bf16.msra.mxu1 %v1832_v9 }
  0xc9   : > { %v867_v56 = vadd.f32 %v2196_v42, %v851_v15  ;;  %v885_v57 = vmul.f32 %v2210_v49, %v777_v30  ;;  %v685_v60 = vpop.f32.mrf.mxu2  ;;  %v886_v61 = vmul.f32 %v2180_v33, %v767_v23  ;;  %v920_v62 = vmul.f32 %v2186_v37, %v808_v32  ;;  %1890 = vmatpush.bf16.msra.mxu3 %v1832_v9  ;;  %v1831_v9 = vld [vmem:[%s2989_s7 + $0x28] sm:$0xff] }
  0xca   : > { %v921_v43 = vmul.f32 %v2217_v52, %v818_v45  ;;  %v968_v63 = vadd.f32 %v952_v16, %v935_v6  ;;  %v986_v4 = vmul.f32 %v2213_v50, %v777_v30  ;;  %v987_v5 = vmul.f32 %v2182_v34, %v767_v23 }
  0xcb   : > { %v901_v0 = vadd.f32 %v885_v57, %v866_v1  ;;  %v1021_v55 = vmul.f32 %v2188_v38, %v808_v32  ;;  %v668_v8 = vpop.f32.mrf.mxu0  ;;  %v902_v51 = vadd.f32 %v886_v61, %v867_v56  ;;  %v1022_v12 = vmul.f32 %v2220_v53, %v818_v45 }
  0xcc   : > { %v686_v14 = vadd.f32 %v2160_v20, %v685_v60  ;;  %v943_v15 = vadd.f32 %v927_v31, %v908_v48  ;;  %v1002_v16 = vadd.f32 %v986_v4, %v967_v10  ;;  %v1003_v1 = vadd.f32 %v987_v5, %v968_v63  ;;  %1434 = vmatpush.bf16.msra.mxu1 %v1831_v9 }
  0xcd   : > { %v936_v6 = vadd.f32 %v920_v62, %v901_v0  ;;  %v2348_v17 = vadd.f32 %v2160_v20, %v668_v8  ;;  %v2350_v23 = vadd.f32 %v921_v43, %v902_v51  ;;  %1891 = vmatpush.bf16.msra.mxu3 %v1831_v9 }
  0xce   : > { %v758_v30 = vrot.slane %v686_v14, 7  ;;  %v801_v32 = vrot.slane %v686_v14, 1  ;;  %v859_v57 = vmul.f32 %v2172_v29, %v686_v14  ;;  %v1037_v56 = vadd.f32 %v1021_v55, %v1002_v16 }
  0xcf   : > { %v2353_v61 = vadd.f32 %v1022_v12, %v1003_v1  ;;  %v960_v45 = vmul.f32 %v2203_v46, %v686_v14  ;;  %v2357_v48 = vmul.f32 %v2205_v47, %v686_v14  ;;  %v745_v8 = vrot.slane %v2348_v17, 7 }
  0xd0   : > { %v2361_v10 = vsel %vm765_vm5, %v748_v7, %v758_v30  ;;  %v2365_v31 = vsel %vm765_vm5, %v758_v30, %v748_v7  ;;  %v2369_v60 = vsel %vm806_vm6, %v791_v58, %v801_v32  ;;  %v2373_v62 = vsel %vm806_vm6, %v801_v32, %v791_v58 }
  0xd1   : > { %3015 = vst [vmem:[#allocation12_spill] sm:$0xff] %v2357_v48  ;;  %v875_v43 = vadd.f32 %v2196_v42, %v859_v57  ;;  %v893_v63 = vmul.f32 %v2210_v49, %v2365_v31  ;;  %v894_v0 = vmul.f32 %v2180_v33, %v2361_v10  ;;  %v976_v4 = vadd.f32 %v960_v45, %v943_v15  ;;  %v688_v5 = vpop.f32.mrf.mxu2 }
  0xd2   : > { %3016 = vst [vmem:[#allocation13_spill] sm:$0xff] %v2361_v10  ;;  %v994_v7 = vmul.f32 %v2213_v50, %v2365_v31  ;;  %v995_v55 = vmul.f32 %v2182_v34, %v2361_v10  ;;  %v788_v58 = vrot.slane %v2348_v17, 1  ;;  %v852_v12 = vmul.f32 %v2172_v29, %v2348_v17 }
  0xd3   : > { %3017 = vst [vmem:[#allocation14_spill] sm:$0xff] %v2365_v31  ;;  %v910_v51 = vadd.f32 %v894_v0, %v875_v43  ;;  %v953_v14 = vmul.f32 %v2203_v46, %v2348_v17  ;;  %v1054_v15 = vmul.f32 %v2205_v47, %v2348_v17  ;;  %v670_v16 = vpop.f32.mrf.mxu0  ;;  %v2396_v30 = vadd.f32 %v2160_v20, %v688_v5 }
  0xd4   : > { %3018 = vst [vmem:[#allocation15_spill] sm:$0xff] %v2369_v60  ;;  %v1011_v1 = vadd.f32 %v995_v55, %v976_v4  ;;  %v909_v32 = vadd.f32 %v893_v63, %v2315_v13  ;;  %v928_v57 = vmul.f32 %v2186_v37, %v2369_v60  ;;  %v2402_v45 = vadd.f32 %v2196_v42, %v852_v12  ;;  %v1830_v55 = vld [vmem:[%s2989_s7 + $0x20] sm:$0xff] }
  0xd5   : > { %3019 = vst [vmem:[#allocation16_spill] sm:$0xff] %v2373_v62  ;;  %v2404_v43 = vadd.f32 %v953_v14, %v936_v6  ;;  %v2406_v0 = vadd.f32 %v1054_v15, %v1037_v56  ;;  %v1010_v17 = vadd.f32 %v994_v7, %v2322_v18  ;;  %v749_v4 = vrot.slane %v2396_v30, 7  ;;  %1435 = vmatpush.bf16.msra.mxu1 %v1830_v55  ;;  %v1829_v15 = vld [vmem:[%s2989_s7 + $0x18] sm:$0xff] }
  0xd6   : > { %v792_v5 = vrot.slane %v2396_v30, 1  ;;  %v860_v13 = vmul.f32 %v2172_v29, %v2396_v30  ;;  %v944_v63 = vadd.f32 %v928_v57, %v909_v32  ;;  %v961_v6 = vmul.f32 %v2203_v46, %v2396_v30  ;;  %1892 = vmatpush.bf16.msra.mxu3 %v1830_v55 }
  0xd7   : > { %v1029_v56 = vmul.f32 %v2188_v38, %v2369_v60  ;;  %v1062_v18 = vmul.f32 %v2205_v47, %v2396_v30  ;;  %v671_v7 = vadd.f32 %v2160_v20, %v670_v16  ;;  %v929_v12 = vmul.f32 %v2217_v52, %v2373_v62 }
  0xd8   : > { %v2424_v9 = vadd.f32 %v2196_v42, %v860_v13  ;;  %v1030_v14 = vmul.f32 %v2220_v53, %v2373_v62  ;;  %v2435_v32 = vmul.f32 %v2223_v54, %v2264_v26  ;;  %v2437_v30 = vadd.f32 %v961_v6, %v944_v63 }
  0xd9   : > { %v1045_v16 = vadd.f32 %v1029_v56, %v1010_v17  ;;  %v755_v57 = vrot.slane %v671_v7, 7  ;;  %v798_v13 = vrot.slane %v671_v7, 1  ;;  %v690_v24 = vpop.f32.mrf.mxu2  ;;  %v853_v48 = vmul.f32 %v2172_v29, %v671_v7  ;;  %1436 = vmatpush.bf16.msra.mxu1 %v1829_v15 }
  0xda   : > { %3020 = vst [vmem:[#allocation17_spill] sm:$0xff] %v2435_v32  ;;  %v954_v11 = vmul.f32 %v2203_v46, %v671_v7  ;;  %v1055_v41 = vmul.f32 %v2205_v47, %v671_v7  ;;  %v691_v40 = vadd.f32 %v2160_v20, %v690_v24  ;;  %1893 = vmatpush.bf16.msra.mxu3 %v1829_v15 }
  0xdb   : > { %v2443_v36 = vadd.f32 %v1062_v18, %v1045_v16  ;;  %v2447_v26 = vsel %vm765_vm5, %v745_v8, %v755_v57  ;;  %v2451_v17 = vsel %vm765_vm5, %v755_v57, %v745_v8  ;;  %v2455_v63 = vsel %vm806_vm6, %v788_v58, %v798_v13  ;;  %v1828_v8 = vld [vmem:[%s2989_s7 + $0x10] sm:$0xff]  ;;  %v673_v16 = vpop.f32.mrf.mxu0 }
  0xdc   : > { %v2459_v55 = vsel %vm806_vm6, %v798_v13, %v788_v58  ;;  %v869_v24 = vadd.f32 %v2196_v42, %v853_v48  ;;  %v887_v6 = vmul.f32 %v2210_v49, %v2451_v17  ;;  %v888_v56 = vmul.f32 %v2180_v33, %v2447_v26 }
  0xdd   : > { %3021 = vst [vmem:[#allocation18_spill] sm:$0xff] %v2443_v36  ;;  %v970_v18 = vadd.f32 %v954_v11, %v2350_v23  ;;  %v988_v7 = vmul.f32 %v2213_v50, %v2451_v17  ;;  %v989_v58 = vmul.f32 %v2182_v34, %v2447_v26  ;;  %v2475_v48 = vadd.f32 %v1055_v41, %v2353_v61 }
  0xde   : > { %v2477_v57 = vadd.f32 %v888_v56, %v869_v24  ;;  %v759_v13 = vrot.slane %v691_v40, 7  ;;  %v802_v35 = vrot.slane %v691_v40, 1  ;;  %v861_v19 = vmul.f32 %v2172_v29, %v691_v40  ;;  %1437 = vmatpush.bf16.msra.mxu1 %v1828_v8  ;;  %1894 = vmatpush.bf16.msra.mxu3 %v1828_v8 }
  0xdf   : > { %v2480_v2 = vadd.f32 %v989_v58, %v970_v18  ;;  %v945_v11 = vadd.f32 %v929_v12, %v910_v51  ;;  %v962_v23 = vmul.f32 %v2203_v46, %v691_v40  ;;  %v1046_v36 = vadd.f32 %v1030_v14, %v1011_v1  ;;  %v1827_v51 = vld [vmem:[%s2989_s7 + $0x8] sm:$0xff] }
  0xe0   : > { %v2485_v62 = vsel %vm765_vm5, %v749_v4, %v759_v13  ;;  %v2489_v41 = vsel %vm765_vm5, %v759_v13, %v749_v4  ;;  %v2493_v61 = vsel %vm806_vm6, %v792_v5, %v802_v35  ;;  %v2497_v15 = vsel %vm806_vm6, %v802_v35, %v792_v5 }
  0xe1   : > { %3022 = vst [vmem:[#allocation19_spill] sm:$0xff] %v2485_v62  ;;  %v877_v1 = vadd.f32 %v2196_v42, %v861_v19  ;;  %v895_v12 = vmul.f32 %v2210_v49, %v2489_v41  ;;  %v896_v4 = vmul.f32 %v2180_v33, %v2485_v62  ;;  %v978_v14 = vadd.f32 %v962_v23, %v945_v11  ;;  %v693_v24 = vpop.f32.mrf.mxu2 }
  0xe2   : > { %3023 = vst [vmem:[#allocation20_spill] sm:$0xff] %v2489_v41  ;;  %v996_v35 = vmul.f32 %v2213_v50, %v2489_v41  ;;  %v997_v5 = vmul.f32 %v2182_v34, %v2485_v62  ;;  %v1063_v56 = vmul.f32 %v2205_v47, %v691_v40  ;;  %v2513_v18 = vadd.f32 %v2160_v20, %v673_v16  ;;  %v1826_v16 = vld [vmem:[%s2989_s7] sm:$0xff] }
  0xe3   : > { %3024 = vst [vmem:[#allocation21_spill] sm:$0xff] %v2493_v61  ;;  %v2515_v19 = vadd.f32 %v896_v4, %v877_v1  ;;  %v903_v58 = vadd.f32 %v887_v6, %v2402_v45  ;;  %v922_v13 = vmul.f32 %v2186_v37, %v2455_v63  ;;  %v1004_v8 = vadd.f32 %v988_v7, %v2404_v43  ;;  %v675_v40 = vpop.f32.mrf.mxu0 }
  0xe4   : > { %3025 = vst [vmem:[#allocation22_spill] sm:$0xff] %v2497_v15  ;;  %v2521_v11 = vadd.f32 %v997_v5, %v978_v14  ;;  %v2523_v23 = vadd.f32 %v1063_v56, %v1046_v36  ;;  %v746_v62 = vrot.slane %v2513_v18, 7  ;;  %1438 = vmatpush.bf16.msra.mxu1 %v1827_v51  ;;  %v854_v45 = vmul.f32 %v2172_v29, %v2513_v18 }
  0xe5   : > { %v938_v6 = vadd.f32 %v922_v13, %v903_v58  ;;  %v955_v43 = vmul.f32 %v2203_v46, %v2513_v18  ;;  %v1023_v36 = vmul.f32 %v2188_v38, %v2455_v63  ;;  %1895 = vmatpush.bf16.msra.mxu3 %v1827_v51  ;;  %v1056_v7 = vmul.f32 %v2205_v47, %v2513_v18 }
  0xe6   : > { %3026 = vst [vmem:[#allocation23_spill] sm:$0xff] %v2523_v23  ;;  %v2539_v1 = vadd.f32 %v2160_v20, %v693_v24  ;;  %v911_v4 = vadd.f32 %v895_v12, %v2424_v9  ;;  %v930_v14 = vmul.f32 %v2186_v37, %v2493_v61  ;;  %v870_v5 = vadd.f32 %v2196_v42, %v854_v45 }
  0xe7   : > { %v2545_v56 = vadd.f32 %v955_v43, %v938_v6  ;;  %v1039_v58 = vadd.f32 %v1023_v36, %v1004_v8  ;;  %v1012_v13 = vadd.f32 %v996_v35, %v2437_v30  ;;  %v1031_v8 = vmul.f32 %v2188_v38, %v2493_v61 }
  0xe8   : > { %v750_v51 = vrot.slane %v2539_v1, 7  ;;  %v862_v24 = vmul.f32 %v2172_v29, %v2539_v1  ;;  %v946_v41 = vadd.f32 %v930_v14, %v911_v4  ;;  %1439 = vmatpush.bf16.msra.mxu1 %v1826_v16  ;;  %v963_v12 = vmul.f32 %v2203_v46, %v2539_v1 }
  0xe9   : > { %v2552_v9 = vadd.f32 %v1056_v7, %v1039_v58  ;;  %v1064_v30 = vmul.f32 %v2205_v47, %v2539_v1  ;;  %v695_v35 = vpop.f32.mrf.mxu2  ;;  %1896 = vmatpush.bf16.msra.mxu3 %v1826_v16  ;;  %v2562_v6 = vadd.f32 %v2160_v20, %v675_v40  ;;  %v923_v43 = vmul.f32 %v2217_v52, %v2459_v55 }
  0xea   : > { %v878_v45 = vadd.f32 %v2196_v42, %v862_v24  ;;  %v1024_v36 = vmul.f32 %v2220_v53, %v2459_v55  ;;  %v979_v7 = vadd.f32 %v963_v12, %v946_v41  ;;  %v1047_v4 = vadd.f32 %v1031_v8, %v1012_v13 }
  0xeb   : > { %v696_v14 = vadd.f32 %v2160_v20, %v695_v35  ;;  %v931_v58 = vmul.f32 %v2217_v52, %v2497_v15  ;;  %v756_v16 = vrot.slane %v2562_v6, 7  ;;  %v855_v40 = vmul.f32 %v2172_v29, %v2562_v6 }
  0xec   : > { %v939_v23 = vadd.f32 %v923_v43, %v2477_v57  ;;  %v2576_v61 = vadd.f32 %v1064_v30, %v1047_v4  ;;  %v956_v41 = vmul.f32 %v2203_v46, %v2562_v6  ;;  %v1040_v13 = vadd.f32 %v1024_v36, %v2480_v2 }
  0xed   : > { %v1057_v12 = vmul.f32 %v2205_v47, %v2562_v6  ;;  %v2585_v8 = vsel %vm765_vm5, %v746_v62, %v756_v16  ;;  %v2589_v35 = vsel %vm765_vm5, %v756_v16, %v746_v62  ;;  %v871_v57 = vadd.f32 %v2196_v42, %v855_v40 }
  0xee   : > { %v760_v30 = vrot.slane %v696_v14, 7  ;;  %v889_v43 = vmul.f32 %v2210_v49, %v2589_v35  ;;  %v890_v2 = vmul.f32 %v2180_v33, %v2585_v8  ;;  %v972_v36 = vadd.f32 %v956_v41, %v939_v23 }
  0xef   : > { %v2598_v4 = vmul.f32 %v2213_v50, %v2589_v35  ;;  %v991_v24 = vmul.f32 %v2182_v34, %v2585_v8  ;;  %v2602_v60 = vadd.f32 %v1057_v12, %v1040_v13  ;;  %v803_v41 = vrot.slane %v696_v14, 1 }
  0xf0   : > { %v2606_v62 = vsel %vm765_vm5, %v750_v51, %v760_v30  ;;  %v2610_v16 = vsel %vm765_vm5, %v760_v30, %v750_v51  ;;  %v2612_v40 = vadd.f32 %v889_v43, %v870_v5  ;;  %v2614_v23 = vadd.f32 %v890_v2, %v871_v57 }
  0xf1   : > { %v863_v10 = vmul.f32 %v2172_v29, %v696_v14  ;;  %v698_v31 = vpop.f32.mrf.mxu2  ;;  %v2617_v28 = vadd.f32 %v991_v24, %v972_v36  ;;  %v947_v13 = vadd.f32 %v931_v58, %v2515_v19  ;;  %v964_v12 = vmul.f32 %v2203_v46, %v696_v14 }
  0xf2   : > { %v1032_v27 = vmul.f32 %v2220_v53, %v2497_v15  ;;  %v1065_v5 = vmul.f32 %v2205_v47, %v696_v14  ;;  %v699_v57 = vadd.f32 %v2160_v20, %v698_v31  ;;  %v3027_v30 = vrot.slane %v2539_v1, 1 }
  0xf3   : > { %v879_v51 = vadd.f32 %v2196_v42, %v863_v10  ;;  %v980_v24 = vadd.f32 %v964_v12, %v947_v13  ;;  %v897_v58 = vmul.f32 %v2210_v49, %v2610_v16  ;;  %v998_v31 = vmul.f32 %v2213_v50, %v2610_v16 }
  0xf4   : > { %v2630_v29 = vsel %vm806_vm6, %v3027_v30, %v803_v41  ;;  %v1048_v19 = vadd.f32 %v1032_v27, %v2521_v11  ;;  %v751_v42 = vrot.slane %v699_v57, 7  ;;  %v794_v10 = vrot.slane %v699_v57, 1 }
  0xf5   : > { %v932_v43 = vmul.f32 %v2186_v37, %v2630_v29  ;;  %v965_v14 = vmul.f32 %v2203_v46, %v699_v57  ;;  %v913_v36 = vadd.f32 %v897_v58, %v878_v45  ;;  %v1033_v27 = vmul.f32 %v2188_v38, %v2630_v29 }
  0xf6   : > { %v2640_v2 = vadd.f32 %v1065_v5, %v1048_v19  ;;  %v1066_v11 = vmul.f32 %v2205_v47, %v699_v57  ;;  %v1014_v49 = vadd.f32 %v998_v31, %v979_v7  ;;  %v3028_v13 = vmov %v3027_v30 }
  0xf7   : > { %v2649_v12 = vsel %vm806_vm6, %v803_v41, %v3028_v13  ;;  %v898_v30 = vmul.f32 %v2180_v33, %v2606_v62  ;;  %v999_v5 = vmul.f32 %v2182_v34, %v2606_v62  ;;  %v948_v45 = vadd.f32 %v932_v43, %v913_v36 }
  0xf8   : > { %v933_v19 = vmul.f32 %v2217_v52, %v2649_v12  ;;  %v1034_v57 = vmul.f32 %v2220_v53, %v2649_v12  ;;  %v1089_v1 = vmul.f32 %v2223_v54, %v2451_v17  ;;  %v1049_v7 = vadd.f32 %v1033_v27, %v1014_v49 }
  0xf9   : > { %v700_v58 = vpop.f32.mrf.mxu2  ;;  %v914_v41 = vadd.f32 %v898_v30, %v879_v51  ;;  %v1015_v31 = vadd.f32 %v999_v5, %v980_v24  ;;  %v1090_v33 = vmul.f32 %v2190_v39, %v2447_v26  ;;  %v981_v13 = vadd.f32 %v965_v14, %v948_v45 }
  0xfa   : > { %v701_v43 = vadd.f32 %v2160_v20, %v700_v58  ;;  %v1105_v36 = vadd.f32 %v1089_v1, %v2406_v0  ;;  %v1124_v15 = vmul.f32 %v2199_v44, %v2455_v63  ;;  %v2668_v32 = vadd.f32 %v1066_v11, %v1049_v7 }
  0xfb   : > { %v949_v17 = vadd.f32 %v933_v19, %v914_v41  ;;  %v1050_v27 = vadd.f32 %v1034_v57, %v1015_v31  ;;  %v1106_v51 = vadd.f32 %v1090_v33, %v2475_v48  ;;  %v1125_v14 = vmul.f32 %v2227_v59, %v2459_v55 }
  0xfc   : > { %v761_v24 = vrot.slane %v701_v43, 7  ;;  %v804_v49 = vrot.slane %v701_v43, 1  ;;  %v966_v26 = vmul.f32 %v2203_v46, %v701_v43  ;;  %v1067_v30 = vmul.f32 %v2205_v47, %v701_v43 }
  0xfd   : > { %v2675_v5 = vadd.f32 %v1124_v15, %v1105_v36  ;;  %v3029_v0 = vrot.slane %v2562_v6, 1  ;;  %v3030_v63 = vrot.slane %v2513_v18, 1  ;;  %v2711_v43 = vadd.f32 %v1125_v14, %v1106_v51 }
  0xfe   : > { %v774_v55 = vsel %vm765_vm5, %v751_v42, %v761_v24  ;;  %v784_v15 = vsel %vm765_vm5, %v761_v24, %v751_v42  ;;  %v815_v19 = vsel %vm806_vm6, %v794_v10, %v804_v49  ;;  %v825_v57 = vsel %vm806_vm6, %v804_v49, %v794_v10 }
  0xff   : > { %v810_v48 = vsel %vm806_vm6, %v3030_v63, %v3029_v0  ;;  %v3031_v11 = vmov %v3030_v63  ;;  %v3032_v46 = vmov %v3029_v0  ;;  %v982_v1 = vadd.f32 %v966_v26, %v949_v17 }
 0x100   : > { %v820_v45 = vsel %vm806_vm6, %v3032_v46, %v3031_v11  ;;  %v1000_v18 = vmul.f32 %v2213_v50, %v784_v15  ;;  %v1001_v6 = vmul.f32 %v2182_v34, %v774_v55  ;;  %v1083_v7 = vadd.f32 %v1067_v30, %v1050_v27 }
 0x101   : > { %v2702_v58 = vmul.f32 %v2223_v54, %v784_v15  ;;  %v1102_v41 = vmul.f32 %v2190_v39, %v774_v55  ;;  %v2706_v31 = vmul.f32 %v2199_v44, %v815_v19  ;;  %v2709_v42 = vmul.f32 %v2227_v59, %v825_v57  ;;  %v703_v10 = vpop.f32.mrf.mxu2 }
 0x102   : > { %v1017_v33 = vadd.f32 %v1001_v6, %v982_v1  ;;  %v1156_v50 = vmul.f32 %v2675_v5, %v2675_v5  ;;  %v714_v34 = vstv %s713_s24  ;;  %v704_v17 = vadd.f32 %v2160_v20, %v703_v10 }
 0x103   : > { %v2715_v36 = vadd.f32 %v1102_v41, %v1083_v7  ;;  %vm715_vm7 = vcmp.eq.s32.totalorder %v714_v34, 1  ;;  %v1016_v27 = vadd.f32 %v1000_v18, %v981_v13  ;;  %v1157_v24 = vmul.f32 %v2711_v43, %v2711_v43 }
 0x104   : > { %v1172_v49 = vmul.f32 %v1156_v50, %v2675_v5  ;;  %vm717_vm8 = vmxor %vm715_vm7, %vm2014_vm1  ;;  %v1035_v51 = vmul.f32 %v2188_v38, %v815_v19  ;;  %v1036_v26 = vmul.f32 %v2220_v53, %v825_v57  ;;  %v3033_v30 = vmov 0.0  }
 0x105   : > { %v1763_v14 = vsel %vm717_vm8, 1.0, %v3033_v30  ;;  %v924_v0 = vmul.f32 %v2186_v37, %v810_v48  ;;  %v925_v63 = vmul.f32 %v2217_v52, %v820_v45  ;;  %v1025_v11 = vmul.f32 %v2188_v38, %v810_v48 }
 0x106   : > { %v1173_v13 = vmul.f32 %v1157_v24, %v2711_v43  ;;  %v1188_v46 = vmul.f32 0.044715, %v1172_v49  ;;  %v741_v55 = vmul.f32 %v1763_v14, %v704_v17  ;;  %v1051_v15 = vadd.f32 %v1035_v51, %v1016_v27 }
 0x107   : > { %v1052_v1 = vadd.f32 %v1036_v26, %v1017_v33  ;;  %v2730_v18 = vadd.f32 %v924_v0, %v2612_v40  ;;  %v2733_v19 = vadd.f32 %v925_v63, %v2614_v23  ;;  %v1026_v57 = vmul.f32 %v2220_v53, %v820_v45 }
 0x108   : > { %v1189_v6 = vmul.f32 0.044715, %v1173_v13  ;;  %v1204_v37 = vadd.f32 %v1188_v46, %v2675_v5  ;;  %v752_v52 = vrot.slane %v741_v55, 7  ;;  %v795_v7 = vrot.slane %v741_v55, 1 }
 0x109   : > { %v1068_v38 = vmul.f32 %v2205_v47, %v741_v55  ;;  %v1091_v41 = vmul.f32 %v2223_v54, %v2589_v35  ;;  %v1092_v33 = vmul.f32 %v2190_v39, %v2585_v8  ;;  %v1126_v40 = vmul.f32 %v2199_v44, %v810_v48  ;;  %v705_v10 = vpop.f32.mrf.mxu2 }
 0x10a   : > { %v1205_v23 = vadd.f32 %v1189_v6, %v2711_v43  ;;  %v1220_v50 = vmul.f32 0.7978846, %v1204_v37  ;;  %v1127_v53 = vmul.f32 %v2227_v59, %v820_v45  ;;  %v1099_v34 = vmul.f32 %v2223_v54, %v2610_v16 }
 0x10b   : > { %v2747_v17 = vadd.f32 %v1068_v38, %v1051_v15  ;;  %v706_v27 = vadd.f32 %v2160_v20, %v705_v10  ;;  %v1107_v35 = vadd.f32 %v1091_v41, %v2552_v9  ;;  %v1108_v24 = vadd.f32 %v1092_v33, %v2602_v60 }
 0x10c   : > { %v1221_v8 = vmul.f32 0.7978846, %v1205_v23  ;;  %1942 = vtanh.f32 %v1220_v50  ;;  %v1100_v48 = vmul.f32 %v2190_v39, %v2606_v62  ;;  %v1115_v49 = vadd.f32 %v1099_v34, %v2576_v61 }
 0x10d   : > { %v742_v51 = vmul.f32 %v1763_v14, %v706_v27  ;;  %v2755_v45 = vadd.f32 %v1126_v40, %v1107_v35  ;;  %v2757_v26 = vadd.f32 %v1127_v53, %v1108_v24  ;;  %v1134_v16 = vmul.f32 %v2199_v44, %v2630_v29 }
 0x10e   : > { %1944 = vtanh.f32 %v1221_v8  ;;  %v1116_v20 = vadd.f32 %v1100_v48, %v2640_v2  ;;  %v1135_v60 = vmul.f32 %v2227_v59, %v2649_v12  ;;  %v1006_v9 = vadd.f32 %v2598_v4, %v2545_v56 }
 0x10f   : > { %v762_v62 = vrot.slane %v742_v51, 7  ;;  %v805_v30 = vrot.slane %v742_v51, 1  ;;  %v1069_v61 = vmul.f32 %v2205_v47, %v742_v51  ;;  %v1158_v14 = vmul.f32 %v2755_v45, %v2755_v45 }
 0x110   : > { %v1159_v0 = vmul.f32 %v2757_v26, %v2757_v26  ;;  %v2771_v29 = vadd.f32 %v1134_v16, %v1115_v49  ;;  %v2773_v63 = vadd.f32 %v1135_v60, %v1116_v20  ;;  %v1041_v2 = vadd.f32 %v1025_v11, %v1006_v9  ;;  %v3034_v16 = vld [vmem:[#allocation17_spill] sm:$0xff] }
 0x111   : > { %v775_v12 = vsel %vm765_vm5, %v752_v52, %v762_v62  ;;  %v785_v56 = vsel %vm765_vm5, %v762_v62, %v752_v52  ;;  %v816_v47 = vsel %vm806_vm6, %v795_v7, %v805_v30  ;;  %v826_v4 = vsel %vm806_vm6, %v805_v30, %v795_v7 }
 0x112   : > { %v1943_v13 = vpop.eup %1942  ;;  %v1085_v46 = vadd.f32 %v1069_v61, %v1052_v1  ;;  %v2784_v55 = vmul.f32 %v2223_v54, %v785_v56  ;;  %v1104_v15 = vmul.f32 %v2190_v39, %v775_v12  ;;  %v2788_v11 = vmul.f32 %v2199_v44, %v816_v47  ;;  %v3035_v61 = vld [vmem:[#allocation5_spill] sm:$0xff]  ;;  %v3036_v12 = vld [vmem:[#allocation6_spill] sm:$0xff] }
 0x113   : > { %v1252_v6 = vadd.f32 1.0, %v1943_v13  ;;  %v2791_v37 = vmul.f32 %v2227_v59, %v826_v4  ;;  %v1174_v52 = vmul.f32 %v1158_v14, %v2755_v45  ;;  %v1175_v38 = vmul.f32 %v1159_v0, %v2757_v26 }
 0x114   : > { %v1945_v21 = vpop.eup %1944  ;;  %v2795_v7 = vadd.f32 %v1104_v15, %v1085_v46  ;;  %v1166_v1 = vmul.f32 %v2771_v29, %v2771_v29  ;;  %v1167_v41 = vmul.f32 %v2773_v63, %v2773_v63  ;;  %v1042_v33 = vadd.f32 %v1026_v57, %v2617_v28  ;;  %v3037_v46 = vld [vmem:[#allocation14_spill] sm:$0xff] }
 0x115   : > { %v1253_v40 = vadd.f32 1.0, %v1945_v21  ;;  %v1268_v23 = vmul.f32 0.5, %v1252_v6  ;;  %v1190_v50 = vmul.f32 0.044715, %v1174_v52  ;;  %v1191_v10 = vmul.f32 0.044715, %v1175_v38 }
 0x116   : > { %v1182_v53 = vmul.f32 %v1166_v1, %v2771_v29  ;;  %v1183_v34 = vmul.f32 %v1167_v41, %v2773_v63  ;;  %v1074_v27 = vadd.f32 %v2234_v3, %v1041_v2  ;;  %v1075_v35 = vadd.f32 %v2255_v22, %v1042_v33  ;;  %v3038_v6 = vld [vmem:[#allocation13_spill] sm:$0xff]  ;;  %v3039_v21 = vld [vmem:[#allocation15_spill] sm:$0xff]  ;;  %v3040_v41 = vld [vmem:[#allocation16_spill] sm:$0xff] }
 0x117   : > { %v1269_v24 = vmul.f32 0.5, %v1253_v40  ;;  %v1284_v8 = vmul.f32 %v1268_v23, %v2675_v5  ;;  %v1206_v48 = vadd.f32 %v1190_v50, %v2755_v45  ;;  %v1207_v49 = vadd.f32 %v1191_v10, %v2757_v26  ;;  %v3041_v50 = vld [vmem:[#allocation20_spill] sm:$0xff] }
 0x118   : > { %v1198_v28 = vmul.f32 0.044715, %v1182_v53  ;;  %v1199_v57 = vmul.f32 0.044715, %v1183_v34  ;;  %v1094_v51 = vmul.f32 %v2190_v39, %v2260_v25  ;;  %v1109_v20 = vadd.f32 %v3034_v16, %v1074_v27  ;;  %v3042_v34 = vld [vmem:[#allocation19_spill] sm:$0xff] }
 0x119   : > { %v1285_v60 = vmul.f32 %v1269_v24, %v2711_v43  ;;  %v1300_v9 = vpack.c.bf16 %v1284_v8, %v1284_v8  ;;  %v1222_v3 = vmul.f32 0.7978846, %v1206_v48  ;;  %v1223_v62 = vmul.f32 0.7978846, %v1207_v49  ;;  %v3044_v8 = vld [vmem:[#allocation22_spill] sm:$0xff] }
 0x11a   : > { %v1214_v22 = vadd.f32 %v1198_v28, %v2771_v29  ;;  %v1215_v5 = vadd.f32 %v1199_v57, %v2773_v63  ;;  %v1110_v30 = vadd.f32 %v1094_v51, %v1075_v35  ;;  %v1128_v14 = vmul.f32 %v2199_v44, %v3035_v61  ;;  %v3043_v35 = vld [vmem:[#allocation21_spill] sm:$0xff] }
 0x11b   : > { %v1301_v0 = vpack.c.bf16 %v1285_v60, %v1285_v60  ;;  %v1352_v2 = vunpack.c.l.b16 %v1300_v9  ;;  %1946 = vtanh.f32 %v1222_v3  ;;  %v1129_v25 = vmul.f32 %v2227_v59, %v3036_v12  ;;  %v3046_v60 = vld [vmem:[#allocation3_spill] sm:$0xff]  ;;  %v3047_v9 = vld [vmem:[#allocation4_spill] sm:$0xff] }
 0x11c   : > { %1948 = vtanh.f32 %v1223_v62  ;;  %v1230_v56 = vmul.f32 0.7978846, %v1214_v22  ;;  %v1231_v43 = vmul.f32 0.7978846, %v1215_v5  ;;  %v2819_v47 = vadd.f32 %v1128_v14, %v1109_v20  ;;  %v3049_v14 = vld [vmem:[#allocation8_spill] sm:$0xff] }
 0x11d   : > { %v1353_v4 = vunpack.c.l.b16 %v1301_v0  ;;  %v2821_v13 = vadd.f32 %v1129_v25, %v1110_v30  ;;  %v2825_v15 = vmul.f32 %v2223_v54, %v3037_v46  ;;  %v2829_v52 = vmul.f32 %v2190_v39, %v3038_v6  ;;  %v3048_v30 = vld [vmem:[#allocation7_spill] sm:$0xff] }
 0x11e   : > { %1950 = vtanh.f32 %v1230_v56  ;;  %v1160_v38 = vmul.f32 %v2819_v47, %v2819_v47  ;;  %v2835_v1 = vmul.f32 %v2199_v44, %v3039_v21  ;;  %v2839_v33 = vmul.f32 %v2227_v59, %v3040_v41 }
 0x11f   : > { %v1368_v40 = vpack.c.b16 %v1353_v4, %v1352_v2  ;;  %1952 = vtanh.f32 %v1231_v43  ;;  %v1161_v23 = vmul.f32 %v2821_v13, %v2821_v13  ;;  %v1097_v10 = vmul.f32 %v2223_v54, %v3041_v50 }
 0x120   : > { %v1176_v53 = vmul.f32 %v1160_v38, %v2819_v47  ;;  %v1098_v27 = vmul.f32 %v2190_v39, %v3042_v34  ;;  %v2850_v24 = vmul.f32 %v2199_v44, %v3043_v35  ;;  %v2854_v48 = vmul.f32 %v2227_v59, %v3044_v8  ;;  %v3045_v39 = vld [vmem:[#allocation18_spill] sm:$0xff]  ;;  %v3050_v8 = vld [vmem:[#allocation9_spill] sm:$0xff] }
 0x121   : > { %v1947_v49 = vpop.eup %1946  ;;  %1440 = vmatmul.bf16.vlgmr.msra.gmra.mxu1 %v1368_v40  ;;  %v1177_v28 = vmul.f32 %v1161_v23, %v2821_v13  ;;  %v1117_v54 = vadd.f32 %v2702_v58, %v2668_v32  ;;  %v2861_v57 = vadd.f32 %v2709_v42, %v2715_v36  ;;  %v1113_v51 = vadd.f32 %v1097_v10, %v3045_v39  ;;  %v3051_v39 = vld [vmem:[#allocation10_spill] sm:$0xff] }
 0x122   : > { %v1949_v16 = vpop.eup %1948  ;;  %v1254_v44 = vadd.f32 1.0, %v1947_v49  ;;  %v1192_v20 = vmul.f32 0.044715, %v1176_v53  ;;  %v973_v59 = vadd.f32 %v3046_v60, %v2730_v18  ;;  %v974_v3 = vadd.f32 %v3047_v9, %v2733_v19  ;;  %v3052_v60 = vld [vmem:[#allocation11_spill] sm:$0xff] }
 0x123   : > { %v1255_v62 = vadd.f32 1.0, %v1949_v16  ;;  %v1193_v22 = vmul.f32 0.044715, %v1177_v28  ;;  %v2869_v5 = vadd.f32 %v2706_v31, %v1117_v54  ;;  %v1169_v32 = vmul.f32 %v2861_v57, %v2861_v57 }
 0x124   : > { %v1951_v58 = vpop.eup %1950  ;;  %v1270_v42 = vmul.f32 0.5, %v1254_v44  ;;  %v1208_v36 = vadd.f32 %v1192_v20, %v2819_v47  ;;  %v1008_v61 = vadd.f32 %v3048_v30, %v973_v59  ;;  %v1009_v0 = vadd.f32 %v3049_v14, %v974_v3 }
 0x125   : > { %v1953_v18 = vpop.eup %1952  ;;  %v1271_v2 = vmul.f32 0.5, %v1255_v62  ;;  %v1262_v12 = vadd.f32 1.0, %v1951_v58  ;;  %v1209_v19 = vadd.f32 %v1193_v22, %v2821_v13  ;;  %v1168_v31 = vmul.f32 %v2869_v5, %v2869_v5 }
 0x126   : > { %v1286_v25 = vmul.f32 %v1270_v42, %v2755_v45  ;;  %v1263_v56 = vadd.f32 1.0, %v1953_v18  ;;  %v1224_v43 = vmul.f32 0.7978846, %v1208_v36  ;;  %v1185_v4 = vmul.f32 %v1169_v32, %v2861_v57 }
 0x127   : > { %v1287_v46 = vmul.f32 %v1271_v2, %v2757_v26  ;;  %v1278_v6 = vmul.f32 0.5, %v1262_v12  ;;  %v1225_v38 = vmul.f32 0.7978846, %v1209_v19  ;;  %v1184_v21 = vmul.f32 %v1168_v31, %v2869_v5 }
 0x128   : > { %v1302_v41 = vpack.c.bf16 %v1286_v25, %v1286_v25  ;;  %v1279_v40 = vmul.f32 0.5, %v1263_v56  ;;  %1954 = vtanh.f32 %v1224_v43  ;;  %v1201_v23 = vmul.f32 0.044715, %v1185_v4 }
 0x129   : > { %v1303_v50 = vpack.c.bf16 %v1287_v46, %v1287_v46  ;;  %v1294_v10 = vmul.f32 %v1278_v6, %v2771_v29  ;;  %1956 = vtanh.f32 %v1225_v38  ;;  %v1200_v53 = vmul.f32 0.044715, %v1184_v21  ;;  %v3053_v29 = vld [vmem:[#allocation23_spill] sm:$0xff] }
 0x12a   : > { %v1354_v45 = vunpack.c.l.b16 %v1302_v41  ;;  %v1295_v34 = vmul.f32 %v1279_v40, %v2773_v63  ;;  %v1217_v35 = vadd.f32 %v1201_v23, %v2861_v57  ;;  %v1043_v26 = vadd.f32 %v3050_v8, %v1008_v61  ;;  %v3054_v63 = vld [vmem:[#allocation12_spill] sm:$0xff] }
 0x12b   : > { %v1355_v49 = vunpack.c.l.b16 %v1303_v50  ;;  %v1310_v28 = vpack.c.bf16 %v1294_v10, %v1294_v10  ;;  %v1216_v54 = vadd.f32 %v1200_v53, %v2869_v5  ;;  %v1044_v16 = vadd.f32 %v3051_v39, %v1009_v0 }
 0x12c   : > { %v1311_v44 = vpack.c.bf16 %v1295_v34, %v1295_v34  ;;  %v1233_v20 = vmul.f32 0.7978846, %v1217_v35  ;;  %v1076_v59 = vadd.f32 %v3052_v60, %v1043_v26  ;;  %v1114_v9 = vadd.f32 %v1098_v27, %v3053_v29 }
 0x12d   : > { %v1369_v3 = vpack.c.b16 %v1355_v49, %v1354_v45  ;;  %v1362_v62 = vunpack.c.l.b16 %v1310_v28  ;;  %v1232_v22 = vmul.f32 0.7978846, %v1216_v54  ;;  %v1077_v32 = vadd.f32 %v3054_v63, %v1044_v16 }
 0x12e   : > { %v1955_v58 = vpop.eup %1954  ;;  %v1363_v42 = vunpack.c.l.b16 %v1311_v44  ;;  %1958 = vtanh.f32 %v1233_v20  ;;  %v1111_v36 = vadd.f32 %v2825_v15, %v1076_v59  ;;  %v2894_v30 = vadd.f32 %v2850_v24, %v1113_v51 }
 0x12f   : > { %v1957_v61 = vpop.eup %1956  ;;  %v1256_v14 = vadd.f32 1.0, %v1955_v58  ;;  %1960 = vtanh.f32 %v1232_v22  ;;  %v1112_v0 = vadd.f32 %v2829_v52, %v1077_v32  ;;  %v2898_v27 = vadd.f32 %v2854_v48, %v1114_v9 }
 0x130   : > { %v1373_v18 = vpack.c.b16 %v1363_v42, %v1362_v62  ;;  %v1257_v2 = vadd.f32 1.0, %v1957_v61  ;;  %v2901_v12 = vadd.f32 %v2835_v1, %v1111_v36  ;;  %v1164_v19 = vmul.f32 %v2894_v30, %v2894_v30 }
 0x131   : > { %1445 = vmatmul.bf16.gmra.mxu1 %v1369_v3  ;;  %v1272_v15 = vmul.f32 0.5, %v1256_v14  ;;  %v2906_v24 = vadd.f32 %v2839_v33, %v1112_v0  ;;  %v1119_v51 = vadd.f32 %v2784_v55, %v2747_v17  ;;  %v2912_v52 = vadd.f32 %v2791_v37, %v2795_v7 }
 0x132   : > { %1465 = vmatmul.bf16.vlgmr.msra.gmra.mxu3 %v1373_v18  ;;  %v1273_v48 = vmul.f32 0.5, %v1257_v2  ;;  %v1162_v1 = vmul.f32 %v2901_v12, %v2901_v12  ;;  %v1165_v31 = vmul.f32 %v2898_v27, %v2898_v27  ;;  %v1180_v25 = vmul.f32 %v1164_v19, %v2894_v30 }
 0x133   : > { %v1288_v33 = vmul.f32 %v1272_v15, %v2819_v47  ;;  %v1163_v56 = vmul.f32 %v2906_v24, %v2906_v24  ;;  %v2923_v17 = vadd.f32 %v2788_v11, %v1119_v51  ;;  %v1171_v55 = vmul.f32 %v2912_v52, %v2912_v52 }
 0x134   : > { %v1959_v37 = vpop.eup %1958  ;;  %v1289_v7 = vmul.f32 %v1273_v48, %v2821_v13  ;;  %v1178_v43 = vmul.f32 %v1162_v1, %v2901_v12  ;;  %v1181_v4 = vmul.f32 %v1165_v31, %v2898_v27  ;;  %v1196_v46 = vmul.f32 0.044715, %v1180_v25 }
 0x135   : > { %v1961_v6 = vpop.eup %1960  ;;  %v1304_v38 = vpack.c.bf16 %v1288_v33, %v1288_v33  ;;  %v1265_v47 = vadd.f32 1.0, %v1959_v37  ;;  %v1179_v21 = vmul.f32 %v1163_v56, %v2906_v24  ;;  %v1170_v11 = vmul.f32 %v2923_v17, %v2923_v17 }
 0x136   : > { %v1305_v41 = vpack.c.bf16 %v1289_v7, %v1289_v7  ;;  %v1264_v40 = vadd.f32 1.0, %v1961_v6  ;;  %v1194_v23 = vmul.f32 0.044715, %v1178_v43  ;;  %v1187_v50 = vmul.f32 %v1171_v55, %v2912_v52 }
 0x137   : > { %v1356_v10 = vunpack.c.l.b16 %v1304_v38  ;;  %v1281_v13 = vmul.f32 0.5, %v1265_v47  ;;  %v1195_v53 = vmul.f32 0.044715, %v1179_v21  ;;  %v1186_v45 = vmul.f32 %v1170_v11, %v2923_v17 }
 0x138   : > { %v1357_v34 = vunpack.c.l.b16 %v1305_v41  ;;  %v1280_v35 = vmul.f32 0.5, %v1264_v40  ;;  %v1210_v8 = vadd.f32 %v1194_v23, %v2901_v12  ;;  %v1203_v26 = vmul.f32 0.044715, %v1187_v50 }
 0x139   : > { %v1297_v49 = vmul.f32 %v1281_v13, %v2861_v57  ;;  %v1211_v28 = vadd.f32 %v1195_v53, %v2906_v24  ;;  %v1202_v54 = vmul.f32 0.044715, %v1186_v45  ;;  %v1197_v39 = vmul.f32 0.044715, %v1181_v4 }
 0x13a   : > { %v1370_v16 = vpack.c.b16 %v1357_v34, %v1356_v10  ;;  %v1296_v44 = vmul.f32 %v1280_v35, %v2869_v5  ;;  %v1226_v20 = vmul.f32 0.7978846, %v1210_v8  ;;  %v1219_v60 = vadd.f32 %v1203_v26, %v2912_v52 }
 0x13b   : > { %v1313_v59 = vpack.c.bf16 %v1297_v49, %v1297_v49  ;;  %v1227_v29 = vmul.f32 0.7978846, %v1211_v28  ;;  %v1218_v9 = vadd.f32 %v1202_v54, %v2923_v17  ;;  %v1212_v3 = vadd.f32 %v1196_v46, %v2894_v30 }
 0x13c   : > { %v1312_v62 = vpack.c.bf16 %v1296_v44, %v1296_v44  ;;  %1962 = vtanh.f32 %v1226_v20  ;;  %v1235_v22 = vmul.f32 0.7978846, %v1219_v60  ;;  %v1213_v57 = vadd.f32 %v1197_v39, %v2898_v27 }
 0x13d   : > { %v1365_v63 = vunpack.c.l.b16 %v1313_v59  ;;  %1964 = vtanh.f32 %v1227_v29  ;;  %v1234_v32 = vmul.f32 0.7978846, %v1218_v9  ;;  %v1228_v58 = vmul.f32 0.7978846, %v1212_v3 }
 0x13e   : > { %v1364_v42 = vunpack.c.l.b16 %v1312_v62  ;;  %1966 = vtanh.f32 %v1235_v22  ;;  %v1229_v5 = vmul.f32 0.7978846, %v1213_v57 }
 0x13f   : > { %1968 = vtanh.f32 %v1234_v32 }
 0x140   : > { %v1374_v36 = vpack.c.b16 %v1365_v63, %v1364_v42  ;;  %1970 = vtanh.f32 %v1228_v58 }
 0x141   : > { %1450 = vmatmul.bf16.gmra.mxu1 %v1370_v16  ;;  %1972 = vtanh.f32 %v1229_v5 }
 0x142   : > { %v1963_v61 = vpop.eup %1962  ;;  %1470 = vmatmul.bf16.gmra.mxu3 %v1374_v36 }
 0x143   : > { %v1965_v14 = vpop.eup %1964  ;;  %v1258_v0 = vadd.f32 1.0, %v1963_v61 }
 0x144   : > { %v1967_v18 = vpop.eup %1966  ;;  %v1259_v2 = vadd.f32 1.0, %v1965_v14 }
 0x145   : > { %v1969_v19 = vpop.eup %1968  ;;  %v1274_v15 = vmul.f32 0.5, %v1258_v0  ;;  %v1267_v51 = vadd.f32 1.0, %v1967_v18 }
 0x146   : > { %v1971_v48 = vpop.eup %1970  ;;  %v1275_v1 = vmul.f32 0.5, %v1259_v2  ;;  %v1266_v31 = vadd.f32 1.0, %v1969_v19 }
 0x147   : > { %v1973_v25 = vpop.eup %1972  ;;  %v1290_v33 = vmul.f32 %v1274_v15, %v2901_v12  ;;  %v1283_v56 = vmul.f32 0.5, %v1267_v51  ;;  %v1260_v55 = vadd.f32 1.0, %v1971_v48 }
 0x148   : > { %v1291_v37 = vmul.f32 %v1275_v1, %v2906_v24  ;;  %v1282_v7 = vmul.f32 0.5, %v1266_v31  ;;  %v1261_v43 = vadd.f32 1.0, %v1973_v25 }
 0x149   : > { %v1306_v4 = vpack.c.bf16 %v1290_v33, %v1290_v33  ;;  %v1299_v46 = vmul.f32 %v1283_v56, %v2912_v52  ;;  %v1276_v6 = vmul.f32 0.5, %v1260_v55 }
 0x14a   : > { %v1307_v38 = vpack.c.bf16 %v1291_v37, %v1291_v37  ;;  %v1298_v47 = vmul.f32 %v1282_v7, %v2923_v17  ;;  %v1277_v21 = vmul.f32 0.5, %v1261_v43 }
 0x14b   : > { %v1358_v11 = vunpack.c.l.b16 %v1306_v4  ;;  %v1315_v41 = vpack.c.bf16 %v1299_v46, %v1299_v46  ;;  %v1292_v40 = vmul.f32 %v1276_v6, %v2894_v30  ;;  %v1941_v30 = vld [vmem:[%s2990_s8] ss:$0 sm:$0xff] }
 0x14c   : > { %v1359_v23 = vunpack.c.l.b16 %v1307_v38  ;;  %v1314_v12 = vpack.c.bf16 %v1298_v47, %v1298_v47  ;;  %v1293_v50 = vmul.f32 %v1277_v21, %v2898_v27 }
 0x14d   : > { %v1367_v10 = vunpack.c.l.b16 %v1315_v41  ;;  %v1308_v24 = vpack.c.bf16 %v1292_v40, %v1292_v40 }
 0x14e   : > { %v1371_v13 = vpack.c.b16 %v1359_v23, %v1358_v11  ;;  %v1366_v53 = vunpack.c.l.b16 %v1314_v12  ;;  %v1309_v45 = vpack.c.bf16 %v1293_v50, %v1293_v50 }
 0x14f   : > { %v1360_v52 = vunpack.c.l.b16 %v1308_v24 }
 0x150   : > { %v1375_v34 = vpack.c.b16 %v1367_v10, %v1366_v53  ;;  %v1361_v35 = vunpack.c.l.b16 %v1309_v45 }
 0x151   : > { %1455 = vmatmul.bf16.gmra.mxu1 %v1371_v13 }
 0x152   : > { %1475 = vmatmul.bf16.gmra.mxu3 %v1375_v34  ;;  %v1372_v17 = vpack.c.b16 %v1361_v35, %v1360_v52 }
 0x161   : > { %1460 = vmatmul.bf16.gmra.mxu1 %v1372_v17 }
 0x19e   : > { %v1441_v8 = vpop.f32.mrf.mxu1 }
 0x19f   : > { %v1442_v27 = vadd.f32 %v1941_v30, %v1441_v8 }
 0x1a6   : > { %v1443_v26 = vpop.f32.mrf.mxu1 }
 0x1a7   : > { %v1444_v49 = vadd.f32 %v1941_v30, %v1443_v26 }
 0x1a9   : > { %v1837_v28 = vpack.c.bf16 %v1444_v49, %v1442_v27 }
 0x1ab   : > { %1838 = vst [vmem:[%s2957_s16] sm:$0xff] %v1837_v28  }
 0x1ae   : > { %v1446_v54 = vpop.f32.mrf.mxu1 }
 0x1af   : > { %v1447_v44 = vadd.f32 %v1941_v30, %v1446_v54 }
 0x1b5   : > { %v1466_v39 = vpop.f32.mrf.mxu3 }
 0x1b6   : > { %v1448_v16 = vpop.f32.mrf.mxu1  ;;  %v1467_v29 = vadd.f32 %v1941_v30, %v1466_v39 }
 0x1b7   : > { %v1449_v20 = vadd.f32 %v1941_v30, %v1448_v16 }
 0x1b9   : > { %v1842_v60 = vpack.c.bf16 %v1449_v20, %v1447_v44 }
 0x1bb   : > { %1874 = vst [vmem:[%s2957_s16 + $0x8] sm:$0xff] %v1842_v60  }
 0x1bd   : > { %v1468_v59 = vpop.f32.mrf.mxu3 }
 0x1be   : > { %v1451_v9 = vpop.f32.mrf.mxu1  ;;  %v1469_v3 = vadd.f32 %v1941_v30, %v1468_v59 }
 0x1bf   : > { %v1452_v63 = vadd.f32 %v1941_v30, %v1451_v9 }
 0x1c0   : > { %v1862_v62 = vpack.c.bf16 %v1469_v3, %v1467_v29 }
 0x1c2   : > { %1878 = vst [vmem:[%s2957_s16 + $0x28] sm:$0xff] %v1862_v62  }
 0x1c5   : > { %v1471_v22 = vpop.f32.mrf.mxu3 }
 0x1c6   : > { %v1453_v57 = vpop.f32.mrf.mxu1  ;;  %v1472_v5 = vadd.f32 %v1941_v30, %v1471_v22 }
 0x1c7   : > { %v1454_v32 = vadd.f32 %v1941_v30, %v1453_v57 }
 0x1c9   : > { %v1847_v58 = vpack.c.bf16 %v1454_v32, %v1452_v63 }
 0x1cb   : > { %1875 = vst [vmem:[%s2957_s16 + $0x10] sm:$0xff] %v1847_v58  }
 0x1cd   : > { %v1473_v42 = vpop.f32.mrf.mxu3 }
 0x1ce   : > { %v1456_v36 = vpop.f32.mrf.mxu1  ;;  %v1474_v61 = vadd.f32 %v1941_v30, %v1473_v42 }
 0x1cf   : > { %v1457_v2 = vadd.f32 %v1941_v30, %v1456_v36 }
 0x1d0   : > { %v1867_v14 = vpack.c.bf16 %v1474_v61, %v1472_v5 }
 0x1d2   : > { %1879 = vst [vmem:[%s2957_s16 + $0x30] sm:$0xff] %v1867_v14  }
 0x1d5   : > { %v1476_v0 = vpop.f32.mrf.mxu3 }
 0x1d6   : > { %v1458_v18 = vpop.f32.mrf.mxu1  ;;  %v1477_v48 = vadd.f32 %v1941_v30, %v1476_v0 }
 0x1d7   : > { %v1459_v19 = vadd.f32 %v1941_v30, %v1458_v18 }
 0x1d9   : > { %v1852_v15 = vpack.c.bf16 %v1459_v19, %v1457_v2 }
 0x1db   : > { %1876 = vst [vmem:[%s2957_s16 + $0x18] sm:$0xff] %v1852_v15  }
 0x1dd   : > { %v1478_v51 = vpop.f32.mrf.mxu3 }
 0x1de   : > { %v1461_v1 = vpop.f32.mrf.mxu1  ;;  %v1479_v31 = vadd.f32 %v1941_v30, %v1478_v51 }
 0x1df   : > { %v1462_v56 = vadd.f32 %v1941_v30, %v1461_v1 }
 0x1e0   : > { %v1872_v25 = vpack.c.bf16 %v1479_v31, %v1477_v48 }
 0x1e2   : > { %1880 = vst [vmem:[%s2957_s16 + $0x38] sm:$0xff] %v1872_v25  }
 0x1e6   : > { %v1463_v33 = vpop.f32.mrf.mxu1 }
 0x1e7   : > { %v1464_v55 = vadd.f32 %v1941_v30, %v1463_v33 }
 0x1e9   : > { %v1857_v37 = vpack.c.bf16 %v1464_v55, %v1462_v56 }
 0x1eb   : > { %1877 = vst [vmem:[%s2957_s16 + $0x20] sm:$0xff] %v1857_v37  }
 0x1ec PF: > { %s19_s13 = sadd.s32 1, %s2012_s13   ;;  %s3055_s26 = sld [smem:[#allocation2_spill]] }
 0x1ed   : > { %p16_p12 = scmp.ge.s32.totalorder %s19_s13, 6   ;;  %s3056_s30 = smov %s2004_s11 }
 0x1ee   : > { %s3057_s10 = smov %s2008_s12  ;;  %s3058_s11 = smov %s3061_s14 }
 0x1ef   :  { %18 = sbr.rel (!%p16_p12) target bundleno = 3 (0x3), region = 92 }
 0x1f2   : > { %s3059_s12 = smov %s3055_s26 }

// kernel: _mlp2_impl.1
= control target key start
LH: loop header
LB: loop body
LE: loop exit
PB: predicated region body
PF: predicated region fallthrough
CT: control target
= control target key end

     0   :  { %s2066_s30 = smov 0   ;;  %s2068_s10 = smov 0   ;;  %s2982_s0 = inlined_call_operand.vmem [shape: bf16[2,16,16,128], index: 0, kind: input, shape index: {}, may-alias: {0,1,2}]   ;;  %s2983_s1 = inlined_call_operand.vmem [shape: bf16[2,16,16,128], index: 1, kind: input, shape index: {}, may-alias: {0,1,2}]   ;;  %s2984_s2 = inlined_call_operand.vmem [shape: bf16[2,16,16,128], index: 2, kind: input, shape index: {}, may-alias: {0,1,2}]   ;;  %s2985_s3 = inlined_call_operand.vmem [shape: bf16[128,128], index: 3, kind: input, shape index: {}]   ;;  %s2986_s4 = inlined_call_operand.vmem [shape: f32[1,128], index: 4, kind: input, shape index: {}]   ;;  %s2987_s5 = inlined_call_operand.vmem [shape: f32[3,3,128], index: 5, kind: input, shape index: {}]   ;;  %s2988_s6 = inlined_call_operand.vmem [shape: f32[1,128], index: 6, kind: input, shape index: {}]   ;;  %s2989_s7 = inlined_call_operand.vmem [shape: bf16[128,128], index: 7, kind: input, shape index: {}]   ;;  %s2990_s8 = inlined_call_operand.vmem [shape: f32[1,128], index: 8, kind: input, shape index: {}]   ;;  %s2991_s9 = inlined_call_operand.vmem [shape: bf16[2,16,16,128], index: 9, kind: output, shape index: {}]  }
   0x1   :  { %s2070_s11 = smov 0   ;;  %s2072_s12 = smov 0  }
   0x2   :  { %s2074_s13 = smov 0  }
   0x3 LB: > { %s28_s14 = sadd.s32 1, %s2004_s11  ;;  %s31_s15 = sadd.s32 1, %s2008_s12  ;;  %s2012_s13 = sphi %s2074_s13, %s19_s13   ;;  %s2008_s12 = sphi %s2072_s12, %s3059_s12   ;;  %s2004_s11 = sphi %s2070_s11, %s3058_s11   ;;  %s2000_s10 = sphi %s2068_s10, %s3057_s10   ;;  %s1996_s30 = sphi %s2066_s30, %s3056_s30  }
   0x4   : > { %p29_p0 = scmp.ge.s32.totalorder %s28_s14, 2  ;;  %p1664_p1 = scmp.ge.s32.totalorder %s2012_s13, 1 }
   0x5   : > { %p373_p2 = scmp.lt.s32.totalorder %s2012_s13, 5 }
   0x6   : > { %s3061_s14 = smov (%p29_p0, %s28_s14), 0  ;;  %s3063_s15 = smov (!%p29_p0, %s31_s15), %s2008_s12 }
   0x7   : > { %p374_p3 = pnand %p1664_p1, %p373_p2  ;;  %p33_p4 = scmp.ge.s32.totalorder %s3063_s15, 2 }
   0x9   : > { %s3065_s15 = smov (%p33_p4, %s3063_s15), 0  ;;  %377 = sbr.rel (%p374_p3) target bundleno = 492 (0x1ec), region = 56 }
   0xa   : > { %3003 = sst [smem:[#allocation2_spill]] %s3065_s15 }
   0xe   : > { %v1825_v0 = vld [vmem:[%s2985_s3 + $0x38] sm:$0xff]  ;;  %s1665_s18 = sshll.u32 %s1996_s30, 3  ;;  %p446_p5 = scmp.lt.s32.totalorder %s2000_s10, 1  ;;  %v1824_v1 = vld [vmem:[%s2985_s3 + $0x30] sm:$0xff]  ;;  %v1823_v2 = vld [vmem:[%s2985_s3 + $0x28] sm:$0xff]  ;;  %v763_v19 = vlaneseq  ;;  %vm2014_vm1 = vmmov 1  }
   0xf   : > { %649 = vmatpush.bf16.msra.mxu0 %v1825_v0  ;;  %1881 = vmatpush.bf16.msra.mxu2 %v1825_v0  ;;  %s1670_s21 = sadd.s32 4294967295, %s1665_s18  ;;  %s1807_s24 = sadd.s32 8, %s1665_s18  ;;  %v1822_v3 = vld [vmem:[%s2985_s3 + $0x20] sm:$0xff]  ;;  %v1821_v4 = vld [vmem:[%s2985_s3 + $0x18] sm:$0xff]  ;;  %v1820_v5 = vld [vmem:[%s2985_s3 + $0x10] sm:$0xff]  ;;  %v2992_v24 = vmov 0.0  }
  0x10   : > { %s3067_s10 = smov (!%p446_p5, %s2000_s10), 1  ;;  %p458_p6 = scmp.gt.s32.totalorder %s1670_s21, 0  ;;  %v1819_v6 = vld [vmem:[%s2985_s3 + $0x8] sm:$0xff]  ;;  %v1818_v7 = vld [vmem:[%s2985_s3] sm:$0xff]  ;;  %v2162_v21 = vshrl.u32 %v763_v19, 7 }
  0x11   : > { %p448_p7 = scmp.lt.s32.totalorder %s1665_s18, 15  ;;  %p2108_p8 = scmp.lt.s32.totalorder %s1807_s24, 15  ;;  %v2160_v20 = vld [vmem:[%s2986_s4] ss:$0 sm:$0xff]  ;;  %v828_v30 = vld [vmem:[%s2987_s5 + $0x4] sm:$0x7] }
  0x12   : > { %p1671_p9 = scmp.lt.s32.totalorder %s1670_s21, 15  ;;  %s3069_s21 = smov (!%p458_p6, %s1670_s21), 0  ;;  %v827_v26 = vld [vmem:[%s2987_s5] sm:$0x7]  ;;  %v830_v27 = vadd.s32 8, %v2162_v21  ;;  %vm831_vm3 = vcmp.gt.s32.totalorder %v2162_v21, 0 }
  0x13   : > { %650 = vmatpush.bf16.msra.mxu0 %v1824_v1  ;;  %1882 = vmatpush.bf16.msra.mxu2 %v1824_v1  ;;  %s3071_s24 = smov (!%p2108_p8, %s1807_s24), 15  ;;  %s3073_s18 = smov (!%p448_p7, %s1665_s18), 15  ;;  %v2172_v29 = vperm.slane %v827_v26, 1  ;;  %v829_v32 = vld [vmem:[%s2987_s5 + $0x8] sm:$0x7]  ;;  %v2180_v33 = vperm.slane %v827_v26, 0 }
  0x14   : > { %s3075_s24 = smov (!%p2108_p8, %s3071_s24), 15  ;;  %s3077_s21 = smov (!%p1671_p9, %s3069_s21), 15  ;;  %vm838_vm4 = vcmp.lt.s32.totalorder %v830_v27, 15  ;;  %v2182_v34 = vperm.slane %v828_v30, 0  ;;  %v1764_v36 = vsel %vm831_vm3, 1.0, %v2992_v24  ;;  %v2186_v37 = vperm.slane %v827_v26, 2 }
  0x15   : > { %s2122_s16 = sshll.u32 %s3067_s10, 5  ;;  %s2124_s17 = sshll.u32 %s3075_s24, 1  ;;  %v2188_v38 = vperm.slane %v828_v30, 2  ;;  %v2190_v39 = vperm.slane %v829_v32, 0  ;;  %v1765_v41 = vsel %vm838_vm4, 1.0, %v2992_v24  ;;  %v2199_v44 = vperm.slane %v829_v32, 2 }
  0x16   : > { %s1666_s20 = sshll.u32 %s3073_s18, 1  ;;  %s1676_s22 = sshll.u32 %s3077_s21, 1  ;;  %v2196_v42 = vld [vmem:[%s2988_s6] ss:$0 sm:$0xff]  ;;  %vm765_vm5 = vcmp.lt.s32.totalorder %v2162_v21, 1  ;;  %v2203_v46 = vperm.slane %v828_v30, 1  ;;  %v2210_v49 = vmul.f32 %v1764_v36, %v2180_v33  ;;  %v2213_v50 = vmul.f32 %v1764_v36, %v2182_v34 }
  0x17   : > { %651 = vmatpush.bf16.msra.mxu0 %v1823_v2  ;;  %1883 = vmatpush.bf16.msra.mxu2 %v1823_v2  ;;  %s2132_s26 = sadd.s32 %s2122_s16, %s1666_s20  ;;  %s466_s10 = sadd.s32 %s1676_s22, %s2122_s16  ;;  %v2205_v47 = vperm.slane %v829_v32, 1  ;;  %vm806_vm6 = vcmp.lt.s32.totalorder %v2162_v21, 7  ;;  %v2217_v52 = vmul.f32 %v1765_v41, %v2186_v37  ;;  %v2220_v53 = vmul.f32 %v1765_v41, %v2188_v38 }
  0x18   : > { %s1668_s28 = sshll.u32 %s2132_s26, 2  ;;  %s1678_s18 = sshll.u32 %s466_s10, 2  ;;  %v2223_v54 = vmul.f32 %v1764_v36, %v2190_v39  ;;  %v2227_v59 = vmul.f32 %v1765_v41, %v2199_v44 }
  0x19   : > { %s454_s25 = scalar_lea.vmem %s2982_s0, %s1668_s28  ;;  %s468_s15 = scalar_lea.vmem %s2983_s1, %s1678_s18 }
  0x1a   : > { %v1808_v8 = vld [vmem:[%s468_s15] sm:$0xff]  ;;  %v1812_v9 = vld [vmem:[%s454_s25 + $0x18] sm:$0xff]  ;;  %v1810_v12 = vld [vmem:[%s454_s25 + $0x8] sm:$0xff]  ;;  %s3005_s15 = sadd.s32 %s2124_s17, %s2122_s16  ;;  %p708_p10 = scmp.eq.s32.totalorder %s1996_s30, 0 }
  0x1b   : > { %652 = vmatpush.bf16.msra.mxu0 %v1822_v3  ;;  %1884 = vmatpush.bf16.msra.mxu2 %v1822_v3  ;;  %v1809_v10 = vld [vmem:[%s454_s25] sm:$0xff]  ;;  %v1814_v13 = vld [vmem:[%s454_s25 + $0x28] sm:$0xff]  ;;  %v1811_v14 = vld [vmem:[%s454_s25 + $0x10] sm:$0xff]  ;;  %s1685_s19 = sshll.u32 %s3005_s15, 2  ;;  %p712_p11 = scmp.eq.s32.totalorder %s1996_s30, 1 }
  0x1c   : > { %v1813_v11 = vld [vmem:[%s454_s25 + $0x20] sm:$0xff]  ;;  %v1815_v15 = vld [vmem:[%s454_s25 + $0x30] sm:$0xff]  ;;  %v1816_v16 = vld [vmem:[%s454_s25 + $0x38] sm:$0xff]  ;;  %s485_s24 = scalar_lea.vmem %s2984_s2, %s1685_s19  ;;  %s2957_s16 = scalar_lea.vmem %s2991_s9, %s1668_s28 }
  0x1d   : > { %v1817_v17 = vld [vmem:[%s485_s24] sm:$0xff]  ;;  %s709_s18 = scalar_select %p708_p10, 1, 0 }
  0x1e   : > { %s713_s24 = scalar_select %p712_p11, 1, 0 }
  0x1f   : > { %653 = vmatpush.bf16.msra.mxu0 %v1821_v4  ;;  %1885 = vmatpush.bf16.msra.mxu2 %v1821_v4  ;;  %v710_v18 = vstv %s709_s18 }
  0x20   : > { %vm711_vm0 = vcmp.eq.s32.totalorder %v710_v18, 1 }
  0x21   : > { %vm716_vm2 = vmxor %vm711_vm0, %vm2014_vm1 }
  0x22   : > { %v1762_v25 = vsel %vm716_vm2, 1.0, %v2992_v24 }
  0x23   : > { %654 = vmatpush.bf16.msra.mxu0 %v1820_v5  ;;  %1886 = vmatpush.bf16.msra.mxu2 %v1820_v5 }
  0x27   : > { %655 = vmatpush.bf16.msra.mxu0 %v1819_v6  ;;  %1887 = vmatpush.bf16.msra.mxu2 %v1819_v6 }
  0x2b   : > { %656 = vmatpush.bf16.msra.mxu0 %v1818_v7  ;;  %1888 = vmatpush.bf16.msra.mxu2 %v1818_v7 }
  0x2e   : > { %657 = vmatmul.bf16.vlgmr.msra.gmra.mxu0 %v1808_v8  ;;  %677 = vmatmul.bf16.vlgmr.msra.gmra.mxu2 %v1812_v9 }
  0x3e   : > { %662 = vmatmul.bf16.gmra.mxu0 %v1809_v10  ;;  %682 = vmatmul.bf16.gmra.mxu2 %v1813_v11 }
  0x4e   : > { %667 = vmatmul.bf16.gmra.mxu0 %v1810_v12  ;;  %687 = vmatmul.bf16.gmra.mxu2 %v1814_v13 }
  0x5e   : > { %672 = vmatmul.bf16.gmra.mxu0 %v1811_v14  ;;  %692 = vmatmul.bf16.gmra.mxu2 %v1815_v15 }
  0x6e   : > { %697 = vmatmul.bf16.gmra.mxu2 %v1816_v16 }
  0x7e   : > { %702 = vmatmul.bf16.gmra.mxu2 %v1817_v17 }
  0xab   : > { %v658_v22 = vpop.f32.mrf.mxu0 }
  0xac   : > { %v659_v23 = vadd.f32 %v2160_v20, %v658_v22 }
  0xae   : > { %v723_v28 = vmul.f32 %v1762_v25, %v659_v23 }
  0xb0   : > { %v848_v43 = vmul.f32 %v2172_v29, %v723_v28  ;;  %v743_v56 = vrot.slane %v723_v28, 7  ;;  %v786_v57 = vrot.slane %v723_v28, 1 }
  0xb1   : > { %v678_v31 = vpop.f32.mrf.mxu2 }
  0xb2   : > { %v679_v35 = vadd.f32 %v2160_v20, %v678_v31  ;;  %v864_v58 = vadd.f32 %v2196_v42, %v848_v43 }
  0xb3   : > { %v660_v40 = vpop.f32.mrf.mxu0 }
  0xb4   : > { %v856_v45 = vmul.f32 %v2172_v29, %v679_v35  ;;  %v661_v48 = vadd.f32 %v2160_v20, %v660_v40  ;;  %v747_v60 = vrot.slane %v679_v35, 7  ;;  %v790_v1 = vrot.slane %v679_v35, 1 }
  0xb5   : > { %v2231_v2 = vmul.f32 %v2203_v46, %v679_v35  ;;  %v2234_v3 = vmul.f32 %v2205_v47, %v679_v35 }
  0xb6   : > { %v872_v51 = vadd.f32 %v2196_v42, %v856_v45  ;;  %v724_v55 = vmul.f32 %v1762_v25, %v661_v48 }
  0xb7   : > { %3006 = vst [vmem:[#allocation3_spill] sm:$0xff] %v2231_v2 }
  0xb8   : > { %v753_v61 = vrot.slane %v724_v55, 7  ;;  %v796_v62 = vrot.slane %v724_v55, 1  ;;  %v849_v63 = vmul.f32 %v2172_v29, %v724_v55 }
  0xb9   : > { %v680_v0 = vpop.f32.mrf.mxu2 }
  0xba   : > { %v681_v4 = vadd.f32 %v2160_v20, %v680_v0  ;;  %v766_v5 = vsel %vm765_vm5, %v743_v56, %v753_v61  ;;  %v776_v6 = vsel %vm765_vm5, %v753_v61, %v743_v56  ;;  %v807_v7 = vsel %vm806_vm6, %v786_v57, %v796_v62 }
  0xbb   : > { %v817_v8 = vsel %vm806_vm6, %v796_v62, %v786_v57  ;;  %v663_v9 = vpop.f32.mrf.mxu0  ;;  %v865_v10 = vadd.f32 %v2196_v42, %v849_v63  ;;  %v883_v11 = vmul.f32 %v2210_v49, %v776_v6  ;;  %v884_v12 = vmul.f32 %v2180_v33, %v766_v5 }
  0xbc   : > { %v918_v13 = vmul.f32 %v2186_v37, %v807_v7  ;;  %v919_v14 = vmul.f32 %v2217_v52, %v817_v8  ;;  %v757_v15 = vrot.slane %v681_v4, 7  ;;  %v800_v16 = vrot.slane %v681_v4, 1 }
  0xbd   : > { %v857_v17 = vmul.f32 %v2172_v29, %v681_v4  ;;  %v900_v18 = vadd.f32 %v884_v12, %v865_v10  ;;  %v2252_v19 = vmul.f32 %v2203_v46, %v681_v4  ;;  %v2255_v22 = vmul.f32 %v2205_v47, %v681_v4 }
  0xbe   : > { %v664_v23 = vadd.f32 %v2160_v20, %v663_v9  ;;  %v2260_v25 = vsel %vm765_vm5, %v747_v60, %v757_v15  ;;  %v2264_v26 = vsel %vm765_vm5, %v757_v15, %v747_v60  ;;  %v2268_v27 = vsel %vm806_vm6, %v790_v1, %v800_v16 }
  0xbf   : > { %3007 = vst [vmem:[#allocation4_spill] sm:$0xff] %v2252_v19  ;;  %v2272_v28 = vsel %vm806_vm6, %v800_v16, %v790_v1  ;;  %v873_v30 = vadd.f32 %v2196_v42, %v857_v17  ;;  %v891_v31 = vmul.f32 %v2210_v49, %v2264_v26  ;;  %v892_v32 = vmul.f32 %v2180_v33, %v2260_v25  ;;  %v1833_v17 = vld [vmem:[%s2989_s7 + $0x38] sm:$0xff] }
  0xc0   : > { %3008 = vst [vmem:[#allocation5_spill] sm:$0xff] %v2268_v27  ;;  %v2281_v35 = vmul.f32 %v2213_v50, %v2264_v26  ;;  %v2285_v36 = vmul.f32 %v2182_v34, %v2260_v25  ;;  %v2289_v40 = vmul.f32 %v2188_v38, %v2268_v27  ;;  %v2293_v41 = vmul.f32 %v2220_v53, %v2272_v28 }
  0xc1   : > { %3009 = vst [vmem:[#allocation6_spill] sm:$0xff] %v2272_v28  ;;  %v744_v43 = vrot.slane %v664_v23, 7  ;;  %v683_v45 = vpop.f32.mrf.mxu2  ;;  %v908_v48 = vadd.f32 %v892_v32, %v873_v30  ;;  %v787_v55 = vrot.slane %v664_v23, 1  ;;  %v850_v56 = vmul.f32 %v2172_v29, %v664_v23  ;;  %1432 = vmatpush.bf16.msra.mxu1 %v1833_v17  ;;  %1889 = vmatpush.bf16.msra.mxu3 %v1833_v17 }
  0xc2   : > { %3010 = vst [vmem:[#allocation7_spill] sm:$0xff] %v2281_v35  ;;  %v899_v57 = vadd.f32 %v883_v11, %v864_v58  ;;  %v951_v60 = vmul.f32 %v2203_v46, %v664_v23  ;;  %v2298_v61 = vadd.f32 %v2160_v20, %v683_v45  ;;  %v907_v62 = vadd.f32 %v891_v31, %v872_v51 }
  0xc3   : > { %3011 = vst [vmem:[#allocation8_spill] sm:$0xff] %v2285_v36  ;;  %v926_v63 = vmul.f32 %v2186_v37, %v2268_v27  ;;  %v665_v0 = vpop.f32.mrf.mxu0  ;;  %v866_v1 = vadd.f32 %v2196_v42, %v850_v56  ;;  %v935_v6 = vadd.f32 %v919_v14, %v900_v18  ;;  %v927_v31 = vmul.f32 %v2217_v52, %v2272_v28 }
  0xc4   : > { %3012 = vst [vmem:[#allocation9_spill] sm:$0xff] %v2289_v40  ;;  %v934_v4 = vadd.f32 %v918_v13, %v899_v57  ;;  %v666_v5 = vadd.f32 %v2160_v20, %v665_v0  ;;  %v748_v7 = vrot.slane %v2298_v61, 7  ;;  %v791_v58 = vrot.slane %v2298_v61, 1 }
  0xc5   : > { %3013 = vst [vmem:[#allocation10_spill] sm:$0xff] %v2293_v41  ;;  %v858_v8 = vmul.f32 %v2172_v29, %v2298_v61  ;;  %v942_v9 = vadd.f32 %v926_v63, %v907_v62  ;;  %v959_v51 = vmul.f32 %v2203_v46, %v2298_v61  ;;  %v2312_v11 = vmul.f32 %v2205_v47, %v2298_v61 }
  0xc6   : > { %v967_v10 = vadd.f32 %v951_v60, %v934_v4  ;;  %v754_v12 = vrot.slane %v666_v5, 7  ;;  %v797_v14 = vrot.slane %v666_v5, 1  ;;  %v851_v15 = vmul.f32 %v2172_v29, %v666_v5 }
  0xc7   : > { %3014 = vst [vmem:[#allocation11_spill] sm:$0xff] %v2312_v11  ;;  %v2315_v13 = vadd.f32 %v2196_v42, %v858_v8  ;;  %v952_v16 = vmul.f32 %v2203_v46, %v666_v5  ;;  %v2322_v18 = vadd.f32 %v959_v51, %v942_v9  ;;  %v1832_v9 = vld [vmem:[%s2989_s7 + $0x30] sm:$0xff] }
  0xc8   : > { %v767_v23 = vsel %vm765_vm5, %v744_v43, %v754_v12  ;;  %v777_v30 = vsel %vm765_vm5, %v754_v12, %v744_v43  ;;  %v808_v32 = vsel %vm806_vm6, %v787_v55, %v797_v14  ;;  %v818_v45 = vsel %vm806_vm6, %v797_v14, %v787_v55  ;;  %1433 = vmatpush.bf16.msra.mxu1 %v1832_v9 }
  0xc9   : > { %v867_v56 = vadd.f32 %v2196_v42, %v851_v15  ;;  %v885_v57 = vmul.f32 %v2210_v49, %v777_v30  ;;  %v685_v60 = vpop.f32.mrf.mxu2  ;;  %v886_v61 = vmul.f32 %v2180_v33, %v767_v23  ;;  %v920_v62 = vmul.f32 %v2186_v37, %v808_v32  ;;  %1890 = vmatpush.bf16.msra.mxu3 %v1832_v9  ;;  %v1831_v9 = vld [vmem:[%s2989_s7 + $0x28] sm:$0xff] }
  0xca   : > { %v921_v43 = vmul.f32 %v2217_v52, %v818_v45  ;;  %v968_v63 = vadd.f32 %v952_v16, %v935_v6  ;;  %v986_v4 = vmul.f32 %v2213_v50, %v777_v30  ;;  %v987_v5 = vmul.f32 %v2182_v34, %v767_v23 }
  0xcb   : > { %v901_v0 = vadd.f32 %v885_v57, %v866_v1  ;;  %v1021_v55 = vmul.f32 %v2188_v38, %v808_v32  ;;  %v668_v8 = vpop.f32.mrf.mxu0  ;;  %v902_v51 = vadd.f32 %v886_v61, %v867_v56  ;;  %v1022_v12 = vmul.f32 %v2220_v53, %v818_v45 }
  0xcc   : > { %v686_v14 = vadd.f32 %v2160_v20, %v685_v60  ;;  %v943_v15 = vadd.f32 %v927_v31, %v908_v48  ;;  %v1002_v16 = vadd.f32 %v986_v4, %v967_v10  ;;  %v1003_v1 = vadd.f32 %v987_v5, %v968_v63  ;;  %1434 = vmatpush.bf16.msra.mxu1 %v1831_v9 }
  0xcd   : > { %v936_v6 = vadd.f32 %v920_v62, %v901_v0  ;;  %v2348_v17 = vadd.f32 %v2160_v20, %v668_v8  ;;  %v2350_v23 = vadd.f32 %v921_v43, %v902_v51  ;;  %1891 = vmatpush.bf16.msra.mxu3 %v1831_v9 }
  0xce   : > { %v758_v30 = vrot.slane %v686_v14, 7  ;;  %v801_v32 = vrot.slane %v686_v14, 1  ;;  %v859_v57 = vmul.f32 %v2172_v29, %v686_v14  ;;  %v1037_v56 = vadd.f32 %v1021_v55, %v1002_v16 }
  0xcf   : > { %v2353_v61 = vadd.f32 %v1022_v12, %v1003_v1  ;;  %v960_v45 = vmul.f32 %v2203_v46, %v686_v14  ;;  %v2357_v48 = vmul.f32 %v2205_v47, %v686_v14  ;;  %v745_v8 = vrot.slane %v2348_v17, 7 }
  0xd0   : > { %v2361_v10 = vsel %vm765_vm5, %v748_v7, %v758_v30  ;;  %v2365_v31 = vsel %vm765_vm5, %v758_v30, %v748_v7  ;;  %v2369_v60 = vsel %vm806_vm6, %v791_v58, %v801_v32  ;;  %v2373_v62 = vsel %vm806_vm6, %v801_v32, %v791_v58 }
  0xd1   : > { %3015 = vst [vmem:[#allocation12_spill] sm:$0xff] %v2357_v48  ;;  %v875_v43 = vadd.f32 %v2196_v42, %v859_v57  ;;  %v893_v63 = vmul.f32 %v2210_v49, %v2365_v31  ;;  %v894_v0 = vmul.f32 %v2180_v33, %v2361_v10  ;;  %v976_v4 = vadd.f32 %v960_v45, %v943_v15  ;;  %v688_v5 = vpop.f32.mrf.mxu2 }
  0xd2   : > { %3016 = vst [vmem:[#allocation13_spill] sm:$0xff] %v2361_v10  ;;  %v994_v7 = vmul.f32 %v2213_v50, %v2365_v31  ;;  %v995_v55 = vmul.f32 %v2182_v34, %v2361_v10  ;;  %v788_v58 = vrot.slane %v2348_v17, 1  ;;  %v852_v12 = vmul.f32 %v2172_v29, %v2348_v17 }
  0xd3   : > { %3017 = vst [vmem:[#allocation14_spill] sm:$0xff] %v2365_v31  ;;  %v910_v51 = vadd.f32 %v894_v0, %v875_v43  ;;  %v953_v14 = vmul.f32 %v2203_v46, %v2348_v17  ;;  %v1054_v15 = vmul.f32 %v2205_v47, %v2348_v17  ;;  %v670_v16 = vpop.f32.mrf.mxu0  ;;  %v2396_v30 = vadd.f32 %v2160_v20, %v688_v5 }
  0xd4   : > { %3018 = vst [vmem:[#allocation15_spill] sm:$0xff] %v2369_v60  ;;  %v1011_v1 = vadd.f32 %v995_v55, %v976_v4  ;;  %v909_v32 = vadd.f32 %v893_v63, %v2315_v13  ;;  %v928_v57 = vmul.f32 %v2186_v37, %v2369_v60  ;;  %v2402_v45 = vadd.f32 %v2196_v42, %v852_v12  ;;  %v1830_v55 = vld [vmem:[%s2989_s7 + $0x20] sm:$0xff] }
  0xd5   : > { %3019 = vst [vmem:[#allocation16_spill] sm:$0xff] %v2373_v62  ;;  %v2404_v43 = vadd.f32 %v953_v14, %v936_v6  ;;  %v2406_v0 = vadd.f32 %v1054_v15, %v1037_v56  ;;  %v1010_v17 = vadd.f32 %v994_v7, %v2322_v18  ;;  %v749_v4 = vrot.slane %v2396_v30, 7  ;;  %1435 = vmatpush.bf16.msra.mxu1 %v1830_v55  ;;  %v1829_v15 = vld [vmem:[%s2989_s7 + $0x18] sm:$0xff] }
  0xd6   : > { %v792_v5 = vrot.slane %v2396_v30, 1  ;;  %v860_v13 = vmul.f32 %v2172_v29, %v2396_v30  ;;  %v944_v63 = vadd.f32 %v928_v57, %v909_v32  ;;  %v961_v6 = vmul.f32 %v2203_v46, %v2396_v30  ;;  %1892 = vmatpush.bf16.msra.mxu3 %v1830_v55 }
  0xd7   : > { %v1029_v56 = vmul.f32 %v2188_v38, %v2369_v60  ;;  %v1062_v18 = vmul.f32 %v2205_v47, %v2396_v30  ;;  %v671_v7 = vadd.f32 %v2160_v20, %v670_v16  ;;  %v929_v12 = vmul.f32 %v2217_v52, %v2373_v62 }
  0xd8   : > { %v2424_v9 = vadd.f32 %v2196_v42, %v860_v13  ;;  %v1030_v14 = vmul.f32 %v2220_v53, %v2373_v62  ;;  %v2435_v32 = vmul.f32 %v2223_v54, %v2264_v26  ;;  %v2437_v30 = vadd.f32 %v961_v6, %v944_v63 }
  0xd9   : > { %v1045_v16 = vadd.f32 %v1029_v56, %v1010_v17  ;;  %v755_v57 = vrot.slane %v671_v7, 7  ;;  %v798_v13 = vrot.slane %v671_v7, 1  ;;  %v690_v24 = vpop.f32.mrf.mxu2  ;;  %v853_v48 = vmul.f32 %v2172_v29, %v671_v7  ;;  %1436 = vmatpush.bf16.msra.mxu1 %v1829_v15 }
  0xda   : > { %3020 = vst [vmem:[#allocation17_spill] sm:$0xff] %v2435_v32  ;;  %v954_v11 = vmul.f32 %v2203_v46, %v671_v7  ;;  %v1055_v41 = vmul.f32 %v2205_v47, %v671_v7  ;;  %v691_v40 = vadd.f32 %v2160_v20, %v690_v24  ;;  %1893 = vmatpush.bf16.msra.mxu3 %v1829_v15 }
  0xdb   : > { %v2443_v36 = vadd.f32 %v1062_v18, %v1045_v16  ;;  %v2447_v26 = vsel %vm765_vm5, %v745_v8, %v755_v57  ;;  %v2451_v17 = vsel %vm765_vm5, %v755_v57, %v745_v8  ;;  %v2455_v63 = vsel %vm806_vm6, %v788_v58, %v798_v13  ;;  %v1828_v8 = vld [vmem:[%s2989_s7 + $0x10] sm:$0xff]  ;;  %v673_v16 = vpop.f32.mrf.mxu0 }
  0xdc   : > { %v2459_v55 = vsel %vm806_vm6, %v798_v13, %v788_v58  ;;  %v869_v24 = vadd.f32 %v2196_v42, %v853_v48  ;;  %v887_v6 = vmul.f32 %v2210_v49, %v2451_v17  ;;  %v888_v56 = vmul.f32 %v2180_v33, %v2447_v26 }
  0xdd   : > { %3021 = vst [vmem:[#allocation18_spill] sm:$0xff] %v2443_v36  ;;  %v970_v18 = vadd.f32 %v954_v11, %v2350_v23  ;;  %v988_v7 = vmul.f32 %v2213_v50, %v2451_v17  ;;  %v989_v58 = vmul.f32 %v2182_v34, %v2447_v26  ;;  %v2475_v48 = vadd.f32 %v1055_v41, %v2353_v61 }
  0xde   : > { %v2477_v57 = vadd.f32 %v888_v56, %v869_v24  ;;  %v759_v13 = vrot.slane %v691_v40, 7  ;;  %v802_v35 = vrot.slane %v691_v40, 1  ;;  %v861_v19 = vmul.f32 %v2172_v29, %v691_v40  ;;  %1437 = vmatpush.bf16.msra.mxu1 %v1828_v8  ;;  %1894 = vmatpush.bf16.msra.mxu3 %v1828_v8 }
  0xdf   : > { %v2480_v2 = vadd.f32 %v989_v58, %v970_v18  ;;  %v945_v11 = vadd.f32 %v929_v12, %v910_v51  ;;  %v962_v23 = vmul.f32 %v2203_v46, %v691_v40  ;;  %v1046_v36 = vadd.f32 %v1030_v14, %v1011_v1  ;;  %v1827_v51 = vld [vmem:[%s2989_s7 + $0x8] sm:$0xff] }
  0xe0   : > { %v2485_v62 = vsel %vm765_vm5, %v749_v4, %v759_v13  ;;  %v2489_v41 = vsel %vm765_vm5, %v759_v13, %v749_v4  ;;  %v2493_v61 = vsel %vm806_vm6, %v792_v5, %v802_v35  ;;  %v2497_v15 = vsel %vm806_vm6, %v802_v35, %v792_v5 }
  0xe1   : > { %3022 = vst [vmem:[#allocation19_spill] sm:$0xff] %v2485_v62  ;;  %v877_v1 = vadd.f32 %v2196_v42, %v861_v19  ;;  %v895_v12 = vmul.f32 %v2210_v49, %v2489_v41  ;;  %v896_v4 = vmul.f32 %v2180_v33, %v2485_v62  ;;  %v978_v14 = vadd.f32 %v962_v23, %v945_v11  ;;  %v693_v24 = vpop.f32.mrf.mxu2 }
  0xe2   : > { %3023 = vst [vmem:[#allocation20_spill] sm:$0xff] %v2489_v41  ;;  %v996_v35 = vmul.f32 %v2213_v50, %v2489_v41  ;;  %v997_v5 = vmul.f32 %v2182_v34, %v2485_v62  ;;  %v1063_v56 = vmul.f32 %v2205_v47, %v691_v40  ;;  %v2513_v18 = vadd.f32 %v2160_v20, %v673_v16  ;;  %v1826_v16 = vld [vmem:[%s2989_s7] sm:$0xff] }
  0xe3   : > { %3024 = vst [vmem:[#allocation21_spill] sm:$0xff] %v2493_v61  ;;  %v2515_v19 = vadd.f32 %v896_v4, %v877_v1  ;;  %v903_v58 = vadd.f32 %v887_v6, %v2402_v45  ;;  %v922_v13 = vmul.f32 %v2186_v37, %v2455_v63  ;;  %v1004_v8 = vadd.f32 %v988_v7, %v2404_v43  ;;  %v675_v40 = vpop.f32.mrf.mxu0 }
  0xe4   : > { %3025 = vst [vmem:[#allocation22_spill] sm:$0xff] %v2497_v15  ;;  %v2521_v11 = vadd.f32 %v997_v5, %v978_v14  ;;  %v2523_v23 = vadd.f32 %v1063_v56, %v1046_v36  ;;  %v746_v62 = vrot.slane %v2513_v18, 7  ;;  %1438 = vmatpush.bf16.msra.mxu1 %v1827_v51  ;;  %v854_v45 = vmul.f32 %v2172_v29, %v2513_v18 }
  0xe5   : > { %v938_v6 = vadd.f32 %v922_v13, %v903_v58  ;;  %v955_v43 = vmul.f32 %v2203_v46, %v2513_v18  ;;  %v1023_v36 = vmul.f32 %v2188_v38, %v2455_v63  ;;  %1895 = vmatpush.bf16.msra.mxu3 %v1827_v51  ;;  %v1056_v7 = vmul.f32 %v2205_v47, %v2513_v18 }
  0xe6   : > { %3026 = vst [vmem:[#allocation23_spill] sm:$0xff] %v2523_v23  ;;  %v2539_v1 = vadd.f32 %v2160_v20, %v693_v24  ;;  %v911_v4 = vadd.f32 %v895_v12, %v2424_v9  ;;  %v930_v14 = vmul.f32 %v2186_v37, %v2493_v61  ;;  %v870_v5 = vadd.f32 %v2196_v42, %v854_v45 }
  0xe7   : > { %v2545_v56 = vadd.f32 %v955_v43, %v938_v6  ;;  %v1039_v58 = vadd.f32 %v1023_v36, %v1004_v8  ;;  %v1012_v13 = vadd.f32 %v996_v35, %v2437_v30  ;;  %v1031_v8 = vmul.f32 %v2188_v38, %v2493_v61 }
  0xe8   : > { %v750_v51 = vrot.slane %v2539_v1, 7  ;;  %v862_v24 = vmul.f32 %v2172_v29, %v2539_v1  ;;  %v946_v41 = vadd.f32 %v930_v14, %v911_v4  ;;  %1439 = vmatpush.bf16.msra.mxu1 %v1826_v16  ;;  %v963_v12 = vmul.f32 %v2203_v46, %v2539_v1 }
  0xe9   : > { %v2552_v9 = vadd.f32 %v1056_v7, %v1039_v58  ;;  %v1064_v30 = vmul.f32 %v2205_v47, %v2539_v1  ;;  %v695_v35 = vpop.f32.mrf.mxu2  ;;  %1896 = vmatpush.bf16.msra.mxu3 %v1826_v16  ;;  %v2562_v6 = vadd.f32 %v2160_v20, %v675_v40  ;;  %v923_v43 = vmul.f32 %v2217_v52, %v2459_v55 }
  0xea   : > { %v878_v45 = vadd.f32 %v2196_v42, %v862_v24  ;;  %v1024_v36 = vmul.f32 %v2220_v53, %v2459_v55  ;;  %v979_v7 = vadd.f32 %v963_v12, %v946_v41  ;;  %v1047_v4 = vadd.f32 %v1031_v8, %v1012_v13 }
  0xeb   : > { %v696_v14 = vadd.f32 %v2160_v20, %v695_v35  ;;  %v931_v58 = vmul.f32 %v2217_v52, %v2497_v15  ;;  %v756_v16 = vrot.slane %v2562_v6, 7  ;;  %v855_v40 = vmul.f32 %v2172_v29, %v2562_v6 }
  0xec   : > { %v939_v23 = vadd.f32 %v923_v43, %v2477_v57  ;;  %v2576_v61 = vadd.f32 %v1064_v30, %v1047_v4  ;;  %v956_v41 = vmul.f32 %v2203_v46, %v2562_v6  ;;  %v1040_v13 = vadd.f32 %v1024_v36, %v2480_v2 }
  0xed   : > { %v1057_v12 = vmul.f32 %v2205_v47, %v2562_v6  ;;  %v2585_v8 = vsel %vm765_vm5, %v746_v62, %v756_v16  ;;  %v2589_v35 = vsel %vm765_vm5, %v756_v16, %v746_v62  ;;  %v871_v57 = vadd.f32 %v2196_v42, %v855_v40 }
  0xee   : > { %v760_v30 = vrot.slane %v696_v14, 7  ;;  %v889_v43 = vmul.f32 %v2210_v49, %v2589_v35  ;;  %v890_v2 = vmul.f32 %v2180_v33, %v2585_v8  ;;  %v972_v36 = vadd.f32 %v956_v41, %v939_v23 }
  0xef   : > { %v2598_v4 = vmul.f32 %v2213_v50, %v2589_v35  ;;  %v991_v24 = vmul.f32 %v2182_v34, %v2585_v8  ;;  %v2602_v60 = vadd.f32 %v1057_v12, %v1040_v13  ;;  %v803_v41 = vrot.slane %v696_v14, 1 }
  0xf0   : > { %v2606_v62 = vsel %vm765_vm5, %v750_v51, %v760_v30  ;;  %v2610_v16 = vsel %vm765_vm5, %v760_v30, %v750_v51  ;;  %v2612_v40 = vadd.f32 %v889_v43, %v870_v5  ;;  %v2614_v23 = vadd.f32 %v890_v2, %v871_v57 }
  0xf1   : > { %v863_v10 = vmul.f32 %v2172_v29, %v696_v14  ;;  %v698_v31 = vpop.f32.mrf.mxu2  ;;  %v2617_v28 = vadd.f32 %v991_v24, %v972_v36  ;;  %v947_v13 = vadd.f32 %v931_v58, %v2515_v19  ;;  %v964_v12 = vmul.f32 %v2203_v46, %v696_v14 }
  0xf2   : > { %v1032_v27 = vmul.f32 %v2220_v53, %v2497_v15  ;;  %v1065_v5 = vmul.f32 %v2205_v47, %v696_v14  ;;  %v699_v57 = vadd.f32 %v2160_v20, %v698_v31  ;;  %v3027_v30 = vrot.slane %v2539_v1, 1 }
  0xf3   : > { %v879_v51 = vadd.f32 %v2196_v42, %v863_v10  ;;  %v980_v24 = vadd.f32 %v964_v12, %v947_v13  ;;  %v897_v58 = vmul.f32 %v2210_v49, %v2610_v16  ;;  %v998_v31 = vmul.f32 %v2213_v50, %v2610_v16 }
  0xf4   : > { %v2630_v29 = vsel %vm806_vm6, %v3027_v30, %v803_v41  ;;  %v1048_v19 = vadd.f32 %v1032_v27, %v2521_v11  ;;  %v751_v42 = vrot.slane %v699_v57, 7  ;;  %v794_v10 = vrot.slane %v699_v57, 1 }
  0xf5   : > { %v932_v43 = vmul.f32 %v2186_v37, %v2630_v29  ;;  %v965_v14 = vmul.f32 %v2203_v46, %v699_v57  ;;  %v913_v36 = vadd.f32 %v897_v58, %v878_v45  ;;  %v1033_v27 = vmul.f32 %v2188_v38, %v2630_v29 }
  0xf6   : > { %v2640_v2 = vadd.f32 %v1065_v5, %v1048_v19  ;;  %v1066_v11 = vmul.f32 %v2205_v47, %v699_v57  ;;  %v1014_v49 = vadd.f32 %v998_v31, %v979_v7  ;;  %v3028_v13 = vmov %v3027_v30 }
  0xf7   : > { %v2649_v12 = vsel %vm806_vm6, %v803_v41, %v3028_v13  ;;  %v898_v30 = vmul.f32 %v2180_v33, %v2606_v62  ;;  %v999_v5 = vmul.f32 %v2182_v34, %v2606_v62  ;;  %v948_v45 = vadd.f32 %v932_v43, %v913_v36 }
  0xf8   : > { %v933_v19 = vmul.f32 %v2217_v52, %v2649_v12  ;;  %v1034_v57 = vmul.f32 %v2220_v53, %v2649_v12  ;;  %v1089_v1 = vmul.f32 %v2223_v54, %v2451_v17  ;;  %v1049_v7 = vadd.f32 %v1033_v27, %v1014_v49 }
  0xf9   : > { %v700_v58 = vpop.f32.mrf.mxu2  ;;  %v914_v41 = vadd.f32 %v898_v30, %v879_v51  ;;  %v1015_v31 = vadd.f32 %v999_v5, %v980_v24  ;;  %v1090_v33 = vmul.f32 %v2190_v39, %v2447_v26  ;;  %v981_v13 = vadd.f32 %v965_v14, %v948_v45 }
  0xfa   : > { %v701_v43 = vadd.f32 %v2160_v20, %v700_v58  ;;  %v1105_v36 = vadd.f32 %v1089_v1, %v2406_v0  ;;  %v1124_v15 = vmul.f32 %v2199_v44, %v2455_v63  ;;  %v2668_v32 = vadd.f32 %v1066_v11, %v1049_v7 }
  0xfb   : > { %v949_v17 = vadd.f32 %v933_v19, %v914_v41  ;;  %v1050_v27 = vadd.f32 %v1034_v57, %v1015_v31  ;;  %v1106_v51 = vadd.f32 %v1090_v33, %v2475_v48  ;;  %v1125_v14 = vmul.f32 %v2227_v59, %v2459_v55 }
  0xfc   : > { %v761_v24 = vrot.slane %v701_v43, 7  ;;  %v804_v49 = vrot.slane %v701_v43, 1  ;;  %v966_v26 = vmul.f32 %v2203_v46, %v701_v43  ;;  %v1067_v30 = vmul.f32 %v2205_v47, %v701_v43 }
  0xfd   : > { %v2675_v5 = vadd.f32 %v1124_v15, %v1105_v36  ;;  %v3029_v0 = vrot.slane %v2562_v6, 1  ;;  %v3030_v63 = vrot.slane %v2513_v18, 1  ;;  %v2711_v43 = vadd.f32 %v1125_v14, %v1106_v51 }
  0xfe   : > { %v774_v55 = vsel %vm765_vm5, %v751_v42, %v761_v24  ;;  %v784_v15 = vsel %vm765_vm5, %v761_v24, %v751_v42  ;;  %v815_v19 = vsel %vm806_vm6, %v794_v10, %v804_v49  ;;  %v825_v57 = vsel %vm806_vm6, %v804_v49, %v794_v10 }
  0xff   : > { %v810_v48 = vsel %vm806_vm6, %v3030_v63, %v3029_v0  ;;  %v3031_v11 = vmov %v3030_v63  ;;  %v3032_v46 = vmov %v3029_v0  ;;  %v982_v1 = vadd.f32 %v966_v26, %v949_v17 }
 0x100   : > { %v820_v45 = vsel %vm806_vm6, %v3032_v46, %v3031_v11  ;;  %v1000_v18 = vmul.f32 %v2213_v50, %v784_v15  ;;  %v1001_v6 = vmul.f32 %v2182_v34, %v774_v55  ;;  %v1083_v7 = vadd.f32 %v1067_v30, %v1050_v27 }
 0x101   : > { %v2702_v58 = vmul.f32 %v2223_v54, %v784_v15  ;;  %v1102_v41 = vmul.f32 %v2190_v39, %v774_v55  ;;  %v2706_v31 = vmul.f32 %v2199_v44, %v815_v19  ;;  %v2709_v42 = vmul.f32 %v2227_v59, %v825_v57  ;;  %v703_v10 = vpop.f32.mrf.mxu2 }
 0x102   : > { %v1017_v33 = vadd.f32 %v1001_v6, %v982_v1  ;;  %v1156_v50 = vmul.f32 %v2675_v5, %v2675_v5  ;;  %v714_v34 = vstv %s713_s24  ;;  %v704_v17 = vadd.f32 %v2160_v20, %v703_v10 }
 0x103   : > { %v2715_v36 = vadd.f32 %v1102_v41, %v1083_v7  ;;  %vm715_vm7 = vcmp.eq.s32.totalorder %v714_v34, 1  ;;  %v1016_v27 = vadd.f32 %v1000_v18, %v981_v13  ;;  %v1157_v24 = vmul.f32 %v2711_v43, %v2711_v43 }
 0x104   : > { %v1172_v49 = vmul.f32 %v1156_v50, %v2675_v5  ;;  %vm717_vm8 = vmxor %vm715_vm7, %vm2014_vm1  ;;  %v1035_v51 = vmul.f32 %v2188_v38, %v815_v19  ;;  %v1036_v26 = vmul.f32 %v2220_v53, %v825_v57  ;;  %v3033_v30 = vmov 0.0  }
 0x105   : > { %v1763_v14 = vsel %vm717_vm8, 1.0, %v3033_v30  ;;  %v924_v0 = vmul.f32 %v2186_v37, %v810_v48  ;;  %v925_v63 = vmul.f32 %v2217_v52, %v820_v45  ;;  %v1025_v11 = vmul.f32 %v2188_v38, %v810_v48 }
 0x106   : > { %v1173_v13 = vmul.f32 %v1157_v24, %v2711_v43  ;;  %v1188_v46 = vmul.f32 0.044715, %v1172_v49  ;;  %v741_v55 = vmul.f32 %v1763_v14, %v704_v17  ;;  %v1051_v15 = vadd.f32 %v1035_v51, %v1016_v27 }
 0x107   : > { %v1052_v1 = vadd.f32 %v1036_v26, %v1017_v33  ;;  %v2730_v18 = vadd.f32 %v924_v0, %v2612_v40  ;;  %v2733_v19 = vadd.f32 %v925_v63, %v2614_v23  ;;  %v1026_v57 = vmul.f32 %v2220_v53, %v820_v45 }
 0x108   : > { %v1189_v6 = vmul.f32 0.044715, %v1173_v13  ;;  %v1204_v37 = vadd.f32 %v1188_v46, %v2675_v5  ;;  %v752_v52 = vrot.slane %v741_v55, 7  ;;  %v795_v7 = vrot.slane %v741_v55, 1 }
 0x109   : > { %v1068_v38 = vmul.f32 %v2205_v47, %v741_v55  ;;  %v1091_v41 = vmul.f32 %v2223_v54, %v2589_v35  ;;  %v1092_v33 = vmul.f32 %v2190_v39, %v2585_v8  ;;  %v1126_v40 = vmul.f32 %v2199_v44, %v810_v48  ;;  %v705_v10 = vpop.f32.mrf.mxu2 }
 0x10a   : > { %v1205_v23 = vadd.f32 %v1189_v6, %v2711_v43  ;;  %v1220_v50 = vmul.f32 0.7978846, %v1204_v37  ;;  %v1127_v53 = vmul.f32 %v2227_v59, %v820_v45  ;;  %v1099_v34 = vmul.f32 %v2223_v54, %v2610_v16 }
 0x10b   : > { %v2747_v17 = vadd.f32 %v1068_v38, %v1051_v15  ;;  %v706_v27 = vadd.f32 %v2160_v20, %v705_v10  ;;  %v1107_v35 = vadd.f32 %v1091_v41, %v2552_v9  ;;  %v1108_v24 = vadd.f32 %v1092_v33, %v2602_v60 }
 0x10c   : > { %v1221_v8 = vmul.f32 0.7978846, %v1205_v23  ;;  %1942 = vtanh.f32 %v1220_v50  ;;  %v1100_v48 = vmul.f32 %v2190_v39, %v2606_v62  ;;  %v1115_v49 = vadd.f32 %v1099_v34, %v2576_v61 }
 0x10d   : > { %v742_v51 = vmul.f32 %v1763_v14, %v706_v27  ;;  %v2755_v45 = vadd.f32 %v1126_v40, %v1107_v35  ;;  %v2757_v26 = vadd.f32 %v1127_v53, %v1108_v24  ;;  %v1134_v16 = vmul.f32 %v2199_v44, %v2630_v29 }
 0x10e   : > { %1944 = vtanh.f32 %v1221_v8  ;;  %v1116_v20 = vadd.f32 %v1100_v48, %v2640_v2  ;;  %v1135_v60 = vmul.f32 %v2227_v59, %v2649_v12  ;;  %v1006_v9 = vadd.f32 %v2598_v4, %v2545_v56 }
 0x10f   : > { %v762_v62 = vrot.slane %v742_v51, 7  ;;  %v805_v30 = vrot.slane %v742_v51, 1  ;;  %v1069_v61 = vmul.f32 %v2205_v47, %v742_v51  ;;  %v1158_v14 = vmul.f32 %v2755_v45, %v2755_v45 }
 0x110   : > { %v1159_v0 = vmul.f32 %v2757_v26, %v2757_v26  ;;  %v2771_v29 = vadd.f32 %v1134_v16, %v1115_v49  ;;  %v2773_v63 = vadd.f32 %v1135_v60, %v1116_v20  ;;  %v1041_v2 = vadd.f32 %v1025_v11, %v1006_v9  ;;  %v3034_v16 = vld [vmem:[#allocation17_spill] sm:$0xff] }
 0x111   : > { %v775_v12 = vsel %vm765_vm5, %v752_v52, %v762_v62  ;;  %v785_v56 = vsel %vm765_vm5, %v762_v62, %v752_v52  ;;  %v816_v47 = vsel %vm806_vm6, %v795_v7, %v805_v30  ;;  %v826_v4 = vsel %vm806_vm6, %v805_v30, %v795_v7 }
 0x112   : > { %v1943_v13 = vpop.eup %1942  ;;  %v1085_v46 = vadd.f32 %v1069_v61, %v1052_v1  ;;  %v2784_v55 = vmul.f32 %v2223_v54, %v785_v56  ;;  %v1104_v15 = vmul.f32 %v2190_v39, %v775_v12  ;;  %v2788_v11 = vmul.f32 %v2199_v44, %v816_v47  ;;  %v3035_v61 = vld [vmem:[#allocation5_spill] sm:$0xff]  ;;  %v3036_v12 = vld [vmem:[#allocation6_spill] sm:$0xff] }
 0x113   : > { %v1252_v6 = vadd.f32 1.0, %v1943_v13  ;;  %v2791_v37 = vmul.f32 %v2227_v59, %v826_v4  ;;  %v1174_v52 = vmul.f32 %v1158_v14, %v2755_v45  ;;  %v1175_v38 = vmul.f32 %v1159_v0, %v2757_v26 }
 0x114   : > { %v1945_v21 = vpop.eup %1944  ;;  %v2795_v7 = vadd.f32 %v1104_v15, %v1085_v46  ;;  %v1166_v1 = vmul.f32 %v2771_v29, %v2771_v29  ;;  %v1167_v41 = vmul.f32 %v2773_v63, %v2773_v63  ;;  %v1042_v33 = vadd.f32 %v1026_v57, %v2617_v28  ;;  %v3037_v46 = vld [vmem:[#allocation14_spill] sm:$0xff] }
 0x115   : > { %v1253_v40 = vadd.f32 1.0, %v1945_v21  ;;  %v1268_v23 = vmul.f32 0.5, %v1252_v6  ;;  %v1190_v50 = vmul.f32 0.044715, %v1174_v52  ;;  %v1191_v10 = vmul.f32 0.044715, %v1175_v38 }
 0x116   : > { %v1182_v53 = vmul.f32 %v1166_v1, %v2771_v29  ;;  %v1183_v34 = vmul.f32 %v1167_v41, %v2773_v63  ;;  %v1074_v27 = vadd.f32 %v2234_v3, %v1041_v2  ;;  %v1075_v35 = vadd.f32 %v2255_v22, %v1042_v33  ;;  %v3038_v6 = vld [vmem:[#allocation13_spill] sm:$0xff]  ;;  %v3039_v21 = vld [vmem:[#allocation15_spill] sm:$0xff]  ;;  %v3040_v41 = vld [vmem:[#allocation16_spill] sm:$0xff] }
 0x117   : > { %v1269_v24 = vmul.f32 0.5, %v1253_v40  ;;  %v1284_v8 = vmul.f32 %v1268_v23, %v2675_v5  ;;  %v1206_v48 = vadd.f32 %v1190_v50, %v2755_v45  ;;  %v1207_v49 = vadd.f32 %v1191_v10, %v2757_v26  ;;  %v3041_v50 = vld [vmem:[#allocation20_spill] sm:$0xff] }
 0x118   : > { %v1198_v28 = vmul.f32 0.044715, %v1182_v53  ;;  %v1199_v57 = vmul.f32 0.044715, %v1183_v34  ;;  %v1094_v51 = vmul.f32 %v2190_v39, %v2260_v25  ;;  %v1109_v20 = vadd.f32 %v3034_v16, %v1074_v27  ;;  %v3042_v34 = vld [vmem:[#allocation19_spill] sm:$0xff] }
 0x119   : > { %v1285_v60 = vmul.f32 %v1269_v24, %v2711_v43  ;;  %v1300_v9 = vpack.c.bf16 %v1284_v8, %v1284_v8  ;;  %v1222_v3 = vmul.f32 0.7978846, %v1206_v48  ;;  %v1223_v62 = vmul.f32 0.7978846, %v1207_v49  ;;  %v3044_v8 = vld [vmem:[#allocation22_spill] sm:$0xff] }
 0x11a   : > { %v1214_v22 = vadd.f32 %v1198_v28, %v2771_v29  ;;  %v1215_v5 = vadd.f32 %v1199_v57, %v2773_v63  ;;  %v1110_v30 = vadd.f32 %v1094_v51, %v1075_v35  ;;  %v1128_v14 = vmul.f32 %v2199_v44, %v3035_v61  ;;  %v3043_v35 = vld [vmem:[#allocation21_spill] sm:$0xff] }
 0x11b   : > { %v1301_v0 = vpack.c.bf16 %v1285_v60, %v1285_v60  ;;  %v1352_v2 = vunpack.c.l.b16 %v1300_v9  ;;  %1946 = vtanh.f32 %v1222_v3  ;;  %v1129_v25 = vmul.f32 %v2227_v59, %v3036_v12  ;;  %v3046_v60 = vld [vmem:[#allocation3_spill] sm:$0xff]  ;;  %v3047_v9 = vld [vmem:[#allocation4_spill] sm:$0xff] }
 0x11c   : > { %1948 = vtanh.f32 %v1223_v62  ;;  %v1230_v56 = vmul.f32 0.7978846, %v1214_v22  ;;  %v1231_v43 = vmul.f32 0.7978846, %v1215_v5  ;;  %v2819_v47 = vadd.f32 %v1128_v14, %v1109_v20  ;;  %v3049_v14 = vld [vmem:[#allocation8_spill] sm:$0xff] }
 0x11d   : > { %v1353_v4 = vunpack.c.l.b16 %v1301_v0  ;;  %v2821_v13 = vadd.f32 %v1129_v25, %v1110_v30  ;;  %v2825_v15 = vmul.f32 %v2223_v54, %v3037_v46  ;;  %v2829_v52 = vmul.f32 %v2190_v39, %v3038_v6  ;;  %v3048_v30 = vld [vmem:[#allocation7_spill] sm:$0xff] }
 0x11e   : > { %1950 = vtanh.f32 %v1230_v56  ;;  %v1160_v38 = vmul.f32 %v2819_v47, %v2819_v47  ;;  %v2835_v1 = vmul.f32 %v2199_v44, %v3039_v21  ;;  %v2839_v33 = vmul.f32 %v2227_v59, %v3040_v41 }
 0x11f   : > { %v1368_v40 = vpack.c.b16 %v1353_v4, %v1352_v2  ;;  %1952 = vtanh.f32 %v1231_v43  ;;  %v1161_v23 = vmul.f32 %v2821_v13, %v2821_v13  ;;  %v1097_v10 = vmul.f32 %v2223_v54, %v3041_v50 }
 0x120   : > { %v1176_v53 = vmul.f32 %v1160_v38, %v2819_v47  ;;  %v1098_v27 = vmul.f32 %v2190_v39, %v3042_v34  ;;  %v2850_v24 = vmul.f32 %v2199_v44, %v3043_v35  ;;  %v2854_v48 = vmul.f32 %v2227_v59, %v3044_v8  ;;  %v3045_v39 = vld [vmem:[#allocation18_spill] sm:$0xff]  ;;  %v3050_v8 = vld [vmem:[#allocation9_spill] sm:$0xff] }
 0x121   : > { %v1947_v49 = vpop.eup %1946  ;;  %1440 = vmatmul.bf16.vlgmr.msra.gmra.mxu1 %v1368_v40  ;;  %v1177_v28 = vmul.f32 %v1161_v23, %v2821_v13  ;;  %v1117_v54 = vadd.f32 %v2702_v58, %v2668_v32  ;;  %v2861_v57 = vadd.f32 %v2709_v42, %v2715_v36  ;;  %v1113_v51 = vadd.f32 %v1097_v10, %v3045_v39  ;;  %v3051_v39 = vld [vmem:[#allocation10_spill] sm:$0xff] }
 0x122   : > { %v1949_v16 = vpop.eup %1948  ;;  %v1254_v44 = vadd.f32 1.0, %v1947_v49  ;;  %v1192_v20 = vmul.f32 0.044715, %v1176_v53  ;;  %v973_v59 = vadd.f32 %v3046_v60, %v2730_v18  ;;  %v974_v3 = vadd.f32 %v3047_v9, %v2733_v19  ;;  %v3052_v60 = vld [vmem:[#allocation11_spill] sm:$0xff] }
 0x123   : > { %v1255_v62 = vadd.f32 1.0, %v1949_v16  ;;  %v1193_v22 = vmul.f32 0.044715, %v1177_v28  ;;  %v2869_v5 = vadd.f32 %v2706_v31, %v1117_v54  ;;  %v1169_v32 = vmul.f32 %v2861_v57, %v2861_v57 }
 0x124   : > { %v1951_v58 = vpop.eup %1950  ;;  %v1270_v42 = vmul.f32 0.5, %v1254_v44  ;;  %v1208_v36 = vadd.f32 %v1192_v20, %v2819_v47  ;;  %v1008_v61 = vadd.f32 %v3048_v30, %v973_v59  ;;  %v1009_v0 = vadd.f32 %v3049_v14, %v974_v3 }
 0x125   : > { %v1953_v18 = vpop.eup %1952  ;;  %v1271_v2 = vmul.f32 0.5, %v1255_v62  ;;  %v1262_v12 = vadd.f32 1.0, %v1951_v58  ;;  %v1209_v19 = vadd.f32 %v1193_v22, %v2821_v13  ;;  %v1168_v31 = vmul.f32 %v2869_v5, %v2869_v5 }
 0x126   : > { %v1286_v25 = vmul.f32 %v1270_v42, %v2755_v45  ;;  %v1263_v56 = vadd.f32 1.0, %v1953_v18  ;;  %v1224_v43 = vmul.f32 0.7978846, %v1208_v36  ;;  %v1185_v4 = vmul.f32 %v1169_v32, %v2861_v57 }
 0x127   : > { %v1287_v46 = vmul.f32 %v1271_v2, %v2757_v26  ;;  %v1278_v6 = vmul.f32 0.5, %v1262_v12  ;;  %v1225_v38 = vmul.f32 0.7978846, %v1209_v19  ;;  %v1184_v21 = vmul.f32 %v1168_v31, %v2869_v5 }
 0x128   : > { %v1302_v41 = vpack.c.bf16 %v1286_v25, %v1286_v25  ;;  %v1279_v40 = vmul.f32 0.5, %v1263_v56  ;;  %1954 = vtanh.f32 %v1224_v43  ;;  %v1201_v23 = vmul.f32 0.044715, %v1185_v4 }
 0x129   : > { %v1303_v50 = vpack.c.bf16 %v1287_v46, %v1287_v46  ;;  %v1294_v10 = vmul.f32 %v1278_v6, %v2771_v29  ;;  %1956 = vtanh.f32 %v1225_v38  ;;  %v1200_v53 = vmul.f32 0.044715, %v1184_v21  ;;  %v3053_v29 = vld [vmem:[#allocation23_spill] sm:$0xff] }
 0x12a   : > { %v1354_v45 = vunpack.c.l.b16 %v1302_v41  ;;  %v1295_v34 = vmul.f32 %v1279_v40, %v2773_v63  ;;  %v1217_v35 = vadd.f32 %v1201_v23, %v2861_v57  ;;  %v1043_v26 = vadd.f32 %v3050_v8, %v1008_v61  ;;  %v3054_v63 = vld [vmem:[#allocation12_spill] sm:$0xff] }
 0x12b   : > { %v1355_v49 = vunpack.c.l.b16 %v1303_v50  ;;  %v1310_v28 = vpack.c.bf16 %v1294_v10, %v1294_v10  ;;  %v1216_v54 = vadd.f32 %v1200_v53, %v2869_v5  ;;  %v1044_v16 = vadd.f32 %v3051_v39, %v1009_v0 }
 0x12c   : > { %v1311_v44 = vpack.c.bf16 %v1295_v34, %v1295_v34  ;;  %v1233_v20 = vmul.f32 0.7978846, %v1217_v35  ;;  %v1076_v59 = vadd.f32 %v3052_v60, %v1043_v26  ;;  %v1114_v9 = vadd.f32 %v1098_v27, %v3053_v29 }
 0x12d   : > { %v1369_v3 = vpack.c.b16 %v1355_v49, %v1354_v45  ;;  %v1362_v62 = vunpack.c.l.b16 %v1310_v28  ;;  %v1232_v22 = vmul.f32 0.7978846, %v1216_v54  ;;  %v1077_v32 = vadd.f32 %v3054_v63, %v1044_v16 }
 0x12e   : > { %v1955_v58 = vpop.eup %1954  ;;  %v1363_v42 = vunpack.c.l.b16 %v1311_v44  ;;  %1958 = vtanh.f32 %v1233_v20  ;;  %v1111_v36 = vadd.f32 %v2825_v15, %v1076_v59  ;;  %v2894_v30 = vadd.f32 %v2850_v24, %v1113_v51 }
 0x12f   : > { %v1957_v61 = vpop.eup %1956  ;;  %v1256_v14 = vadd.f32 1.0, %v1955_v58  ;;  %1960 = vtanh.f32 %v1232_v22  ;;  %v1112_v0 = vadd.f32 %v2829_v52, %v1077_v32  ;;  %v2898_v27 = vadd.f32 %v2854_v48, %v1114_v9 }
 0x130   : > { %v1373_v18 = vpack.c.b16 %v1363_v42, %v1362_v62  ;;  %v1257_v2 = vadd.f32 1.0, %v1957_v61  ;;  %v2901_v12 = vadd.f32 %v2835_v1, %v1111_v36  ;;  %v1164_v19 = vmul.f32 %v2894_v30, %v2894_v30 }
 0x131   : > { %1445 = vmatmul.bf16.gmra.mxu1 %v1369_v3  ;;  %v1272_v15 = vmul.f32 0.5, %v1256_v14  ;;  %v2906_v24 = vadd.f32 %v2839_v33, %v1112_v0  ;;  %v1119_v51 = vadd.f32 %v2784_v55, %v2747_v17  ;;  %v2912_v52 = vadd.f32 %v2791_v37, %v2795_v7 }
 0x132   : > { %1465 = vmatmul.bf16.vlgmr.msra.gmra.mxu3 %v1373_v18  ;;  %v1273_v48 = vmul.f32 0.5, %v1257_v2  ;;  %v1162_v1 = vmul.f32 %v2901_v12, %v2901_v12  ;;  %v1165_v31 = vmul.f32 %v2898_v27, %v2898_v27  ;;  %v1180_v25 = vmul.f32 %v1164_v19, %v2894_v30 }
 0x133   : > { %v1288_v33 = vmul.f32 %v1272_v15, %v2819_v47  ;;  %v1163_v56 = vmul.f32 %v2906_v24, %v2906_v24  ;;  %v2923_v17 = vadd.f32 %v2788_v11, %v1119_v51  ;;  %v1171_v55 = vmul.f32 %v2912_v52, %v2912_v52 }
 0x134   : > { %v1959_v37 = vpop.eup %1958  ;;  %v1289_v7 = vmul.f32 %v1273_v48, %v2821_v13  ;;  %v1178_v43 = vmul.f32 %v1162_v1, %v2901_v12  ;;  %v1181_v4 = vmul.f32 %v1165_v31, %v2898_v27  ;;  %v1196_v46 = vmul.f32 0.044715, %v1180_v25 }
 0x135   : > { %v1961_v6 = vpop.eup %1960  ;;  %v1304_v38 = vpack.c.bf16 %v1288_v33, %v1288_v33  ;;  %v1265_v47 = vadd.f32 1.0, %v1959_v37  ;;  %v1179_v21 = vmul.f32 %v1163_v56, %v2906_v24  ;;  %v1170_v11 = vmul.f32 %v2923_v17, %v2923_v17 }
 0x136   : > { %v1305_v41 = vpack.c.bf16 %v1289_v7, %v1289_v7  ;;  %v1264_v40 = vadd.f32 1.0, %v1961_v6  ;;  %v1194_v23 = vmul.f32 0.044715, %v1178_v43  ;;  %v1187_v50 = vmul.f32 %v1171_v55, %v2912_v52 }
 0x137   : > { %v1356_v10 = vunpack.c.l.b16 %v1304_v38  ;;  %v1281_v13 = vmul.f32 0.5, %v1265_v47  ;;  %v1195_v53 = vmul.f32 0.044715, %v1179_v21  ;;  %v1186_v45 = vmul.f32 %v1170_v11, %v2923_v17 }
 0x138   : > { %v1357_v34 = vunpack.c.l.b16 %v1305_v41  ;;  %v1280_v35 = vmul.f32 0.5, %v1264_v40  ;;  %v1210_v8 = vadd.f32 %v1194_v23, %v2901_v12  ;;  %v1203_v26 = vmul.f32 0.044715, %v1187_v50 }
 0x139   : > { %v1297_v49 = vmul.f32 %v1281_v13, %v2861_v57  ;;  %v1211_v28 = vadd.f32 %v1195_v53, %v2906_v24  ;;  %v1202_v54 = vmul.f32 0.044715, %v1186_v45  ;;  %v1197_v39 = vmul.f32 0.044715, %v1181_v4 }
 0x13a   : > { %v1370_v16 = vpack.c.b16 %v1357_v34, %v1356_v10  ;;  %v1296_v44 = vmul.f32 %v1280_v35, %v2869_v5  ;;  %v1226_v20 = vmul.f32 0.7978846, %v1210_v8  ;;  %v1219_v60 = vadd.f32 %v1203_v26, %v2912_v52 }
 0x13b   : > { %v1313_v59 = vpack.c.bf16 %v1297_v49, %v1297_v49  ;;  %v1227_v29 = vmul.f32 0.7978846, %v1211_v28  ;;  %v1218_v9 = vadd.f32 %v1202_v54, %v2923_v17  ;;  %v1212_v3 = vadd.f32 %v1196_v46, %v2894_v30 }
 0x13c   : > { %v1312_v62 = vpack.c.bf16 %v1296_v44, %v1296_v44  ;;  %1962 = vtanh.f32 %v1226_v20  ;;  %v1235_v22 = vmul.f32 0.7978846, %v1219_v60  ;;  %v1213_v57 = vadd.f32 %v1197_v39, %v2898_v27 }
 0x13d   : > { %v1365_v63 = vunpack.c.l.b16 %v1313_v59  ;;  %1964 = vtanh.f32 %v1227_v29  ;;  %v1234_v32 = vmul.f32 0.7978846, %v1218_v9  ;;  %v1228_v58 = vmul.f32 0.7978846, %v1212_v3 }
 0x13e   : > { %v1364_v42 = vunpack.c.l.b16 %v1312_v62  ;;  %1966 = vtanh.f32 %v1235_v22  ;;  %v1229_v5 = vmul.f32 0.7978846, %v1213_v57 }
 0x13f   : > { %1968 = vtanh.f32 %v1234_v32 }
 0x140   : > { %v1374_v36 = vpack.c.b16 %v1365_v63, %v1364_v42  ;;  %1970 = vtanh.f32 %v1228_v58 }
 0x141   : > { %1450 = vmatmul.bf16.gmra.mxu1 %v1370_v16  ;;  %1972 = vtanh.f32 %v1229_v5 }
 0x142   : > { %v1963_v61 = vpop.eup %1962  ;;  %1470 = vmatmul.bf16.gmra.mxu3 %v1374_v36 }
 0x143   : > { %v1965_v14 = vpop.eup %1964  ;;  %v1258_v0 = vadd.f32 1.0, %v1963_v61 }
 0x144   : > { %v1967_v18 = vpop.eup %1966  ;;  %v1259_v2 = vadd.f32 1.0, %v1965_v14 }
 0x145   : > { %v1969_v19 = vpop.eup %1968  ;;  %v1274_v15 = vmul.f32 0.5, %v1258_v0  ;;  %v1267_v51 = vadd.f32 1.0, %v1967_v18 }
 0x146   : > { %v1971_v48 = vpop.eup %1970  ;;  %v1275_v1 = vmul.f32 0.5, %v1259_v2  ;;  %v1266_v31 = vadd.f32 1.0, %v1969_v19 }
 0x147   : > { %v1973_v25 = vpop.eup %1972  ;;  %v1290_v33 = vmul.f32 %v1274_v15, %v2901_v12  ;;  %v1283_v56 = vmul.f32 0.5, %v1267_v51  ;;  %v1260_v55 = vadd.f32 1.0, %v1971_v48 }
 0x148   : > { %v1291_v37 = vmul.f32 %v1275_v1, %v2906_v24  ;;  %v1282_v7 = vmul.f32 0.5, %v1266_v31  ;;  %v1261_v43 = vadd.f32 1.0, %v1973_v25 }
 0x149   : > { %v1306_v4 = vpack.c.bf16 %v1290_v33, %v1290_v33  ;;  %v1299_v46 = vmul.f32 %v1283_v56, %v2912_v52  ;;  %v1276_v6 = vmul.f32 0.5, %v1260_v55 }
 0x14a   : > { %v1307_v38 = vpack.c.bf16 %v1291_v37, %v1291_v37  ;;  %v1298_v47 = vmul.f32 %v1282_v7, %v2923_v17  ;;  %v1277_v21 = vmul.f32 0.5, %v1261_v43 }
 0x14b   : > { %v1358_v11 = vunpack.c.l.b16 %v1306_v4  ;;  %v1315_v41 = vpack.c.bf16 %v1299_v46, %v1299_v46  ;;  %v1292_v40 = vmul.f32 %v1276_v6, %v2894_v30  ;;  %v1941_v30 = vld [vmem:[%s2990_s8] ss:$0 sm:$0xff] }
 0x14c   : > { %v1359_v23 = vunpack.c.l.b16 %v1307_v38  ;;  %v1314_v12 = vpack.c.bf16 %v1298_v47, %v1298_v47  ;;  %v1293_v50 = vmul.f32 %v1277_v21, %v2898_v27 }
 0x14d   : > { %v1367_v10 = vunpack.c.l.b16 %v1315_v41  ;;  %v1308_v24 = vpack.c.bf16 %v1292_v40, %v1292_v40 }
 0x14e   : > { %v1371_v13 = vpack.c.b16 %v1359_v23, %v1358_v11  ;;  %v1366_v53 = vunpack.c.l.b16 %v1314_v12  ;;  %v1309_v45 = vpack.c.bf16 %v1293_v50, %v1293_v50 }
 0x14f   : > { %v1360_v52 = vunpack.c.l.b16 %v1308_v24 }
 0x150   : > { %v1375_v34 = vpack.c.b16 %v1367_v10, %v1366_v53  ;;  %v1361_v35 = vunpack.c.l.b16 %v1309_v45 }
 0x151   : > { %1455 = vmatmul.bf16.gmra.mxu1 %v1371_v13 }
 0x152   : > { %1475 = vmatmul.bf16.gmra.mxu3 %v1375_v34  ;;  %v1372_v17 = vpack.c.b16 %v1361_v35, %v1360_v52 }
 0x161   : > { %1460 = vmatmul.bf16.gmra.mxu1 %v1372_v17 }
 0x19e   : > { %v1441_v8 = vpop.f32.mrf.mxu1 }
 0x19f   : > { %v1442_v27 = vadd.f32 %v1941_v30, %v1441_v8 }
 0x1a6   : > { %v1443_v26 = vpop.f32.mrf.mxu1 }
 0x1a7   : > { %v1444_v49 = vadd.f32 %v1941_v30, %v1443_v26 }
 0x1a9   : > { %v1837_v28 = vpack.c.bf16 %v1444_v49, %v1442_v27 }
 0x1ab   : > { %1838 = vst [vmem:[%s2957_s16] sm:$0xff] %v1837_v28  }
 0x1ae   : > { %v1446_v54 = vpop.f32.mrf.mxu1 }
 0x1af   : > { %v1447_v44 = vadd.f32 %v1941_v30, %v1446_v54 }
 0x1b5   : > { %v1466_v39 = vpop.f32.mrf.mxu3 }
 0x1b6   : > { %v1448_v16 = vpop.f32.mrf.mxu1  ;;  %v1467_v29 = vadd.f32 %v1941_v30, %v1466_v39 }
 0x1b7   : > { %v1449_v20 = vadd.f32 %v1941_v30, %v1448_v16 }
 0x1b9   : > { %v1842_v60 = vpack.c.bf16 %v1449_v20, %v1447_v44 }
 0x1bb   : > { %1874 = vst [vmem:[%s2957_s16 + $0x8] sm:$0xff] %v1842_v60  }
 0x1bd   : > { %v1468_v59 = vpop.f32.mrf.mxu3 }
 0x1be   : > { %v1451_v9 = vpop.f32.mrf.mxu1  ;;  %v1469_v3 = vadd.f32 %v1941_v30, %v1468_v59 }
 0x1bf   : > { %v1452_v63 = vadd.f32 %v1941_v30, %v1451_v9 }
 0x1c0   : > { %v1862_v62 = vpack.c.bf16 %v1469_v3, %v1467_v29 }
 0x1c2   : > { %1878 = vst [vmem:[%s2957_s16 + $0x28] sm:$0xff] %v1862_v62  }
 0x1c5   : > { %v1471_v22 = vpop.f32.mrf.mxu3 }
 0x1c6   : > { %v1453_v57 = vpop.f32.mrf.mxu1  ;;  %v1472_v5 = vadd.f32 %v1941_v30, %v1471_v22 }
 0x1c7   : > { %v1454_v32 = vadd.f32 %v1941_v30, %v1453_v57 }
 0x1c9   : > { %v1847_v58 = vpack.c.bf16 %v1454_v32, %v1452_v63 }
 0x1cb   : > { %1875 = vst [vmem:[%s2957_s16 + $0x10] sm:$0xff] %v1847_v58  }
 0x1cd   : > { %v1473_v42 = vpop.f32.mrf.mxu3 }
 0x1ce   : > { %v1456_v36 = vpop.f32.mrf.mxu1  ;;  %v1474_v61 = vadd.f32 %v1941_v30, %v1473_v42 }
 0x1cf   : > { %v1457_v2 = vadd.f32 %v1941_v30, %v1456_v36 }
 0x1d0   : > { %v1867_v14 = vpack.c.bf16 %v1474_v61, %v1472_v5 }
 0x1d2   : > { %1879 = vst [vmem:[%s2957_s16 + $0x30] sm:$0xff] %v1867_v14  }
 0x1d5   : > { %v1476_v0 = vpop.f32.mrf.mxu3 }
 0x1d6   : > { %v1458_v18 = vpop.f32.mrf.mxu1  ;;  %v1477_v48 = vadd.f32 %v1941_v30, %v1476_v0 }
 0x1d7   : > { %v1459_v19 = vadd.f32 %v1941_v30, %v1458_v18 }
 0x1d9   : > { %v1852_v15 = vpack.c.bf16 %v1459_v19, %v1457_v2 }
 0x1db   : > { %1876 = vst [vmem:[%s2957_s16 + $0x18] sm:$0xff] %v1852_v15  }
 0x1dd   : > { %v1478_v51 = vpop.f32.mrf.mxu3 }
 0x1de   : > { %v1461_v1 = vpop.f32.mrf.mxu1  ;;  %v1479_v31 = vadd.f32 %v1941_v30, %v1478_v51 }
 0x1df   : > { %v1462_v56 = vadd.f32 %v1941_v30, %v1461_v1 }
 0x1e0   : > { %v1872_v25 = vpack.c.bf16 %v1479_v31, %v1477_v48 }
 0x1e2   : > { %1880 = vst [vmem:[%s2957_s16 + $0x38] sm:$0xff] %v1872_v25  }
 0x1e6   : > { %v1463_v33 = vpop.f32.mrf.mxu1 }
 0x1e7   : > { %v1464_v55 = vadd.f32 %v1941_v30, %v1463_v33 }
 0x1e9   : > { %v1857_v37 = vpack.c.bf16 %v1464_v55, %v1462_v56 }
 0x1eb   : > { %1877 = vst [vmem:[%s2957_s16 + $0x20] sm:$0xff] %v1857_v37  }
 0x1ec PF: > { %s19_s13 = sadd.s32 1, %s2012_s13   ;;  %s3055_s26 = sld [smem:[#allocation2_spill]] }
 0x1ed   : > { %p16_p12 = scmp.ge.s32.totalorder %s19_s13, 6   ;;  %s3056_s30 = smov %s2004_s11 }
 0x1ee   : > { %s3057_s10 = smov %s2008_s12  ;;  %s3058_s11 = smov %s3061_s14 }
 0x1ef   :  { %18 = sbr.rel (!%p16_p12) target bundleno = 3 (0x3), region = 92 }
 0x1f2   : > { %s3059_s12 = smov %s3055_s26 }

</bundles_post_ra>
